<compile_context>
chip_gen: v7x
topology: tpu7x:2x2x1
jax: 0.10.0
libtpu: 0.0.40
codegen_flags: <defaults>
</compile_context>

<pallas_src>
import math

import jax
import jax.numpy as jnp
from jax.experimental import pallas as pl
from jax.experimental.pallas import tpu as pltpu


def _round_up(x, m):
    return ((x + m - 1) // m) * m


# ----------------------------------------------------------------------------
# Pallas kernel: one batch tile of the full VAE forward.
# All weights are whole-array VMEM blocks (constant index_map -> fetched once).
# ----------------------------------------------------------------------------
def _vae_kernel(
    x_ref, eps_ref,
    ew0, eb0, ew1, eb1, ew2, eb2,            # encoder linears (with ReLU)
    mvw, mvb,                                # fused mean|log_var head
    dw0, db0, dw1, db1, dw2, db2, dw3, db3,  # decoder linears (with ReLU)
    small_ref, recon_ref,                    # [z | mean | log_var], recon
):
    f32 = jnp.float32
    bf16 = jnp.bfloat16

    def linear(h, w_ref, b_ref, relu):
        y = jnp.dot(h.astype(bf16), w_ref[...],
                    preferred_element_type=f32) + b_ref[...]
        return jnp.maximum(y, 0.0) if relu else y

    x = x_ref[...]                            # bf16 batch tile

    # ---- encoder ----
    h = linear(x, ew0, eb0, relu=True)
    h = linear(h, ew1, eb1, relu=True)
    h = linear(h, ew2, eb2, relu=True)

    # ---- fused mean / log_var head (lane-dense N = 2 * z_pad) ----
    mv = linear(h, mvw, mvb, relu=False)
    z_pad = mv.shape[-1] // 2
    mean = mv[:, :z_pad]
    log_var = mv[:, z_pad:]

    # ---- reparameterization: z = mean + eps * exp(0.5 * log_var) ----
    sigma = jnp.exp(0.5 * log_var)
    z = mean + eps_ref[...].astype(f32) * sigma

    # ---- decoder (ReLU after every layer, incl. the last, as in the module) ----
    d = linear(z, dw0, db0, relu=True)
    d = linear(d, dw1, db1, relu=True)
    d = linear(d, dw2, db2, relu=True)
    d = linear(d, dw3, db3, relu=True)

    # Lane-dense fused small outputs: one wide f32 slab instead of 3 streams.
    small_ref[...] = jnp.concatenate([z, mean, log_var],
                                     axis=-1).astype(small_ref.dtype)
    recon_ref[...] = d.astype(recon_ref.dtype)


# ----------------------------------------------------------------------------
# Parameter construction (deterministic, torch-like uniform(-1/sqrt(fan_in), ..))
# Original (unpadded, f32) shapes — what the torch module would hold.
# ----------------------------------------------------------------------------
def init_vae_params(key, input_dim=1000, latent_dim=(512, 256, 128, 50)):
    dims = [
        (input_dim, latent_dim[0]),
        (latent_dim[0], latent_dim[1]),
        (latent_dim[1], latent_dim[2]),
        (latent_dim[2], latent_dim[3]),   # mean
        (latent_dim[2], latent_dim[3]),   # log_var
        (latent_dim[3], latent_dim[2]),
        (latent_dim[2], latent_dim[1]),
        (latent_dim[1], latent_dim[0]),
        (latent_dim[0], input_dim),
    ]
    params = []
    for fan_in, fan_out in dims:
        key, kw, kb = jax.random.split(key, 3)
        bound = 1.0 / math.sqrt(fan_in)
        w = jax.random.uniform(kw, (fan_in, fan_out), jnp.float32, -bound, bound)
        b = jax.random.uniform(kb, (1, fan_out), jnp.float32, -bound, bound)
        params.extend([w, b])
    return params  # [ew0,eb0, ew1,eb1, ew2,eb2, mw,mb, vw,vb, dw0,db0..dw3,db3]


# ----------------------------------------------------------------------------
# Pack params for the kernel: lane-align the ragged dims (1000->1024, 50->128),
# fuse the mean/log_var head, and cast weights to bf16 (biases stay f32).
# Padded rows/cols and padded bias lanes are zero -> math is unchanged.
# ----------------------------------------------------------------------------
def pack_params(params, input_dim=1000, latent_dim=(512, 256, 128, 50),
                d_in_pad=None, z_pad=None):
    (ew0, eb0, ew1, eb1, ew2, eb2, mw, mb, vw, vb,
     dw0, db0, dw1, db1, dw2, db2, dw3, db3) = params

    d_in_pad = d_in_pad or _round_up(input_dim, 128)
    z_pad = z_pad or _round_up(max(latent_dim[3], 128), 128)

    def pad_w(w, rows, cols):
        out = jnp.zeros((rows, cols), jnp.float32)
        return out.at[: w.shape[0], : w.shape[1]].set(w)

    def pad_b(b, cols):
        out = jnp.zeros((1, cols), jnp.float32)
        return out.at[:, : b.shape[1]].set(b)

    bf16 = jnp.bfloat16
    ew0_p = pad_w(ew0, d_in_pad, ew0.shape[1]).astype(bf16)
    mvw = jnp.concatenate(
        [pad_w(mw, mw.shape[0], z_pad), pad_w(vw, vw.shape[0], z_pad)], axis=1
    ).astype(bf16)
    mvb = jnp.concatenate([pad_b(mb, z_pad), pad_b(vb, z_pad)], axis=1)
    dw0_p = pad_w(dw0, z_pad, dw0.shape[1]).astype(bf16)
    dw3_p = pad_w(dw3, dw3.shape[0], d_in_pad).astype(bf16)
    db3_p = pad_b(db3, d_in_pad)

    return [
        ew0_p, eb0,
        ew1.astype(bf16), eb1,
        ew2.astype(bf16), eb2,
        mvw, mvb,
        dw0_p, db0,
        dw1.astype(bf16), db1,
        dw2.astype(bf16), db2,
        dw3_p, db3_p,
    ]


# ----------------------------------------------------------------------------
# Wrapper: pad batch/features, run the batch-tiled kernel, slice back.
# ----------------------------------------------------------------------------
@jax.jit
def vae_forward(x, eps, packed_params):
    org_shape = x.shape
    batch = org_shape[0]
    x_flat = x.reshape(batch, -1)
    input_dim = x_flat.shape[1]
    z_dim = eps.shape[1]

    d_in_pad = packed_params[0].shape[0]   # ew0 rows
    z_pad = packed_params[8].shape[0]      # dw0 rows

    # --- adaptive batch tiling ------------------------------------------------
    # 16-row alignment (bf16 sublane packing); tiles capped at 512 rows; split
    # into >=2 tiles once the batch is big enough so v7x's 2 TCs both get work.
    ALIGN = 16
    CAP = 512
    b_al = max(_round_up(batch, ALIGN), ALIGN)
    n_tiles = -(-b_al // CAP)
    if b_al > 256:
        n_tiles = max(n_tiles, 2)
    tb = _round_up(-(-b_al // n_tiles), ALIGN)
    b_pad = tb * n_tiles
    grid = (n_tiles,)

    # Single fused pad on the bf16 copy (no extra full-size HBM round trip).
    x_p = jnp.pad(x_flat.astype(jnp.bfloat16),
                  ((0, b_pad - batch), (0, d_in_pad - input_dim)))
    eps_p = jnp.pad(eps.astype(jnp.float32),
                    ((0, b_pad - batch), (0, z_pad - z_dim)))

    x_spec = pl.BlockSpec((tb, d_in_pad), lambda i: (i, 0))
    eps_spec = pl.BlockSpec((tb, z_pad), lambda i: (i, 0))
    # weights/biases: whole-array blocks, constant index -> fetched once
    w_specs = [pl.BlockSpec(p.shape, lambda i: (0, 0)) for p in packed_params]

    small_spec = pl.BlockSpec((tb, 3 * z_pad), lambda i: (i, 0))
    recon_spec = pl.BlockSpec((tb, d_in_pad), lambda i: (i, 0))

    out_shape = (
        jax.ShapeDtypeStruct((b_pad, 3 * z_pad), jnp.float32),   # [z|mean|logvar]
        jax.ShapeDtypeStruct((b_pad, d_in_pad), jnp.bfloat16),   # recon (flat)
    )

    weight_bytes = sum(int(p.size) * p.dtype.itemsize for p in packed_params)
    act_bytes = (2 * x_p.size + 4 * eps_p.size              # inputs
                 + 2 * b_pad * d_in_pad                      # recon (bf16)
                 + 4 * b_pad * 3 * z_pad)                    # small slab (f32)
    flops = 2 * b_pad * sum(
        p.shape[0] * p.shape[1] for p in packed_params
        if p.ndim == 2 and p.shape[0] > 1
    )
    cost = pl.CostEstimate(
        flops=int(flops),
        transcendentals=int(b_pad * z_pad),
        bytes_accessed=int(weight_bytes + act_bytes),
    )

    small_p, recon_p = pl.pallas_call(
        _vae_kernel,
        out_shape=out_shape,
        grid_spec=pltpu.PrefetchScalarGridSpec(
            num_scalar_prefetch=0,
            grid=grid,
            in_specs=[x_spec, eps_spec] + w_specs,
            out_specs=[small_spec, recon_spec],
        ),
        compiler_params=pltpu.CompilerParams(
            dimension_semantics=("parallel",),
            vmem_limit_bytes=32 << 20,
        ),
        cost_estimate=cost,
    )(x_p, eps_p, *packed_params)

    z = small_p[:batch, :z_dim]
    mean = small_p[:batch, z_pad:z_pad + z_dim]
    log_var = small_p[:batch, 2 * z_pad:2 * z_pad + z_dim]
    recon = recon_p[:batch, :input_dim].astype(jnp.float32).reshape(org_shape)
    return z, recon, mean, log_var


# ----------------------------------------------------------------------------
# Pure-JAX reference (mirrors the torch forward and the kernel's bf16 weights).
# ----------------------------------------------------------------------------
def vae_forward_ref(x, eps, params):
    (ew0, eb0, ew1, eb1, ew2, eb2, mw, mb, vw, vb,
     dw0, db0, dw1, db1, dw2, db2, dw3, db3) = params
    bf16 = jnp.bfloat16

    def lin(h, w, b, relu):
        y = jnp.dot(h.astype(bf16), w.astype(bf16),
                    preferred_element_type=jnp.float32) + b
        return jnp.maximum(y, 0.0) if relu else y

    org_shape = x.shape
    h = x.reshape(org_shape[0], -1).astype(jnp.float32)
    h = lin(h, ew0, eb0, True)
    h = lin(h, ew1, eb1, True)
    h = lin(h, ew2, eb2, True)
    mean = lin(h, mw, mb, False)
    log_var = lin(h, vw, vb, False)
    z = mean + eps * jnp.exp(0.5 * log_var)
    d = lin(z, dw0, db0, True)
    d = lin(d, dw1, db1, True)
    d = lin(d, dw2, db2, True)
    d = lin(d, dw3, db3, True)
    return z, d.reshape(org_shape), mean, log_var


if __name__ == "__main__":
    INPUT_DIM = 1000
    LATENT = (512, 256, 128, 50)
    BATCH = 2

    key = jax.random.PRNGKey(0)
    k_params, k_x, k_eps = jax.random.split(key, 3)

    params = init_vae_params(k_params, INPUT_DIM, LATENT)
    packed = pack_params(params, INPUT_DIM, LATENT)

    x = jax.random.normal(k_x, (BATCH, INPUT_DIM), jnp.float32)
    # torch.randn_like(sigma) -> external deterministic gaussian noise.
    eps = jax.random.normal(k_eps, (BATCH, LATENT[3]), jnp.float32)

    z, recon, mean, log_var = vae_forward(x, eps, packed)
    jax.block_until_ready((z, recon, mean, log_var))

    # sanity check against the pure-JAX reference (same bf16 weight math)
    z_r, recon_r, mean_r, lv_r = vae_forward_ref(x, eps, params)
    for a, b in ((z, z_r), (recon, recon_r), (mean, mean_r), (log_var, lv_r)):
        assert jnp.allclose(a, b, rtol=2e-2, atol=2e-2), "mismatch vs reference"

    assert z.shape == (BATCH, LATENT[3])
    assert recon.shape == x.shape
    assert mean.shape == (BATCH, LATENT[3])
    assert log_var.shape == (BATCH, LATENT[3])

    print("KERNEL_OK")
</pallas_src>

<mosaic_0001>
module attributes {stable_mosaic.version = 11 : i64} {
  func.func @_vae_kernel(%arg0: i32, %arg1: memref<16x1024xbf16, #tpu.memory_space<vmem>>, %arg2: memref<16x128xf32, #tpu.memory_space<vmem>>, %arg3: memref<1024x512xbf16, #tpu.memory_space<vmem>>, %arg4: memref<1x512xf32, #tpu.memory_space<vmem>>, %arg5: memref<512x256xbf16, #tpu.memory_space<vmem>>, %arg6: memref<1x256xf32, #tpu.memory_space<vmem>>, %arg7: memref<256x128xbf16, #tpu.memory_space<vmem>>, %arg8: memref<1x128xf32, #tpu.memory_space<vmem>>, %arg9: memref<128x256xbf16, #tpu.memory_space<vmem>>, %arg10: memref<1x256xf32, #tpu.memory_space<vmem>>, %arg11: memref<128x128xbf16, #tpu.memory_space<vmem>>, %arg12: memref<1x128xf32, #tpu.memory_space<vmem>>, %arg13: memref<128x256xbf16, #tpu.memory_space<vmem>>, %arg14: memref<1x256xf32, #tpu.memory_space<vmem>>, %arg15: memref<256x512xbf16, #tpu.memory_space<vmem>>, %arg16: memref<1x512xf32, #tpu.memory_space<vmem>>, %arg17: memref<512x1024xbf16, #tpu.memory_space<vmem>>, %arg18: memref<1x1024xf32, #tpu.memory_space<vmem>>, %arg19: memref<16x384xf32, #tpu.memory_space<vmem>>, %arg20: memref<16x1024xbf16, #tpu.memory_space<vmem>>) attributes {dimension_semantics = [#tpu.dimension_semantics<parallel>], iteration_bounds = array<i64: 1>, scalar_prefetch = 0 : i64, scratch_operands = 0 : i64, tpu.core_type = #tpu.core_type<tc>, window_params = [{transform_indices = @transform_0, window_bounds = array<i64: 16, 1024>}, {transform_indices = @transform_1, window_bounds = array<i64: 16, 128>}, {pipeline_mode = #tpu.pipeline_mode<synchronous>, transform_indices = @transform_2, window_bounds = array<i64: 1024, 512>}, {pipeline_mode = #tpu.pipeline_mode<synchronous>, transform_indices = @transform_3, window_bounds = array<i64: 1, 512>}, {pipeline_mode = #tpu.pipeline_mode<synchronous>, transform_indices = @transform_4, window_bounds = array<i64: 512, 256>}, {pipeline_mode = #tpu.pipeline_mode<synchronous>, transform_indices = @transform_5, window_bounds = array<i64: 1, 256>}, {pipeline_mode = #tpu.pipeline_mode<synchronous>, transform_indices = @transform_6, window_bounds = array<i64: 256, 128>}, {pipeline_mode = #tpu.pipeline_mode<synchronous>, transform_indices = @transform_7, window_bounds = array<i64: 1, 128>}, {pipeline_mode = #tpu.pipeline_mode<synchronous>, transform_indices = @transform_8, window_bounds = array<i64: 128, 256>}, {pipeline_mode = #tpu.pipeline_mode<synchronous>, transform_indices = @transform_9, window_bounds = array<i64: 1, 256>}, {pipeline_mode = #tpu.pipeline_mode<synchronous>, transform_indices = @transform_10, window_bounds = array<i64: 128, 128>}, {pipeline_mode = #tpu.pipeline_mode<synchronous>, transform_indices = @transform_11, window_bounds = array<i64: 1, 128>}, {pipeline_mode = #tpu.pipeline_mode<synchronous>, transform_indices = @transform_12, window_bounds = array<i64: 128, 256>}, {pipeline_mode = #tpu.pipeline_mode<synchronous>, transform_indices = @transform_13, window_bounds = array<i64: 1, 256>}, {pipeline_mode = #tpu.pipeline_mode<synchronous>, transform_indices = @transform_14, window_bounds = array<i64: 256, 512>}, {pipeline_mode = #tpu.pipeline_mode<synchronous>, transform_indices = @transform_15, window_bounds = array<i64: 1, 512>}, {pipeline_mode = #tpu.pipeline_mode<synchronous>, transform_indices = @transform_16, window_bounds = array<i64: 512, 1024>}, {pipeline_mode = #tpu.pipeline_mode<synchronous>, transform_indices = @transform_17, window_bounds = array<i64: 1, 1024>}, {transform_indices = @transform_18, window_bounds = array<i64: 16, 384>}, {transform_indices = @transform_19, window_bounds = array<i64: 16, 1024>}]} {
    %c0 = arith.constant 0 : index
    %c0_0 = arith.constant 0 : index
    %0 = vector.load %arg1[%c0, %c0_0] : memref<16x1024xbf16, #tpu.memory_space<vmem>>, vector<16x1024xbf16>
    %c0_1 = arith.constant 0 : index
    %c0_2 = arith.constant 0 : index
    %1 = vector.load %arg3[%c0_1, %c0_2] : memref<1024x512xbf16, #tpu.memory_space<vmem>>, vector<1024x512xbf16>
    %cst = arith.constant dense<0.000000e+00> : vector<16x512xf32>
    %2 = tpu.matmul %0, %1, %cst {dimension_numbers = #tpu.dot_dimension_numbers<[1], [0], [0], [1], [0, 0, 1, 1], [], []>} : vector<16x1024xbf16>, vector<1024x512xbf16>, vector<16x512xf32> -> vector<16x512xf32>
    %c0_3 = arith.constant 0 : index
    %c0_4 = arith.constant 0 : index
    %3 = vector.load %arg4[%c0_3, %c0_4] : memref<1x512xf32, #tpu.memory_space<vmem>>, vector<1x512xf32>
    %4 = vector.broadcast %3 : vector<1x512xf32> to vector<16x512xf32>
    %5 = arith.addf %2, %4 : vector<16x512xf32>
    %cst_5 = arith.constant 0.000000e+00 : f32
    %6 = vector.broadcast %cst_5 : f32 to vector<16x512xf32>
    %7 = arith.maximumf %5, %6 : vector<16x512xf32>
    %8 = arith.truncf %7 : vector<16x512xf32> to vector<16x512xbf16>
    %c0_6 = arith.constant 0 : index
    %c0_7 = arith.constant 0 : index
    %9 = vector.load %arg5[%c0_6, %c0_7] : memref<512x256xbf16, #tpu.memory_space<vmem>>, vector<512x256xbf16>
    %cst_8 = arith.constant dense<0.000000e+00> : vector<16x256xf32>
    %10 = tpu.matmul %8, %9, %cst_8 {dimension_numbers = #tpu.dot_dimension_numbers<[1], [0], [0], [1], [0, 0, 1, 1], [], []>} : vector<16x512xbf16>, vector<512x256xbf16>, vector<16x256xf32> -> vector<16x256xf32>
    %c0_9 = arith.constant 0 : index
    %c0_10 = arith.constant 0 : index
    %11 = vector.load %arg6[%c0_9, %c0_10] : memref<1x256xf32, #tpu.memory_space<vmem>>, vector<1x256xf32>
    %12 = vector.broadcast %11 : vector<1x256xf32> to vector<16x256xf32>
    %13 = arith.addf %10, %12 : vector<16x256xf32>
    %cst_11 = arith.constant 0.000000e+00 : f32
    %14 = vector.broadcast %cst_11 : f32 to vector<16x256xf32>
    %15 = arith.maximumf %13, %14 : vector<16x256xf32>
    %16 = arith.truncf %15 : vector<16x256xf32> to vector<16x256xbf16>
    %c0_12 = arith.constant 0 : index
    %c0_13 = arith.constant 0 : index
    %17 = vector.load %arg7[%c0_12, %c0_13] : memref<256x128xbf16, #tpu.memory_space<vmem>>, vector<256x128xbf16>
    %cst_14 = arith.constant dense<0.000000e+00> : vector<16x128xf32>
    %18 = tpu.matmul %16, %17, %cst_14 {dimension_numbers = #tpu.dot_dimension_numbers<[1], [0], [0], [1], [0, 0, 1, 1], [], []>} : vector<16x256xbf16>, vector<256x128xbf16>, vector<16x128xf32> -> vector<16x128xf32>
    %c0_15 = arith.constant 0 : index
    %c0_16 = arith.constant 0 : index
    %19 = vector.load %arg8[%c0_15, %c0_16] : memref<1x128xf32, #tpu.memory_space<vmem>>, vector<1x128xf32>
    %20 = vector.broadcast %19 : vector<1x128xf32> to vector<16x128xf32>
    %21 = arith.addf %18, %20 : vector<16x128xf32>
    %cst_17 = arith.constant 0.000000e+00 : f32
    %22 = vector.broadcast %cst_17 : f32 to vector<16x128xf32>
    %23 = arith.maximumf %21, %22 : vector<16x128xf32>
    %24 = arith.truncf %23 : vector<16x128xf32> to vector<16x128xbf16>
    %c0_18 = arith.constant 0 : index
    %c0_19 = arith.constant 0 : index
    %25 = vector.load %arg9[%c0_18, %c0_19] : memref<128x256xbf16, #tpu.memory_space<vmem>>, vector<128x256xbf16>
    %cst_20 = arith.constant dense<0.000000e+00> : vector<16x256xf32>
    %26 = tpu.matmul %24, %25, %cst_20 {dimension_numbers = #tpu.dot_dimension_numbers<[1], [0], [0], [1], [0, 0, 1, 1], [], []>} : vector<16x128xbf16>, vector<128x256xbf16>, vector<16x256xf32> -> vector<16x256xf32>
    %c0_21 = arith.constant 0 : index
    %c0_22 = arith.constant 0 : index
    %27 = vector.load %arg10[%c0_21, %c0_22] : memref<1x256xf32, #tpu.memory_space<vmem>>, vector<1x256xf32>
    %28 = vector.broadcast %27 : vector<1x256xf32> to vector<16x256xf32>
    %29 = arith.addf %26, %28 : vector<16x256xf32>
    %30 = vector.extract_strided_slice %29 {offsets = [0, 0], sizes = [16, 128], strides = [1, 1]} : vector<16x256xf32> to vector<16x128xf32>
    %31 = vector.extract_strided_slice %29 {offsets = [0, 128], sizes = [16, 128], strides = [1, 1]} : vector<16x256xf32> to vector<16x128xf32>
    %cst_23 = arith.constant 5.000000e-01 : f32
    %32 = vector.broadcast %cst_23 : f32 to vector<16x128xf32>
    %33 = arith.mulf %32, %31 : vector<16x128xf32>
    %34 = math.exp %33 : vector<16x128xf32>
    %c0_24 = arith.constant 0 : index
    %c0_25 = arith.constant 0 : index
    %35 = vector.load %arg2[%c0_24, %c0_25] : memref<16x128xf32, #tpu.memory_space<vmem>>, vector<16x128xf32>
    %36 = arith.mulf %35, %34 : vector<16x128xf32>
    %37 = arith.addf %30, %36 : vector<16x128xf32>
    %38 = arith.truncf %37 : vector<16x128xf32> to vector<16x128xbf16>
    %c0_26 = arith.constant 0 : index
    %c0_27 = arith.constant 0 : index
    %39 = vector.load %arg11[%c0_26, %c0_27] : memref<128x128xbf16, #tpu.memory_space<vmem>>, vector<128x128xbf16>
    %cst_28 = arith.constant dense<0.000000e+00> : vector<16x128xf32>
    %40 = tpu.matmul %38, %39, %cst_28 {dimension_numbers = #tpu.dot_dimension_numbers<[1], [0], [0], [1], [0, 0, 1, 1], [], []>} : vector<16x128xbf16>, vector<128x128xbf16>, vector<16x128xf32> -> vector<16x128xf32>
    %c0_29 = arith.constant 0 : index
    %c0_30 = arith.constant 0 : index
    %41 = vector.load %arg12[%c0_29, %c0_30] : memref<1x128xf32, #tpu.memory_space<vmem>>, vector<1x128xf32>
    %42 = vector.broadcast %41 : vector<1x128xf32> to vector<16x128xf32>
    %43 = arith.addf %40, %42 : vector<16x128xf32>
    %cst_31 = arith.constant 0.000000e+00 : f32
    %44 = vector.broadcast %cst_31 : f32 to vector<16x128xf32>
    %45 = arith.maximumf %43, %44 : vector<16x128xf32>
    %46 = arith.truncf %45 : vector<16x128xf32> to vector<16x128xbf16>
    %c0_32 = arith.constant 0 : index
    %c0_33 = arith.constant 0 : index
    %47 = vector.load %arg13[%c0_32, %c0_33] : memref<128x256xbf16, #tpu.memory_space<vmem>>, vector<128x256xbf16>
    %cst_34 = arith.constant dense<0.000000e+00> : vector<16x256xf32>
    %48 = tpu.matmul %46, %47, %cst_34 {dimension_numbers = #tpu.dot_dimension_numbers<[1], [0], [0], [1], [0, 0, 1, 1], [], []>} : vector<16x128xbf16>, vector<128x256xbf16>, vector<16x256xf32> -> vector<16x256xf32>
    %c0_35 = arith.constant 0 : index
    %c0_36 = arith.constant 0 : index
    %49 = vector.load %arg14[%c0_35, %c0_36] : memref<1x256xf32, #tpu.memory_space<vmem>>, vector<1x256xf32>
    %50 = vector.broadcast %49 : vector<1x256xf32> to vector<16x256xf32>
    %51 = arith.addf %48, %50 : vector<16x256xf32>
    %cst_37 = arith.constant 0.000000e+00 : f32
    %52 = vector.broadcast %cst_37 : f32 to vector<16x256xf32>
    %53 = arith.maximumf %51, %52 : vector<16x256xf32>
    %54 = arith.truncf %53 : vector<16x256xf32> to vector<16x256xbf16>
    %c0_38 = arith.constant 0 : index
    %c0_39 = arith.constant 0 : index
    %55 = vector.load %arg15[%c0_38, %c0_39] : memref<256x512xbf16, #tpu.memory_space<vmem>>, vector<256x512xbf16>
    %cst_40 = arith.constant dense<0.000000e+00> : vector<16x512xf32>
    %56 = tpu.matmul %54, %55, %cst_40 {dimension_numbers = #tpu.dot_dimension_numbers<[1], [0], [0], [1], [0, 0, 1, 1], [], []>} : vector<16x256xbf16>, vector<256x512xbf16>, vector<16x512xf32> -> vector<16x512xf32>
    %c0_41 = arith.constant 0 : index
    %c0_42 = arith.constant 0 : index
    %57 = vector.load %arg16[%c0_41, %c0_42] : memref<1x512xf32, #tpu.memory_space<vmem>>, vector<1x512xf32>
    %58 = vector.broadcast %57 : vector<1x512xf32> to vector<16x512xf32>
    %59 = arith.addf %56, %58 : vector<16x512xf32>
    %cst_43 = arith.constant 0.000000e+00 : f32
    %60 = vector.broadcast %cst_43 : f32 to vector<16x512xf32>
    %61 = arith.maximumf %59, %60 : vector<16x512xf32>
    %62 = arith.truncf %61 : vector<16x512xf32> to vector<16x512xbf16>
    %c0_44 = arith.constant 0 : index
    %c0_45 = arith.constant 0 : index
    %63 = vector.load %arg17[%c0_44, %c0_45] : memref<512x1024xbf16, #tpu.memory_space<vmem>>, vector<512x1024xbf16>
    %cst_46 = arith.constant dense<0.000000e+00> : vector<16x1024xf32>
    %64 = tpu.matmul %62, %63, %cst_46 {dimension_numbers = #tpu.dot_dimension_numbers<[1], [0], [0], [1], [0, 0, 1, 1], [], []>} : vector<16x512xbf16>, vector<512x1024xbf16>, vector<16x1024xf32> -> vector<16x1024xf32>
    %c0_47 = arith.constant 0 : index
    %c0_48 = arith.constant 0 : index
    %65 = vector.load %arg18[%c0_47, %c0_48] : memref<1x1024xf32, #tpu.memory_space<vmem>>, vector<1x1024xf32>
    %66 = vector.broadcast %65 : vector<1x1024xf32> to vector<16x1024xf32>
    %67 = arith.addf %64, %66 : vector<16x1024xf32>
    %cst_49 = arith.constant 0.000000e+00 : f32
    %68 = vector.broadcast %cst_49 : f32 to vector<16x1024xf32>
    %69 = arith.maximumf %67, %68 : vector<16x1024xf32>
    %70 = tpu.concatenate %37, %30, %31 in 1 : vector<16x128xf32>, vector<16x128xf32>, vector<16x128xf32> -> vector<16x384xf32>
    %c0_50 = arith.constant 0 : index
    %c0_51 = arith.constant 0 : index
    %71 = vector.load %arg19[%c0_50, %c0_51] : memref<16x384xf32, #tpu.memory_space<vmem>>, vector<16x384xf32>
    tpu.vector_store %arg19[%c0_50, %c0_51], %70 {strides = array<i32>} : memref<16x384xf32, #tpu.memory_space<vmem>>, vector<16x384xf32>,
    %72 = arith.truncf %69 : vector<16x1024xf32> to vector<16x1024xbf16>
    %c0_52 = arith.constant 0 : index
    %c0_53 = arith.constant 0 : index
    %73 = vector.load %arg20[%c0_52, %c0_53] : memref<16x1024xbf16, #tpu.memory_space<vmem>>, vector<16x1024xbf16>
    tpu.vector_store %arg20[%c0_52, %c0_53], %72 {strides = array<i32>} : memref<16x1024xbf16, #tpu.memory_space<vmem>>, vector<16x1024xbf16>,
    return
  }
  func.func @transform_0(%arg0: i32) -> (i32, i32) {
    %c0_i32 = arith.constant 0 : i32
    %c0_i32_0 = arith.constant 0 : i32
    return %arg0, %c0_i32 : i32, i32
  }
  func.func @transform_1(%arg0: i32) -> (i32, i32) {
    %c0_i32 = arith.constant 0 : i32
    %c0_i32_0 = arith.constant 0 : i32
    return %arg0, %c0_i32 : i32, i32
  }
  func.func @transform_2(%arg0: i32) -> (i32, i32) {
    %c0_i32 = arith.constant 0 : i32
    %c0_i32_0 = arith.constant 0 : i32
    %c0_i32_1 = arith.constant 0 : i32
    return %c0_i32, %c0_i32_0 : i32, i32
  }
  func.func @transform_3(%arg0: i32) -> (i32, i32) {
    %c0_i32 = arith.constant 0 : i32
    %c0_i32_0 = arith.constant 0 : i32
    %c0_i32_1 = arith.constant 0 : i32
    return %c0_i32, %c0_i32_0 : i32, i32
  }
  func.func @transform_4(%arg0: i32) -> (i32, i32) {
    %c0_i32 = arith.constant 0 : i32
    %c0_i32_0 = arith.constant 0 : i32
    %c0_i32_1 = arith.constant 0 : i32
    return %c0_i32, %c0_i32_0 : i32, i32
  }
  func.func @transform_5(%arg0: i32) -> (i32, i32) {
    %c0_i32 = arith.constant 0 : i32
    %c0_i32_0 = arith.constant 0 : i32
    %c0_i32_1 = arith.constant 0 : i32
    return %c0_i32, %c0_i32_0 : i32, i32
  }
  func.func @transform_6(%arg0: i32) -> (i32, i32) {
    %c0_i32 = arith.constant 0 : i32
    %c0_i32_0 = arith.constant 0 : i32
    %c0_i32_1 = arith.constant 0 : i32
    return %c0_i32, %c0_i32_0 : i32, i32
  }
  func.func @transform_7(%arg0: i32) -> (i32, i32) {
    %c0_i32 = arith.constant 0 : i32
    %c0_i32_0 = arith.constant 0 : i32
    %c0_i32_1 = arith.constant 0 : i32
    return %c0_i32, %c0_i32_0 : i32, i32
  }
  func.func @transform_8(%arg0: i32) -> (i32, i32) {
    %c0_i32 = arith.constant 0 : i32
    %c0_i32_0 = arith.constant 0 : i32
    %c0_i32_1 = arith.constant 0 : i32
    return %c0_i32, %c0_i32_0 : i32, i32
  }
  func.func @transform_9(%arg0: i32) -> (i32, i32) {
    %c0_i32 = arith.constant 0 : i32
    %c0_i32_0 = arith.constant 0 : i32
    %c0_i32_1 = arith.constant 0 : i32
    return %c0_i32, %c0_i32_0 : i32, i32
  }
  func.func @transform_10(%arg0: i32) -> (i32, i32) {
    %c0_i32 = arith.constant 0 : i32
    %c0_i32_0 = arith.constant 0 : i32
    %c0_i32_1 = arith.constant 0 : i32
    return %c0_i32, %c0_i32_0 : i32, i32
  }
  func.func @transform_11(%arg0: i32) -> (i32, i32) {
    %c0_i32 = arith.constant 0 : i32
    %c0_i32_0 = arith.constant 0 : i32
    %c0_i32_1 = arith.constant 0 : i32
    return %c0_i32, %c0_i32_0 : i32, i32
  }
  func.func @transform_12(%arg0: i32) -> (i32, i32) {
    %c0_i32 = arith.constant 0 : i32
    %c0_i32_0 = arith.constant 0 : i32
    %c0_i32_1 = arith.constant 0 : i32
    return %c0_i32, %c0_i32_0 : i32, i32
  }
  func.func @transform_13(%arg0: i32) -> (i32, i32) {
    %c0_i32 = arith.constant 0 : i32
    %c0_i32_0 = arith.constant 0 : i32
    %c0_i32_1 = arith.constant 0 : i32
    return %c0_i32, %c0_i32_0 : i32, i32
  }
  func.func @transform_14(%arg0: i32) -> (i32, i32) {
    %c0_i32 = arith.constant 0 : i32
    %c0_i32_0 = arith.constant 0 : i32
    %c0_i32_1 = arith.constant 0 : i32
    return %c0_i32, %c0_i32_0 : i32, i32
  }
  func.func @transform_15(%arg0: i32) -> (i32, i32) {
    %c0_i32 = arith.constant 0 : i32
    %c0_i32_0 = arith.constant 0 : i32
    %c0_i32_1 = arith.constant 0 : i32
    return %c0_i32, %c0_i32_0 : i32, i32
  }
  func.func @transform_16(%arg0: i32) -> (i32, i32) {
    %c0_i32 = arith.constant 0 : i32
    %c0_i32_0 = arith.constant 0 : i32
    %c0_i32_1 = arith.constant 0 : i32
    return %c0_i32, %c0_i32_0 : i32, i32
  }
  func.func @transform_17(%arg0: i32) -> (i32, i32) {
    %c0_i32 = arith.constant 0 : i32
    %c0_i32_0 = arith.constant 0 : i32
    %c0_i32_1 = arith.constant 0 : i32
    return %c0_i32, %c0_i32_0 : i32, i32
  }
  func.func @transform_18(%arg0: i32) -> (i32, i32) {
    %c0_i32 = arith.constant 0 : i32
    %c0_i32_0 = arith.constant 0 : i32
    return %arg0, %c0_i32 : i32, i32
  }
  func.func @transform_19(%arg0: i32) -> (i32, i32) {
    %c0_i32 = arith.constant 0 : i32
    %c0_i32_0 = arith.constant 0 : i32
    return %arg0, %c0_i32 : i32, i32
  }
}

</mosaic_0001>

<bundles_post_ra>
// kernel: vae_forward.1
= control target key start
LH: loop header
LB: loop body
LE: loop exit
PB: predicated region body
PF: predicated region fallthrough
CT: control target
= control target key end

     0   :  { %s7958_s0 = inlined_call_operand.vmem [shape: bf16[16,1024], index: 0, kind: input, shape index: {}]   ;;  %s7959_s1 = inlined_call_operand.vmem [shape: f32[16,128], index: 1, kind: input, shape index: {}]   ;;  %s7960_s2 = inlined_call_operand.hbm [shape: bf16[1024,512], index: 2, kind: input, shape index: {}]   ;;  %s7961_s3 = inlined_call_operand.hbm [shape: f32[1,512], index: 3, kind: input, shape index: {}]   ;;  %s7962_s4 = inlined_call_operand.hbm [shape: bf16[512,256], index: 4, kind: input, shape index: {}]   ;;  %s7963_s5 = inlined_call_operand.vmem [shape: f32[1,256], index: 5, kind: input, shape index: {}]   ;;  %s7964_s6 = inlined_call_operand.vmem [shape: bf16[256,128], index: 6, kind: input, shape index: {}]   ;;  %s7965_s7 = inlined_call_operand.hbm [shape: f32[1,128], index: 7, kind: input, shape index: {}]   ;;  %s7966_s8 = inlined_call_operand.hbm [shape: bf16[128,256], index: 8, kind: input, shape index: {}]   ;;  %s7967_s9 = inlined_call_operand.vmem [shape: f32[1,256], index: 9, kind: input, shape index: {}]   ;;  %s7968_s10 = inlined_call_operand.hbm [shape: bf16[128,128], index: 10, kind: input, shape index: {}]   ;;  %s7969_s11 = inlined_call_operand.vmem [shape: f32[1,128], index: 11, kind: input, shape index: {}]   ;;  %s7970_s12 = inlined_call_operand.hbm [shape: bf16[128,256], index: 12, kind: input, shape index: {}]   ;;  %s7971_s13 = inlined_call_operand.vmem [shape: f32[1,256], index: 13, kind: input, shape index: {}]   ;;  %s7972_s14 = inlined_call_operand.hbm [shape: bf16[256,512], index: 14, kind: input, shape index: {}]   ;;  %s7973_s15 = inlined_call_operand.vmem [shape: f32[1,512], index: 15, kind: input, shape index: {}]   ;;  %s7974_s16 = inlined_call_operand.hbm [shape: bf16[512,1024], index: 16, kind: input, shape index: {}]   ;;  %s7975_s17 = inlined_call_operand.vmem [shape: f32[1,1024], index: 17, kind: input, shape index: {}]   ;;  %s7976_s18 = inlined_call_operand.vmem [shape: f32[16,384], index: 18, kind: output, shape index: {0}]   ;;  %s7977_s19 = inlined_call_operand.vmem [shape: bf16[16,1024], index: 19, kind: output, shape index: {1}]  }
   0x1   :  { %7982 = sst [smem:[#allocation21_spill]] %s7958_s0 }
   0x2   :  { %7983 = sst [smem:[#allocation22_spill]] %s7959_s1 }
   0x3   :  { %7984 = sst [smem:[#allocation23_spill]] %s7960_s2 }
   0x4   :  { %7985 = sst [smem:[#allocation24_spill]] %s7961_s3 }
   0x5   :  { %25 = vsyncpa [#allocation3], 0 }
   0x6   :  { %26 = vsyncpa [#allocation5], 0 }
   0x7   :  { %27 = vsyncpa [#allocation8], 0 }
   0x8   :  { %28 = vsyncpa [#allocation11], 0 }
   0x9   :  { %29 = vsyncpa [#allocation14], 0  ;;  %s7487_s0 = smov [#allocation4]   ;;  %s7488_s20 = smov [#allocation7]  }
   0xa   :  { %s52_s30 = sshll.u32 %s7487_s0, 4  ;;  %s78_s21 = sshll.u32 %s7488_s20, 4  ;;  %s53_s30 = int_to_ptr.vmem [resolvable:$true] %s52_s30  ;;  %s79_s21 = int_to_ptr.vmem [resolvable:$true] %s78_s21 }
   0xb   :  { %s7986_s2 = sld [smem:[#allocation24_spill]] }
  0x11   :  { %s7279_s23 = scalar_lea.hbm %s7986_s2, 64 }
  0x12   :  { %p7280_p0 = scmp.ne.s32.totalorder %s7986_s2, %s7279_s23  ;;  %p7283_p1 = scmp.lt.u32.totalorder %s7279_s23, %s7986_s2 }
  0x14   :  { %p7285_p2 = pnand %p7283_p1, %p7280_p0 }
  0x16   :  { %7288 = shalt.err (!%p7285_p2)
}
  0x17   :  { %s7289_s27 = scalar_lea.vmem %s53_s30, 64  ;;  %p7294_p4 = scmp.lt.s32.totalorder %s53_s30, %s53_s30 }
  0x18   :  { %p7290_p3 = scmp.ne.s32.totalorder %s53_s30, %s7289_s27  ;;  %p7295_p5 = scmp.lt.s32.totalorder %s7289_s27, %s7289_s27 }
  0x1a   :  { %p7296_p6 = por %p7295_p5, %p7294_p4 }
  0x1c   :  { %p7297_p7 = pnand %p7296_p6, %p7290_p3 }
  0x1e   :  { %7300 = shalt.err (!%p7297_p7)
}
  0x1f   :  { %55 = dma.hbm_to_vmem [thread:$0]  %s7986_s2, 64, %s53_s30, [#allocation5]  }
  0x20   :  { %s7301_s1 = scalar_lea.hbm %s7965_s7, 16 }
  0x21   :  { %p7302_p8 = scmp.ne.s32.totalorder %s7965_s7, %s7301_s1  ;;  %p7305_p9 = scmp.lt.u32.totalorder %s7301_s1, %s7965_s7 }
  0x23   :  { %p7307_p10 = pnand %p7305_p9, %p7302_p8 }
  0x25   :  { %7310 = shalt.err (!%p7307_p10)
}
  0x26   :  { %s7311_s3 = scalar_lea.vmem %s79_s21, 16  ;;  %s7315_s26 = scalar_lea.vmem %s79_s21, 32 }
  0x27   :  { %p7312_p11 = scmp.ne.s32.totalorder %s79_s21, %s7311_s3  ;;  %p7316_p12 = scmp.lt.s32.totalorder %s79_s21, %s79_s21 }
  0x28   :  { %p7317_p13 = scmp.lt.s32.totalorder %s7315_s26, %s7311_s3 }
  0x2a   :  { %p7318_p0 = por %p7317_p13, %p7316_p12 }
  0x2c   :  { %p7319_p1 = pnand %p7318_p0, %p7312_p11 }
  0x2e   :  { %7322 = shalt.err (!%p7319_p1)
}
  0x2f   :  { %81 = dma.hbm_to_vmem [thread:$0]  %s7965_s7, 16, %s79_s21, [#allocation8]  }
  0x30   :  { %s7489_s27 = smov [#allocation10]   ;;  %s7323_s20 = scalar_lea.hbm %s7968_s10, 1024 }
  0x31   :  { %s101_s28 = sshll.u32 %s7489_s27, 4  ;;  %p7324_p2 = scmp.ne.s32.totalorder %s7968_s10, %s7323_s20  ;;  %s102_s28 = int_to_ptr.vmem [resolvable:$true] %s101_s28 }
  0x32   :  { %p7327_p3 = scmp.lt.u32.totalorder %s7323_s20, %s7968_s10 }
  0x34   :  { %p7329_p4 = pnand %p7327_p3, %p7324_p2 }
  0x36   :  { %7332 = shalt.err (!%p7329_p4)
}
  0x37   :  { %s7333_s25 = scalar_lea.vmem %s102_s28, 1024  ;;  %p7338_p6 = scmp.lt.s32.totalorder %s102_s28, %s102_s28 }
  0x38   :  { %p7334_p5 = scmp.ne.s32.totalorder %s102_s28, %s7333_s25  ;;  %p7339_p7 = scmp.lt.s32.totalorder %s7333_s25, %s7333_s25 }
  0x3a   :  { %p7340_p8 = por %p7339_p7, %p7338_p6 }
  0x3c   :  { %p7341_p9 = pnand %p7340_p8, %p7334_p5 }
  0x3e   :  { %7344 = shalt.err (!%p7341_p9)
}
  0x3f   :  { %s7490_s7 = smov 64   ;;  %s7491_s21 = smov 4  }
  0x40   :  { %107 = dma.hbm_to_vmem [thread:$0]  %s7968_s10, 1024, %s102_s28, [#allocation11], %s7490_s7, %s7490_s7, %s7491_s21  }
  0x41   :  { %s7492_s30 = smov [#allocation13]   ;;  %s7493_s27 = smov [#allocation2]  }
  0x42   :  { %s129_s2 = sshll.u32 %s7492_s30, 4  ;;  %s39_s29 = sshll.u32 %s7493_s27, 4  ;;  %s130_s2 = int_to_ptr.vmem [resolvable:$true] %s129_s2  ;;  %s40_s29 = int_to_ptr.vmem [resolvable:$true] %s39_s29 }
  0x43   :  { %s7345_s1 = scalar_lea.hbm %s7972_s14, 8192 }
  0x44   :  { %p7346_p10 = scmp.ne.s32.totalorder %s7972_s14, %s7345_s1  ;;  %p7349_p11 = scmp.lt.u32.totalorder %s7345_s1, %s7972_s14 }
  0x46   :  { %p7351_p12 = pnand %p7349_p11, %p7346_p10 }
  0x48   :  { %7354 = shalt.err (!%p7351_p12)
}
  0x49   :  { %s7355_s10 = scalar_lea.vmem %s130_s2, 8192  ;;  %p7360_p0 = scmp.lt.s32.totalorder %s130_s2, %s130_s2 }
  0x4a   :  { %p7356_p13 = scmp.ne.s32.totalorder %s130_s2, %s7355_s10  ;;  %p7361_p1 = scmp.lt.s32.totalorder %s7355_s10, %s7355_s10 }
  0x4c   :  { %p7362_p2 = por %p7361_p1, %p7360_p0 }
  0x4e   :  { %p7363_p3 = pnand %p7362_p2, %p7356_p13 }
  0x50   :  { %7366 = shalt.err (!%p7363_p3)
}
  0x51   :  { %s7494_s28 = smov 256   ;;  %s7495_s7 = smov 16  }
  0x52   :  { %135 = dma.hbm_to_vmem [thread:$0]  %s7972_s14, 8192, %s130_s2, [#allocation14], %s7494_s28, %s7494_s28, %s7495_s7  }
  0x53   :  { %s7987_s27 = sld [smem:[#allocation23_spill]] }
  0x59   :  { %s7367_s0 = scalar_lea.hbm %s7987_s27, 32768 }
  0x5a   :  { %p7368_p4 = scmp.ne.s32.totalorder %s7987_s27, %s7367_s0  ;;  %p7371_p5 = scmp.lt.u32.totalorder %s7367_s0, %s7987_s27 }
  0x5c   :  { %p7373_p6 = pnand %p7371_p5, %p7368_p4 }
  0x5e   :  { %7376 = shalt.err (!%p7373_p6)
}
  0x5f   :  { %s7377_s23 = scalar_lea.vmem %s40_s29, 32768  ;;  %p7382_p8 = scmp.lt.s32.totalorder %s40_s29, %s40_s29 }
  0x60   :  { %p7378_p7 = scmp.ne.s32.totalorder %s40_s29, %s7377_s23  ;;  %p7383_p9 = scmp.lt.s32.totalorder %s7377_s23, %s7377_s23 }
  0x62   :  { %p7384_p10 = por %p7383_p9, %p7382_p8 }
  0x64   :  { %p7385_p11 = pnand %p7384_p10, %p7378_p7 }
  0x66   :  { %7388 = shalt.err (!%p7385_p11)
}
  0x67   :  { %45 = dma.hbm_to_vmem [thread:$0]  %s7987_s27, 32768, %s40_s29, [#allocation3], %s7494_s28, %s7494_s28, %s7495_s7  }
  0x68   :  { %s7496_s25 = smov [#allocation6]   ;;  %s7389_s26 = scalar_lea.hbm %s7962_s4, 8192 }
  0x69   :  { %s61_s10 = sshll.u32 %s7496_s25, 4  ;;  %p7390_p12 = scmp.ne.s32.totalorder %s7962_s4, %s7389_s26  ;;  %s62_s10 = int_to_ptr.vmem [resolvable:$true] %s61_s10 }
  0x6a   :  { %p7393_p13 = scmp.lt.u32.totalorder %s7389_s26, %s7962_s4 }
  0x6c   :  { %p7395_p0 = pnand %p7393_p13, %p7390_p12 }
  0x6e   :  { %7398 = shalt.err (!%p7395_p0)
}
  0x6f   :  { %s7399_s22 = scalar_lea.vmem %s62_s10, 8192  ;;  %p7404_p2 = scmp.lt.s32.totalorder %s62_s10, %s62_s10 }
  0x70   :  { %p7400_p1 = scmp.ne.s32.totalorder %s62_s10, %s7399_s22  ;;  %p7405_p3 = scmp.lt.s32.totalorder %s7399_s22, %s7399_s22 }
  0x72   :  { %p7406_p4 = por %p7405_p3, %p7404_p2 }
  0x74   :  { %p7407_p5 = pnand %p7406_p4, %p7400_p1 }
  0x76   :  { %7410 = shalt.err (!%p7407_p5)
}
  0x77   :  { %s7497_s29 = smov 128   ;;  %s7498_s28 = smov 8  }
  0x78   :  { %67 = dma.hbm_to_vmem [thread:$0]  %s7962_s4, 8192, %s62_s10, [#allocation5], %s7497_s29, %s7497_s29, %s7498_s28  }
  0x79   :  { %s7499_s24 = smov [#allocation9]   ;;  %s7500_s14 = smov [#allocation12]  }
  0x7a   :  { %s87_s23 = sshll.u32 %s7499_s24, 4  ;;  %s115_s2 = sshll.u32 %s7500_s14, 4  ;;  %s88_s23 = int_to_ptr.vmem [resolvable:$true] %s87_s23  ;;  %s7682_s2 = int_to_ptr.vmem [resolvable:$true] %s115_s2 }
  0x7b   :  { %s7411_s3 = scalar_lea.hbm %s7966_s8, 2048 }
  0x7c   :  { %p7412_p6 = scmp.ne.s32.totalorder %s7966_s8, %s7411_s3  ;;  %p7415_p7 = scmp.lt.u32.totalorder %s7411_s3, %s7966_s8 }
  0x7e   :  { %p7417_p8 = pnand %p7415_p7, %p7412_p6 }
  0x80   :  { %7420 = shalt.err (!%p7417_p8)
}
  0x81   :  { %s7421_s4 = scalar_lea.vmem %s88_s23, 2048  ;;  %p7426_p10 = scmp.lt.s32.totalorder %s88_s23, %s88_s23 }
  0x82   :  { %p7422_p9 = scmp.ne.s32.totalorder %s88_s23, %s7421_s4  ;;  %p7427_p11 = scmp.lt.s32.totalorder %s7421_s4, %s7421_s4 }
  0x84   :  { %p7428_p12 = por %p7427_p11, %p7426_p10 }
  0x86   :  { %p7429_p13 = pnand %p7428_p12, %p7422_p9 }
  0x88   :  { %7432 = shalt.err (!%p7429_p13)
}
  0x89   :  { %93 = dma.hbm_to_vmem [thread:$0]  %s7966_s8, 2048, %s88_s23, [#allocation8], %s7497_s29, %s7497_s29, %s7498_s28  }
  0x8a   :  { %s7433_s27 = scalar_lea.hbm %s7970_s12, 2048 }
  0x8b   :  { %p7434_p0 = scmp.ne.s32.totalorder %s7970_s12, %s7433_s27  ;;  %p7437_p1 = scmp.lt.u32.totalorder %s7433_s27, %s7970_s12 }
  0x8d   :  { %p7439_p2 = pnand %p7437_p1, %p7434_p0 }
  0x8f   :  { %7442 = shalt.err (!%p7439_p2)
}
  0x90   :  { %s7443_s3 = scalar_lea.vmem %s7682_s2, 2048  ;;  %p7448_p4 = scmp.lt.s32.totalorder %s7682_s2, %s7682_s2 }
  0x91   :  { %p7444_p3 = scmp.ne.s32.totalorder %s7682_s2, %s7443_s3  ;;  %p7449_p5 = scmp.lt.s32.totalorder %s7443_s3, %s7443_s3 }
  0x93   :  { %p7450_p6 = por %p7449_p5, %p7448_p4 }
  0x95   :  { %p7451_p7 = pnand %p7450_p6, %p7444_p3 }
  0x97   :  { %7454 = shalt.err (!%p7451_p7)
}
  0x98   :  { %121 = dma.hbm_to_vmem [thread:$0]  %s7970_s12, 2048, %s7682_s2, [#allocation11], %s7497_s29, %s7497_s29, %s7498_s28  }
  0x99   :  { %s7501_s26 = smov [#allocation15]   ;;  %s7455_s4 = scalar_lea.hbm %s7974_s16, 32768 }
  0x9a   :  { %s143_s30 = sshll.u32 %s7501_s26, 4  ;;  %p7456_p8 = scmp.ne.s32.totalorder %s7974_s16, %s7455_s4  ;;  %s144_s30 = int_to_ptr.vmem [resolvable:$true] %s143_s30 }
  0x9b   :  { %p7459_p9 = scmp.lt.u32.totalorder %s7455_s4, %s7974_s16 }
  0x9d   :  { %p7461_p10 = pnand %p7459_p9, %p7456_p8 }
  0x9f   :  { %7464 = shalt.err (!%p7461_p10)
}
  0xa0   :  { %s7465_s27 = scalar_lea.vmem %s144_s30, 32768  ;;  %p7470_p12 = scmp.lt.s32.totalorder %s144_s30, %s144_s30 }
  0xa1   :  { %p7466_p11 = scmp.ne.s32.totalorder %s144_s30, %s7465_s27  ;;  %p7471_p13 = scmp.lt.s32.totalorder %s7465_s27, %s7465_s27 }
  0xa3   :  { %p7472_p0 = por %p7471_p13, %p7470_p12 }
  0xa5   :  { %p7473_p1 = pnand %p7472_p0, %p7466_p11 }
  0xa7   :  { %7476 = shalt.err (!%p7473_p1)
}
  0xa8   :  { %s7502_s12 = smov 512   ;;  %s7503_s29 = smov 32  }
  0xa9   :  { %149 = dma.hbm_to_vmem [thread:$0]  %s7974_s16, 32768, %s144_s30, [#allocation14], %s7502_s12, %s7502_s12, %s7503_s29  }
  0xaa   :  { %7477 = dma.done.wait [#allocation3], 32768  }
  0xab   :  { %7478 = vsyncadd [#allocation3], 4294934528 }
  0xac   :  { %7479 = dma.done.wait [#allocation5], 8256  }
  0xad   :  { %7480 = vsyncadd [#allocation5], 4294959040 }
  0xae   :  { %7481 = dma.done.wait [#allocation8], 2064  }
  0xaf   :  { %7482 = vsyncadd [#allocation8], 4294965232 }
  0xb0   :  { %7483 = dma.done.wait [#allocation11], 3072  }
  0xb1   :  { %7484 = vsyncadd [#allocation11], 4294964224 }
  0xb2   :  { %7485 = dma.done.wait [#allocation14], 40960  }
  0xb3   :  { %7486 = vsyncadd [#allocation14], 4294926336  ;;  %v6627_v0 = vld [vmem:[#allocation2 + $0x4] ss:$16 sps:$4 sm:$0xff]   ;;  %v6629_v1 = vld [vmem:[#allocation2 + $0xc] ss:$16 sps:$4 sm:$0xff]  }
  0xb4   :  { %1786 = vmatprep.subr.bf16.mxu0 %v6627_v0  ;;  %v6631_v2 = vld [vmem:[#allocation2] ss:$16 sps:$4 sm:$0xff]   ;;  %v6632_v3 = vld [vmem:[#allocation2 + $0x8] ss:$16 sps:$4 sm:$0xff]   ;;  %1958 = vmatprep.subr.bf16.mxu1 %v6629_v1  ;;  %v6633_v4 = vld [vmem:[#allocation2 + $0x24] ss:$16 sps:$4 sm:$0xff]  }
  0xb5   :  { %1787 = vmatpush1.bf16.msra.mxu0 %v6631_v2  ;;  %1959 = vmatpush1.bf16.msra.mxu1 %v6632_v3  ;;  %v6635_v5 = vld [vmem:[#allocation2 + $0x2c] ss:$16 sps:$4 sm:$0xff]   ;;  %v6637_v6 = vld [vmem:[#allocation2 + $0x20] ss:$16 sps:$4 sm:$0xff]   ;;  %v6638_v7 = vld [vmem:[#allocation2 + $0x28] ss:$16 sps:$4 sm:$0xff]  }
  0xb6   :  { %1788 = vmatprep.subr.bf16.mxu0 %v6633_v4  ;;  %1960 = vmatprep.subr.bf16.mxu1 %v6635_v5  ;;  %v6639_v8 = vld [vmem:[#allocation2 + $0x44] ss:$16 sps:$4 sm:$0xff]   ;;  %v6641_v9 = vld [vmem:[#allocation2 + $0x4c] ss:$16 sps:$4 sm:$0xff]   ;;  %v6643_v10 = vld [vmem:[#allocation2 + $0x40] ss:$16 sps:$4 sm:$0xff]  }
  0xb7   :  { %v6644_v11 = vld [vmem:[#allocation2 + $0x48] ss:$16 sps:$4 sm:$0xff]   ;;  %v6645_v12 = vld [vmem:[#allocation2 + $0x64] ss:$16 sps:$4 sm:$0xff]   ;;  %v6647_v13 = vld [vmem:[#allocation2 + $0x6c] ss:$16 sps:$4 sm:$0xff]  }
  0xb8   :  { %v6649_v14 = vld [vmem:[#allocation2 + $0x60] ss:$16 sps:$4 sm:$0xff]   ;;  %v6650_v15 = vld [vmem:[#allocation2 + $0x68] ss:$16 sps:$4 sm:$0xff]   ;;  %v6651_v16 = vld [vmem:[#allocation2 + $0x84] ss:$16 sps:$4 sm:$0xff]  }
  0xb9   :  { %1789 = vmatpush1.bf16.msra.mxu0 %v6637_v6  ;;  %1961 = vmatpush1.bf16.msra.mxu1 %v6638_v7  ;;  %v6653_v17 = vld [vmem:[#allocation2 + $0x8c] ss:$16 sps:$4 sm:$0xff]   ;;  %v6655_v18 = vld [vmem:[#allocation2 + $0x80] ss:$16 sps:$4 sm:$0xff]   ;;  %v6656_v19 = vld [vmem:[#allocation2 + $0x88] ss:$16 sps:$4 sm:$0xff]  }
  0xba   :  { %1790 = vmatprep.subr.bf16.mxu0 %v6639_v8  ;;  %1962 = vmatprep.subr.bf16.mxu1 %v6641_v9  ;;  %v6657_v20 = vld [vmem:[#allocation2 + $0xa4] ss:$16 sps:$4 sm:$0xff]   ;;  %v6659_v21 = vld [vmem:[#allocation2 + $0xac] ss:$16 sps:$4 sm:$0xff]   ;;  %v6661_v22 = vld [vmem:[#allocation2 + $0xa0] ss:$16 sps:$4 sm:$0xff]  }
  0xbb   :  { %v6662_v23 = vld [vmem:[#allocation2 + $0xa8] ss:$16 sps:$4 sm:$0xff]   ;;  %v6663_v24 = vld [vmem:[#allocation2 + $0xc4] ss:$16 sps:$4 sm:$0xff]   ;;  %v6665_v25 = vld [vmem:[#allocation2 + $0xcc] ss:$16 sps:$4 sm:$0xff]  }
  0xbc   :  { %v6667_v26 = vld [vmem:[#allocation2 + $0xc0] ss:$16 sps:$4 sm:$0xff]   ;;  %v6668_v27 = vld [vmem:[#allocation2 + $0xc8] ss:$16 sps:$4 sm:$0xff]   ;;  %v6669_v28 = vld [vmem:[#allocation2 + $0xe4] ss:$16 sps:$4 sm:$0xff]  }
  0xbd   :  { %1791 = vmatpush1.bf16.msra.mxu0 %v6643_v10  ;;  %1963 = vmatpush1.bf16.msra.mxu1 %v6644_v11  ;;  %v6671_v29 = vld [vmem:[#allocation2 + $0xec] ss:$16 sps:$4 sm:$0xff]   ;;  %v6673_v30 = vld [vmem:[#allocation2 + $0xe0] ss:$16 sps:$4 sm:$0xff]   ;;  %v6674_v31 = vld [vmem:[#allocation2 + $0xe8] ss:$16 sps:$4 sm:$0xff]  }
  0xbe   :  { %1792 = vmatprep.subr.bf16.mxu0 %v6645_v12  ;;  %1964 = vmatprep.subr.bf16.mxu1 %v6647_v13  ;;  %v6675_v32 = vld [vmem:[#allocation2 + $0x104] ss:$16 sps:$4 sm:$0xff]   ;;  %v6677_v33 = vld [vmem:[#allocation2 + $0x10c] ss:$16 sps:$4 sm:$0xff]   ;;  %v6679_v34 = vld [vmem:[#allocation2 + $0x100] ss:$16 sps:$4 sm:$0xff]  }
  0xbf   :  { %v6680_v35 = vld [vmem:[#allocation2 + $0x108] ss:$16 sps:$4 sm:$0xff]   ;;  %v6681_v36 = vld [vmem:[#allocation2 + $0x124] ss:$16 sps:$4 sm:$0xff]   ;;  %v6683_v37 = vld [vmem:[#allocation2 + $0x12c] ss:$16 sps:$4 sm:$0xff]  }
  0xc0   :  { %v6685_v38 = vld [vmem:[#allocation2 + $0x120] ss:$16 sps:$4 sm:$0xff]   ;;  %v6686_v39 = vld [vmem:[#allocation2 + $0x128] ss:$16 sps:$4 sm:$0xff]   ;;  %v6687_v40 = vld [vmem:[#allocation2 + $0x144] ss:$16 sps:$4 sm:$0xff]  }
  0xc1   :  { %1793 = vmatpush1.bf16.msra.mxu0 %v6649_v14  ;;  %1965 = vmatpush1.bf16.msra.mxu1 %v6650_v15  ;;  %v6689_v41 = vld [vmem:[#allocation2 + $0x14c] ss:$16 sps:$4 sm:$0xff]   ;;  %v6691_v42 = vld [vmem:[#allocation2 + $0x140] ss:$16 sps:$4 sm:$0xff]   ;;  %v6692_v43 = vld [vmem:[#allocation2 + $0x148] ss:$16 sps:$4 sm:$0xff]  }
  0xc2   :  { %1794 = vmatprep.subr.bf16.mxu0 %v6651_v16  ;;  %1966 = vmatprep.subr.bf16.mxu1 %v6653_v17  ;;  %v6693_v44 = vld [vmem:[#allocation2 + $0x164] ss:$16 sps:$4 sm:$0xff]   ;;  %v6695_v45 = vld [vmem:[#allocation2 + $0x16c] ss:$16 sps:$4 sm:$0xff]   ;;  %s7988_s14 = sld [smem:[#allocation21_spill]]  ;;  %vm7506_vm0 = vmmov 0  }
  0xc3   :  { %v6697_v48 = vld [vmem:[#allocation2 + $0x160] ss:$16 sps:$4 sm:$0xff]   ;;  %v6698_v49 = vld [vmem:[#allocation2 + $0x168] ss:$16 sps:$4 sm:$0xff]   ;;  %v6699_v51 = vld [vmem:[#allocation2 + $0x184] ss:$16 sps:$4 sm:$0xff]  }
  0xc4   :  { %v6701_v52 = vld [vmem:[#allocation2 + $0x18c] ss:$16 sps:$4 sm:$0xff]   ;;  %v6703_v53 = vld [vmem:[#allocation2 + $0x180] ss:$16 sps:$4 sm:$0xff]   ;;  %v6704_v54 = vld [vmem:[#allocation2 + $0x188] ss:$16 sps:$4 sm:$0xff]  }
  0xc5   :  { %1795 = vmatpush1.bf16.msra.mxu0 %v6655_v18  ;;  %1967 = vmatpush1.bf16.msra.mxu1 %v6656_v19  ;;  %v6705_v55 = vld [vmem:[#allocation2 + $0x1a4] ss:$16 sps:$4 sm:$0xff]   ;;  %v6707_v56 = vld [vmem:[#allocation2 + $0x1ac] ss:$16 sps:$4 sm:$0xff]   ;;  %v6709_v57 = vld [vmem:[#allocation2 + $0x1a0] ss:$16 sps:$4 sm:$0xff]  }
  0xc6   :  { %1796 = vmatprep.subr.bf16.mxu0 %v6657_v20  ;;  %1968 = vmatprep.subr.bf16.mxu1 %v6659_v21  ;;  %v6710_v58 = vld [vmem:[#allocation2 + $0x1a8] ss:$16 sps:$4 sm:$0xff]   ;;  %v6711_v59 = vld [vmem:[#allocation2 + $0x1c4] ss:$16 sps:$4 sm:$0xff]   ;;  %v6713_v60 = vld [vmem:[#allocation2 + $0x1cc] ss:$16 sps:$4 sm:$0xff]  }
  0xc7   :  { %v6715_v61 = vld [vmem:[#allocation2 + $0x1c0] ss:$16 sps:$4 sm:$0xff]   ;;  %v6716_v62 = vld [vmem:[#allocation2 + $0x1c8] ss:$16 sps:$4 sm:$0xff]   ;;  %v6717_v63 = vld [vmem:[#allocation2 + $0x1e4] ss:$16 sps:$4 sm:$0xff]  }
  0xc8   :  { %v180_v46 = vld [vmem:[%s7988_s14] sm:$0xff]  ;;  %v6719_v0 = vld [vmem:[#allocation2 + $0x1ec] ss:$16 sps:$4 sm:$0xff]   ;;  %v6722_v2 = vld [vmem:[#allocation2 + $0x1e8] ss:$16 sps:$4 sm:$0xff]   ;;  %s7989_s7 = sld [smem:[#allocation22_spill]] }
  0xc9   :  { %1797 = vmatpush1.bf16.msra.mxu0 %v6661_v22  ;;  %1969 = vmatpush1.bf16.msra.mxu1 %v6662_v23  ;;  %v184_v47 = vld [vmem:[%s7988_s14 + $0x20] sm:$0xff]  ;;  %v6728_v4 = vld [vmem:[#allocation2 + $0x20c] ss:$16 sps:$4 sm:$0xff]   ;;  %v6726_v7 = vld [vmem:[#allocation2 + $0x208] ss:$16 sps:$4 sm:$0xff]  }
  0xca   :  { %1798 = vmatprep.subr.bf16.mxu0 %v6663_v24  ;;  %1970 = vmatprep.subr.bf16.mxu1 %v6665_v25  ;;  %v5763_v50 = vcombine.high %v180_v46, %v184_v47  ;;  %v6721_v1 = vld [vmem:[#allocation2 + $0x1e0] ss:$16 sps:$4 sm:$0xff]   ;;  %v6725_v3 = vld [vmem:[#allocation2 + $0x204] ss:$16 sps:$4 sm:$0xff]   ;;  %v5762_v5 = vcombine.low %v180_v46, %v184_v47  ;;  %v6734_v9 = vld [vmem:[#allocation2 + $0x22c] ss:$16 sps:$4 sm:$0xff]  }
  0xcb   :  { %v6723_v6 = vld [vmem:[#allocation2 + $0x200] ss:$16 sps:$4 sm:$0xff]   ;;  %v6731_v8 = vld [vmem:[#allocation2 + $0x224] ss:$16 sps:$4 sm:$0xff]   ;;  %v6732_v11 = vld [vmem:[#allocation2 + $0x228] ss:$16 sps:$4 sm:$0xff]  }
  0xcc   :  { %1818 = vmatprep.mubr.bf16.mxu0 %v5763_v50  ;;  %1990 = vmatprep.mubr.bf16.mxu1 %v5763_v50  ;;  %v6729_v10 = vld [vmem:[#allocation2 + $0x220] ss:$16 sps:$4 sm:$0xff]   ;;  %v6737_v12 = vld [vmem:[#allocation2 + $0x244] ss:$16 sps:$4 sm:$0xff]   ;;  %v6740_v13 = vld [vmem:[#allocation2 + $0x24c] ss:$16 sps:$4 sm:$0xff]  }
  0xcd   :  { %1799 = vmatpush1.bf16.msra.mxu0 %v6667_v26  ;;  %1971 = vmatpush1.bf16.msra.mxu1 %v6668_v27  ;;  %v6735_v14 = vld [vmem:[#allocation2 + $0x240] ss:$16 sps:$4 sm:$0xff]   ;;  %v6738_v15 = vld [vmem:[#allocation2 + $0x248] ss:$16 sps:$4 sm:$0xff]   ;;  %v6743_v16 = vld [vmem:[#allocation2 + $0x264] ss:$16 sps:$4 sm:$0xff]  }
  0xce   :  { %1800 = vmatprep.subr.bf16.mxu0 %v6669_v28  ;;  %1972 = vmatprep.subr.bf16.mxu1 %v6671_v29  ;;  %v6746_v17 = vld [vmem:[#allocation2 + $0x26c] ss:$16 sps:$4 sm:$0xff]   ;;  %v6741_v18 = vld [vmem:[#allocation2 + $0x260] ss:$16 sps:$4 sm:$0xff]   ;;  %v6744_v19 = vld [vmem:[#allocation2 + $0x268] ss:$16 sps:$4 sm:$0xff]  }
  0xcf   :  { %v6749_v20 = vld [vmem:[#allocation2 + $0x284] ss:$16 sps:$4 sm:$0xff]   ;;  %v6752_v21 = vld [vmem:[#allocation2 + $0x28c] ss:$16 sps:$4 sm:$0xff]   ;;  %v6747_v22 = vld [vmem:[#allocation2 + $0x280] ss:$16 sps:$4 sm:$0xff]  }
  0xd0   :  { %v6750_v23 = vld [vmem:[#allocation2 + $0x288] ss:$16 sps:$4 sm:$0xff]   ;;  %v6755_v24 = vld [vmem:[#allocation2 + $0x2a4] ss:$16 sps:$4 sm:$0xff]   ;;  %v6758_v25 = vld [vmem:[#allocation2 + $0x2ac] ss:$16 sps:$4 sm:$0xff]  }
  0xd1   :  { %1801 = vmatpush1.bf16.msra.mxu0 %v6673_v30  ;;  %1973 = vmatpush1.bf16.msra.mxu1 %v6674_v31  ;;  %v6753_v26 = vld [vmem:[#allocation2 + $0x2a0] ss:$16 sps:$4 sm:$0xff]   ;;  %v6756_v27 = vld [vmem:[#allocation2 + $0x2a8] ss:$16 sps:$4 sm:$0xff]   ;;  %v6761_v28 = vld [vmem:[#allocation2 + $0x2c4] ss:$16 sps:$4 sm:$0xff]  }
  0xd2   :  { %1802 = vmatprep.subr.bf16.mxu0 %v6675_v32  ;;  %1974 = vmatprep.subr.bf16.mxu1 %v6677_v33  ;;  %v6764_v29 = vld [vmem:[#allocation2 + $0x2cc] ss:$16 sps:$4 sm:$0xff]   ;;  %v6759_v32 = vld [vmem:[#allocation2 + $0x2c0] ss:$16 sps:$4 sm:$0xff]   ;;  %v6762_v33 = vld [vmem:[#allocation2 + $0x2c8] ss:$16 sps:$4 sm:$0xff]  }
  0xd3   :  { %v7740_v30 = vld [vmem:[%s7988_s14 + $0x8] sm:$0xff]  ;;  %v6785_v47 = vld [vmem:[#allocation2 + $0x344] ss:$16 sps:$4 sm:$0xff]  }
  0xd4   :  { %v7745_v31 = vld [vmem:[%s7988_s14 + $0x28] sm:$0xff] }
  0xd5   :  { %1803 = vmatpush1.bf16.msra.mxu0 %v6679_v34  ;;  %1975 = vmatpush1.bf16.msra.mxu1 %v6680_v35  ;;  %v5765_v34 = vcombine.high %v7740_v30, %v7745_v31  ;;  %v6767_v35 = vld [vmem:[#allocation2 + $0x2e4] ss:$16 sps:$4 sm:$0xff]   ;;  %v6780_v46 = vld [vmem:[#allocation2 + $0x328] ss:$16 sps:$4 sm:$0xff]  }
  0xd6   :  { %1804 = vmatprep.subr.bf16.mxu0 %v6681_v36  ;;  %1976 = vmatprep.subr.bf16.mxu1 %v6683_v37  ;;  %v6770_v36 = vld [vmem:[#allocation2 + $0x2ec] ss:$16 sps:$4 sm:$0xff]   ;;  %v6765_v37 = vld [vmem:[#allocation2 + $0x2e0] ss:$16 sps:$4 sm:$0xff]   ;;  %v6786_v50 = vld [vmem:[#allocation2 + $0x348] ss:$16 sps:$4 sm:$0xff]  }
  0xd9   :  { %1805 = vmatpush1.bf16.msra.mxu0 %v6685_v38  ;;  %1977 = vmatpush1.bf16.msra.mxu1 %v6686_v39  ;;  %v6768_v38 = vld [vmem:[#allocation2 + $0x2e8] ss:$16 sps:$4 sm:$0xff]   ;;  %v6773_v39 = vld [vmem:[#allocation2 + $0x304] ss:$16 sps:$4 sm:$0xff]  }
  0xda   :  { %1806 = vmatprep.subr.bf16.mxu0 %v6687_v40  ;;  %1978 = vmatprep.subr.bf16.mxu1 %v6689_v41  ;;  %v6776_v40 = vld [vmem:[#allocation2 + $0x30c] ss:$16 sps:$4 sm:$0xff]   ;;  %v6771_v41 = vld [vmem:[#allocation2 + $0x300] ss:$16 sps:$4 sm:$0xff]  }
  0xdd   :  { %1807 = vmatpush1.bf16.msra.mxu0 %v6691_v42  ;;  %1979 = vmatpush1.bf16.msra.mxu1 %v6692_v43  ;;  %v6774_v42 = vld [vmem:[#allocation2 + $0x308] ss:$16 sps:$4 sm:$0xff]   ;;  %v6779_v43 = vld [vmem:[#allocation2 + $0x324] ss:$16 sps:$4 sm:$0xff]  }
  0xde   :  { %1808 = vmatprep.subr.bf16.mxu0 %v6693_v44  ;;  %1980 = vmatprep.subr.bf16.mxu1 %v6695_v45  ;;  %v6782_v44 = vld [vmem:[#allocation2 + $0x32c] ss:$16 sps:$4 sm:$0xff]   ;;  %v6777_v45 = vld [vmem:[#allocation2 + $0x320] ss:$16 sps:$4 sm:$0xff]  }
  0xe1   :  { %1809 = vmatpush1.bf16.msra.mxu0 %v6697_v48  ;;  %1981 = vmatpush1.bf16.msra.mxu1 %v6698_v49  ;;  %v6788_v48 = vld [vmem:[#allocation2 + $0x34c] ss:$16 sps:$4 sm:$0xff]   ;;  %v6783_v49 = vld [vmem:[#allocation2 + $0x340] ss:$16 sps:$4 sm:$0xff]  }
  0xe2   :  { %1810 = vmatprep.subr.bf16.mxu0 %v6699_v51  ;;  %1982 = vmatprep.subr.bf16.mxu1 %v6701_v52  ;;  %v6791_v51 = vld [vmem:[#allocation2 + $0x364] ss:$16 sps:$4 sm:$0xff]   ;;  %v6794_v52 = vld [vmem:[#allocation2 + $0x36c] ss:$16 sps:$4 sm:$0xff]  }
  0xe5   :  { %1811 = vmatpush1.bf16.msra.mxu0 %v6703_v53  ;;  %1983 = vmatpush1.bf16.msra.mxu1 %v6704_v54  ;;  %v6789_v53 = vld [vmem:[#allocation2 + $0x360] ss:$16 sps:$4 sm:$0xff]   ;;  %v6792_v54 = vld [vmem:[#allocation2 + $0x368] ss:$16 sps:$4 sm:$0xff]  }
  0xe6   :  { %1812 = vmatprep.subr.bf16.mxu0 %v6705_v55  ;;  %1984 = vmatprep.subr.bf16.mxu1 %v6707_v56  ;;  %v6797_v55 = vld [vmem:[#allocation2 + $0x384] ss:$16 sps:$4 sm:$0xff]   ;;  %v6800_v56 = vld [vmem:[#allocation2 + $0x38c] ss:$16 sps:$4 sm:$0xff]  }
  0xe9   :  { %1813 = vmatpush1.bf16.msra.mxu0 %v6709_v57  ;;  %1985 = vmatpush1.bf16.msra.mxu1 %v6710_v58  ;;  %v6795_v57 = vld [vmem:[#allocation2 + $0x380] ss:$16 sps:$4 sm:$0xff]   ;;  %v6798_v58 = vld [vmem:[#allocation2 + $0x388] ss:$16 sps:$4 sm:$0xff]  }
  0xea   :  { %1814 = vmatprep.subr.bf16.mxu0 %v6711_v59  ;;  %1986 = vmatprep.subr.bf16.mxu1 %v6713_v60  ;;  %v6803_v59 = vld [vmem:[#allocation2 + $0x3a4] ss:$16 sps:$4 sm:$0xff]   ;;  %v6806_v60 = vld [vmem:[#allocation2 + $0x3ac] ss:$16 sps:$4 sm:$0xff]  }
  0xed   :  { %1815 = vmatpush1.bf16.msra.mxu0 %v6715_v61  ;;  %1987 = vmatpush1.bf16.msra.mxu1 %v6716_v62  ;;  %v6801_v61 = vld [vmem:[#allocation2 + $0x3a0] ss:$16 sps:$4 sm:$0xff]   ;;  %v6804_v62 = vld [vmem:[#allocation2 + $0x3a8] ss:$16 sps:$4 sm:$0xff]  }
  0xee   :  { %1816 = vmatprep.subr.bf16.mxu0 %v6717_v63  ;;  %1988 = vmatprep.subr.bf16.mxu1 %v6719_v0  ;;  %v6809_v63 = vld [vmem:[#allocation2 + $0x3c4] ss:$16 sps:$4 sm:$0xff]   ;;  %v6812_v0 = vld [vmem:[#allocation2 + $0x3cc] ss:$16 sps:$4 sm:$0xff]  }
  0xf1   :  { %1817 = vmatpush1.bf16.msra.mxu0 %v6721_v1  ;;  %1989 = vmatpush1.bf16.msra.mxu1 %v6722_v2  ;;  %v6807_v1 = vld [vmem:[#allocation2 + $0x3c0] ss:$16 sps:$4 sm:$0xff]   ;;  %v6810_v2 = vld [vmem:[#allocation2 + $0x3c8] ss:$16 sps:$4 sm:$0xff]  }
  0xf2   :  { %1829 = vmatprep.subr.bf16.mxu0 %v6725_v3  ;;  %2001 = vmatprep.subr.bf16.mxu1 %v6728_v4  ;;  %v6815_v3 = vld [vmem:[#allocation2 + $0x3e4] ss:$16 sps:$4 sm:$0xff]   ;;  %v6818_v4 = vld [vmem:[#allocation2 + $0x3ec] ss:$16 sps:$4 sm:$0xff]  }
  0xf4   :  { %1819 = vmatmul.mubr.bf16.vlgmr.msra.gmra.mrb[0].mxu0 %v5762_v5  ;;  %1991 = vmatmul.mubr.bf16.vlgmr.msra.gmra.mrb[0].mxu1 %v5762_v5  ;;  %v6813_v5 = vld [vmem:[#allocation2 + $0x3e0] ss:$16 sps:$4 sm:$0xff]  }
  0xf5   :  { %1830 = vmatpush1.bf16.msra.mxu0 %v6723_v6  ;;  %2002 = vmatpush1.bf16.msra.mxu1 %v6726_v7  ;;  %v6816_v6 = vld [vmem:[#allocation2 + $0x3e8] ss:$16 sps:$4 sm:$0xff]   ;;  %v6821_v7 = vld [vmem:[#allocation2 + $0x404] ss:$16 sps:$4 sm:$0xff]  }
  0xf6   :  { %1831 = vmatprep.subr.bf16.mxu0 %v6731_v8  ;;  %2003 = vmatprep.subr.bf16.mxu1 %v6734_v9  ;;  %v6824_v8 = vld [vmem:[#allocation2 + $0x40c] ss:$16 sps:$4 sm:$0xff]   ;;  %v5764_v9 = vcombine.low %v7740_v30, %v7745_v31  ;;  %v6846_v30 = vld [vmem:[#allocation2 + $0x488] ss:$16 sps:$4 sm:$0xff]   ;;  %v6851_v31 = vld [vmem:[#allocation2 + $0x4a4] ss:$16 sps:$4 sm:$0xff]  }
  0xf7   :  { %1861 = vmatprep.mubr.bf16.mxu0 %v5765_v34  ;;  %2033 = vmatprep.mubr.bf16.mxu1 %v5765_v34  ;;  %v6852_v34 = vld [vmem:[#allocation2 + $0x4a8] ss:$16 sps:$4 sm:$0xff]  }
  0xf9   :  { %1832 = vmatpush1.bf16.msra.mxu0 %v6729_v10  ;;  %2004 = vmatpush1.bf16.msra.mxu1 %v6732_v11  ;;  %v6819_v10 = vld [vmem:[#allocation2 + $0x400] ss:$16 sps:$4 sm:$0xff]   ;;  %v6822_v11 = vld [vmem:[#allocation2 + $0x408] ss:$16 sps:$4 sm:$0xff]  }
  0xfa   :  { %1833 = vmatprep.subr.bf16.mxu0 %v6737_v12  ;;  %2005 = vmatprep.subr.bf16.mxu1 %v6740_v13  ;;  %v6827_v12 = vld [vmem:[#allocation2 + $0x424] ss:$16 sps:$4 sm:$0xff]   ;;  %v6830_v13 = vld [vmem:[#allocation2 + $0x42c] ss:$16 sps:$4 sm:$0xff]  }
  0xfd   :  { %1834 = vmatpush1.bf16.msra.mxu0 %v6735_v14  ;;  %2006 = vmatpush1.bf16.msra.mxu1 %v6738_v15  ;;  %v7754_v14 = vld [vmem:[%s7988_s14 + $0x10] sm:$0xff] }
  0xfe   :  { %1835 = vmatprep.subr.bf16.mxu0 %v6743_v16  ;;  %2007 = vmatprep.subr.bf16.mxu1 %v6746_v17  ;;  %v7759_v15 = vld [vmem:[%s7988_s14 + $0x30] sm:$0xff] }
  0xff   :  { %v5767_v16 = vcombine.high %v7754_v14, %v7759_v15  ;;  %v6825_v17 = vld [vmem:[#allocation2 + $0x420] ss:$16 sps:$4 sm:$0xff]  }
 0x101   :  { %1836 = vmatpush1.bf16.msra.mxu0 %v6741_v18  ;;  %2008 = vmatpush1.bf16.msra.mxu1 %v6744_v19  ;;  %v6828_v18 = vld [vmem:[#allocation2 + $0x428] ss:$16 sps:$4 sm:$0xff]   ;;  %v6833_v19 = vld [vmem:[#allocation2 + $0x444] ss:$16 sps:$4 sm:$0xff]  }
 0x102   :  { %1837 = vmatprep.subr.bf16.mxu0 %v6749_v20  ;;  %2009 = vmatprep.subr.bf16.mxu1 %v6752_v21  ;;  %v6836_v20 = vld [vmem:[#allocation2 + $0x44c] ss:$16 sps:$4 sm:$0xff]   ;;  %v6831_v21 = vld [vmem:[#allocation2 + $0x440] ss:$16 sps:$4 sm:$0xff]  }
 0x105   :  { %1838 = vmatpush1.bf16.msra.mxu0 %v6747_v22  ;;  %2010 = vmatpush1.bf16.msra.mxu1 %v6750_v23  ;;  %v6834_v22 = vld [vmem:[#allocation2 + $0x448] ss:$16 sps:$4 sm:$0xff]   ;;  %v6839_v23 = vld [vmem:[#allocation2 + $0x464] ss:$16 sps:$4 sm:$0xff]  }
 0x106   :  { %1839 = vmatprep.subr.bf16.mxu0 %v6755_v24  ;;  %2011 = vmatprep.subr.bf16.mxu1 %v6758_v25  ;;  %v6842_v24 = vld [vmem:[#allocation2 + $0x46c] ss:$16 sps:$4 sm:$0xff]   ;;  %v6837_v25 = vld [vmem:[#allocation2 + $0x460] ss:$16 sps:$4 sm:$0xff]  }
 0x109   :  { %1840 = vmatpush1.bf16.msra.mxu0 %v6753_v26  ;;  %2012 = vmatpush1.bf16.msra.mxu1 %v6756_v27  ;;  %v6840_v26 = vld [vmem:[#allocation2 + $0x468] ss:$16 sps:$4 sm:$0xff]   ;;  %v6845_v27 = vld [vmem:[#allocation2 + $0x484] ss:$16 sps:$4 sm:$0xff]  }
 0x10a   :  { %1841 = vmatprep.subr.bf16.mxu0 %v6761_v28  ;;  %2013 = vmatprep.subr.bf16.mxu1 %v6764_v29  ;;  %v6848_v28 = vld [vmem:[#allocation2 + $0x48c] ss:$16 sps:$4 sm:$0xff]   ;;  %v6843_v29 = vld [vmem:[#allocation2 + $0x480] ss:$16 sps:$4 sm:$0xff]  }
 0x10d   :  { %1842 = vmatpush1.bf16.msra.mxu0 %v6759_v32  ;;  %2014 = vmatpush1.bf16.msra.mxu1 %v6762_v33  ;;  %v6854_v32 = vld [vmem:[#allocation2 + $0x4ac] ss:$16 sps:$4 sm:$0xff]   ;;  %v6849_v33 = vld [vmem:[#allocation2 + $0x4a0] ss:$16 sps:$4 sm:$0xff]  }
 0x10e   :  { %1843 = vmatprep.subr.bf16.mxu0 %v6767_v35  ;;  %2015 = vmatprep.subr.bf16.mxu1 %v6770_v36  ;;  %v6857_v35 = vld [vmem:[#allocation2 + $0x4c4] ss:$16 sps:$4 sm:$0xff]   ;;  %v6860_v36 = vld [vmem:[#allocation2 + $0x4cc] ss:$16 sps:$4 sm:$0xff]  }
 0x111   :  { %1844 = vmatpush1.bf16.msra.mxu0 %v6765_v37  ;;  %2016 = vmatpush1.bf16.msra.mxu1 %v6768_v38  ;;  %v6855_v37 = vld [vmem:[#allocation2 + $0x4c0] ss:$16 sps:$4 sm:$0xff]   ;;  %v6858_v38 = vld [vmem:[#allocation2 + $0x4c8] ss:$16 sps:$4 sm:$0xff]  }
 0x112   :  { %1845 = vmatprep.subr.bf16.mxu0 %v6773_v39  ;;  %2017 = vmatprep.subr.bf16.mxu1 %v6776_v40  ;;  %v6863_v39 = vld [vmem:[#allocation2 + $0x4e4] ss:$16 sps:$4 sm:$0xff]   ;;  %v6866_v40 = vld [vmem:[#allocation2 + $0x4ec] ss:$16 sps:$4 sm:$0xff]  }
 0x115   :  { %1846 = vmatpush1.bf16.msra.mxu0 %v6771_v41  ;;  %2018 = vmatpush1.bf16.msra.mxu1 %v6774_v42  ;;  %v6861_v41 = vld [vmem:[#allocation2 + $0x4e0] ss:$16 sps:$4 sm:$0xff]   ;;  %v6864_v42 = vld [vmem:[#allocation2 + $0x4e8] ss:$16 sps:$4 sm:$0xff]  }
 0x116   :  { %1847 = vmatprep.subr.bf16.mxu0 %v6779_v43  ;;  %2019 = vmatprep.subr.bf16.mxu1 %v6782_v44  ;;  %v6869_v43 = vld [vmem:[#allocation2 + $0x504] ss:$16 sps:$4 sm:$0xff]   ;;  %v6872_v44 = vld [vmem:[#allocation2 + $0x50c] ss:$16 sps:$4 sm:$0xff]  }
 0x119   :  { %1848 = vmatpush1.bf16.msra.mxu0 %v6777_v45  ;;  %2020 = vmatpush1.bf16.msra.mxu1 %v6780_v46  ;;  %v6867_v45 = vld [vmem:[#allocation2 + $0x500] ss:$16 sps:$4 sm:$0xff]   ;;  %v6870_v46 = vld [vmem:[#allocation2 + $0x508] ss:$16 sps:$4 sm:$0xff]  }
 0x11a   :  { %1849 = vmatprep.subr.bf16.mxu0 %v6785_v47  ;;  %2021 = vmatprep.subr.bf16.mxu1 %v6788_v48  ;;  %v6875_v47 = vld [vmem:[#allocation2 + $0x524] ss:$16 sps:$4 sm:$0xff]   ;;  %v6878_v48 = vld [vmem:[#allocation2 + $0x52c] ss:$16 sps:$4 sm:$0xff]  }
 0x11d   :  { %1850 = vmatpush1.bf16.msra.mxu0 %v6783_v49  ;;  %2022 = vmatpush1.bf16.msra.mxu1 %v6786_v50  ;;  %v6873_v49 = vld [vmem:[#allocation2 + $0x520] ss:$16 sps:$4 sm:$0xff]   ;;  %v6876_v50 = vld [vmem:[#allocation2 + $0x528] ss:$16 sps:$4 sm:$0xff]  }
 0x11e   :  { %1851 = vmatprep.subr.bf16.mxu0 %v6791_v51  ;;  %2023 = vmatprep.subr.bf16.mxu1 %v6794_v52  ;;  %v6881_v51 = vld [vmem:[#allocation2 + $0x544] ss:$16 sps:$4 sm:$0xff]   ;;  %v6884_v52 = vld [vmem:[#allocation2 + $0x54c] ss:$16 sps:$4 sm:$0xff]  }
 0x121   :  { %1852 = vmatpush1.bf16.msra.mxu0 %v6789_v53  ;;  %2024 = vmatpush1.bf16.msra.mxu1 %v6792_v54  ;;  %v6879_v53 = vld [vmem:[#allocation2 + $0x540] ss:$16 sps:$4 sm:$0xff]   ;;  %v6882_v54 = vld [vmem:[#allocation2 + $0x548] ss:$16 sps:$4 sm:$0xff]  }
 0x122   :  { %1853 = vmatprep.subr.bf16.mxu0 %v6797_v55  ;;  %2025 = vmatprep.subr.bf16.mxu1 %v6800_v56  ;;  %v6887_v55 = vld [vmem:[#allocation2 + $0x564] ss:$16 sps:$4 sm:$0xff]   ;;  %v6890_v56 = vld [vmem:[#allocation2 + $0x56c] ss:$16 sps:$4 sm:$0xff]  }
 0x125   :  { %1854 = vmatpush1.bf16.msra.mxu0 %v6795_v57  ;;  %2026 = vmatpush1.bf16.msra.mxu1 %v6798_v58  ;;  %v6885_v57 = vld [vmem:[#allocation2 + $0x560] ss:$16 sps:$4 sm:$0xff]   ;;  %v6888_v58 = vld [vmem:[#allocation2 + $0x568] ss:$16 sps:$4 sm:$0xff]  }
 0x126   :  { %1855 = vmatprep.subr.bf16.mxu0 %v6803_v59  ;;  %2027 = vmatprep.subr.bf16.mxu1 %v6806_v60  ;;  %v6893_v59 = vld [vmem:[#allocation2 + $0x584] ss:$16 sps:$4 sm:$0xff]   ;;  %v6896_v60 = vld [vmem:[#allocation2 + $0x58c] ss:$16 sps:$4 sm:$0xff]  }
 0x129   :  { %1856 = vmatpush1.bf16.msra.mxu0 %v6801_v61  ;;  %2028 = vmatpush1.bf16.msra.mxu1 %v6804_v62  ;;  %v6891_v61 = vld [vmem:[#allocation2 + $0x580] ss:$16 sps:$4 sm:$0xff]   ;;  %v6894_v62 = vld [vmem:[#allocation2 + $0x588] ss:$16 sps:$4 sm:$0xff]  }
 0x12a   :  { %1857 = vmatprep.subr.bf16.mxu0 %v6809_v63  ;;  %2029 = vmatprep.subr.bf16.mxu1 %v6812_v0  ;;  %v6899_v63 = vld [vmem:[#allocation2 + $0x5a4] ss:$16 sps:$4 sm:$0xff]   ;;  %v6902_v0 = vld [vmem:[#allocation2 + $0x5ac] ss:$16 sps:$4 sm:$0xff]  }
 0x12d   :  { %1858 = vmatpush1.bf16.msra.mxu0 %v6807_v1  ;;  %2030 = vmatpush1.bf16.msra.mxu1 %v6810_v2  ;;  %v6897_v1 = vld [vmem:[#allocation2 + $0x5a0] ss:$16 sps:$4 sm:$0xff]   ;;  %v6900_v2 = vld [vmem:[#allocation2 + $0x5a8] ss:$16 sps:$4 sm:$0xff]  }
 0x12e   :  { %1859 = vmatprep.subr.bf16.mxu0 %v6815_v3  ;;  %2031 = vmatprep.subr.bf16.mxu1 %v6818_v4  ;;  %v6905_v3 = vld [vmem:[#allocation2 + $0x5c4] ss:$16 sps:$4 sm:$0xff]   ;;  %v6908_v4 = vld [vmem:[#allocation2 + $0x5cc] ss:$16 sps:$4 sm:$0xff]  }
 0x131   :  { %1860 = vmatpush1.bf16.msra.mxu0 %v6813_v5  ;;  %2032 = vmatpush1.bf16.msra.mxu1 %v6816_v6  ;;  %v6903_v5 = vld [vmem:[#allocation2 + $0x5c0] ss:$16 sps:$4 sm:$0xff]   ;;  %v6906_v6 = vld [vmem:[#allocation2 + $0x5c8] ss:$16 sps:$4 sm:$0xff]  }
 0x132   :  { %1872 = vmatprep.subr.bf16.mxu0 %v6821_v7  ;;  %2044 = vmatprep.subr.bf16.mxu1 %v6824_v8  ;;  %v6911_v7 = vld [vmem:[#allocation2 + $0x5e4] ss:$16 sps:$4 sm:$0xff]   ;;  %v6914_v8 = vld [vmem:[#allocation2 + $0x5ec] ss:$16 sps:$4 sm:$0xff]  }
 0x134   :  { %1862 = vmatmul.mubr.bf16.vlgmr.msra.gmra.mrb[0].mxu0 %v5764_v9  ;;  %2034 = vmatmul.mubr.bf16.vlgmr.msra.gmra.mrb[0].mxu1 %v5764_v9  ;;  %v6909_v9 = vld [vmem:[#allocation2 + $0x5e0] ss:$16 sps:$4 sm:$0xff]  }
 0x135   :  { %1873 = vmatpush1.bf16.msra.mxu0 %v6819_v10  ;;  %2045 = vmatpush1.bf16.msra.mxu1 %v6822_v11  ;;  %v6912_v10 = vld [vmem:[#allocation2 + $0x5e8] ss:$16 sps:$4 sm:$0xff]   ;;  %v6917_v11 = vld [vmem:[#allocation2 + $0x604] ss:$16 sps:$4 sm:$0xff]  }
 0x136   :  { %1874 = vmatprep.subr.bf16.mxu0 %v6827_v12  ;;  %2046 = vmatprep.subr.bf16.mxu1 %v6830_v13  ;;  %v6920_v12 = vld [vmem:[#allocation2 + $0x60c] ss:$16 sps:$4 sm:$0xff]   ;;  %v6915_v13 = vld [vmem:[#allocation2 + $0x600] ss:$16 sps:$4 sm:$0xff]  }
 0x137   :  { %1904 = vmatprep.mubr.bf16.mxu0 %v5767_v16  ;;  %2076 = vmatprep.mubr.bf16.mxu1 %v5767_v16  ;;  %v6918_v16 = vld [vmem:[#allocation2 + $0x608] ss:$16 sps:$4 sm:$0xff]  }
 0x139   :  { %1875 = vmatpush1.bf16.msra.mxu0 %v6825_v17  ;;  %2047 = vmatpush1.bf16.msra.mxu1 %v6828_v18  ;;  %v5766_v17 = vcombine.low %v7754_v14, %v7759_v15  ;;  %v6923_v18 = vld [vmem:[#allocation2 + $0x624] ss:$16 sps:$4 sm:$0xff]  }
 0x13a   :  { %1876 = vmatprep.subr.bf16.mxu0 %v6833_v19  ;;  %2048 = vmatprep.subr.bf16.mxu1 %v6836_v20  ;;  %v7768_v19 = vld [vmem:[%s7988_s14 + $0x18] sm:$0xff]  ;;  %v6929_v15 = vld [vmem:[#allocation2 + $0x644] ss:$16 sps:$4 sm:$0xff]  }
 0x13b   :  { %v7773_v20 = vld [vmem:[%s7988_s14 + $0x38] sm:$0xff] }
 0x13c   :  { %v5769_v14 = vcombine.high %v7768_v19, %v7773_v20 }
 0x13d   :  { %1877 = vmatpush1.bf16.msra.mxu0 %v6831_v21  ;;  %2049 = vmatpush1.bf16.msra.mxu1 %v6834_v22  ;;  %v6926_v21 = vld [vmem:[#allocation2 + $0x62c] ss:$16 sps:$4 sm:$0xff]   ;;  %v6921_v22 = vld [vmem:[#allocation2 + $0x620] ss:$16 sps:$4 sm:$0xff]  }
 0x13e   :  { %1878 = vmatprep.subr.bf16.mxu0 %v6839_v23  ;;  %2050 = vmatprep.subr.bf16.mxu1 %v6842_v24  ;;  %v6924_v23 = vld [vmem:[#allocation2 + $0x628] ss:$16 sps:$4 sm:$0xff]   ;;  %v6932_v24 = vld [vmem:[#allocation2 + $0x64c] ss:$16 sps:$4 sm:$0xff]  }
 0x141   :  { %1879 = vmatpush1.bf16.msra.mxu0 %v6837_v25  ;;  %2051 = vmatpush1.bf16.msra.mxu1 %v6840_v26  ;;  %v6927_v25 = vld [vmem:[#allocation2 + $0x640] ss:$16 sps:$4 sm:$0xff]   ;;  %v6930_v26 = vld [vmem:[#allocation2 + $0x648] ss:$16 sps:$4 sm:$0xff]  }
 0x142   :  { %1880 = vmatprep.subr.bf16.mxu0 %v6845_v27  ;;  %2052 = vmatprep.subr.bf16.mxu1 %v6848_v28  ;;  %v6935_v27 = vld [vmem:[#allocation2 + $0x664] ss:$16 sps:$4 sm:$0xff]   ;;  %v6938_v28 = vld [vmem:[#allocation2 + $0x66c] ss:$16 sps:$4 sm:$0xff]  }
 0x145   :  { %1881 = vmatpush1.bf16.msra.mxu0 %v6843_v29  ;;  %2053 = vmatpush1.bf16.msra.mxu1 %v6846_v30  ;;  %v6933_v29 = vld [vmem:[#allocation2 + $0x660] ss:$16 sps:$4 sm:$0xff]   ;;  %v6936_v30 = vld [vmem:[#allocation2 + $0x668] ss:$16 sps:$4 sm:$0xff]  }
 0x146   :  { %1882 = vmatprep.subr.bf16.mxu0 %v6851_v31  ;;  %2054 = vmatprep.subr.bf16.mxu1 %v6854_v32  ;;  %v6941_v31 = vld [vmem:[#allocation2 + $0x684] ss:$16 sps:$4 sm:$0xff]   ;;  %v6944_v32 = vld [vmem:[#allocation2 + $0x68c] ss:$16 sps:$4 sm:$0xff]  }
 0x149   :  { %1883 = vmatpush1.bf16.msra.mxu0 %v6849_v33  ;;  %2055 = vmatpush1.bf16.msra.mxu1 %v6852_v34  ;;  %v6939_v33 = vld [vmem:[#allocation2 + $0x680] ss:$16 sps:$4 sm:$0xff]   ;;  %v6942_v34 = vld [vmem:[#allocation2 + $0x688] ss:$16 sps:$4 sm:$0xff]  }
 0x14a   :  { %1884 = vmatprep.subr.bf16.mxu0 %v6857_v35  ;;  %2056 = vmatprep.subr.bf16.mxu1 %v6860_v36  ;;  %v6947_v35 = vld [vmem:[#allocation2 + $0x6a4] ss:$16 sps:$4 sm:$0xff]   ;;  %v6950_v36 = vld [vmem:[#allocation2 + $0x6ac] ss:$16 sps:$4 sm:$0xff]  }
 0x14d   :  { %1885 = vmatpush1.bf16.msra.mxu0 %v6855_v37  ;;  %2057 = vmatpush1.bf16.msra.mxu1 %v6858_v38  ;;  %v6945_v37 = vld [vmem:[#allocation2 + $0x6a0] ss:$16 sps:$4 sm:$0xff]   ;;  %v6948_v38 = vld [vmem:[#allocation2 + $0x6a8] ss:$16 sps:$4 sm:$0xff]  }
 0x14e   :  { %1886 = vmatprep.subr.bf16.mxu0 %v6863_v39  ;;  %2058 = vmatprep.subr.bf16.mxu1 %v6866_v40  ;;  %v6953_v39 = vld [vmem:[#allocation2 + $0x6c4] ss:$16 sps:$4 sm:$0xff]   ;;  %v6956_v40 = vld [vmem:[#allocation2 + $0x6cc] ss:$16 sps:$4 sm:$0xff]  }
 0x151   :  { %1887 = vmatpush1.bf16.msra.mxu0 %v6861_v41  ;;  %2059 = vmatpush1.bf16.msra.mxu1 %v6864_v42  ;;  %v6951_v41 = vld [vmem:[#allocation2 + $0x6c0] ss:$16 sps:$4 sm:$0xff]   ;;  %v6954_v42 = vld [vmem:[#allocation2 + $0x6c8] ss:$16 sps:$4 sm:$0xff]  }
 0x152   :  { %1888 = vmatprep.subr.bf16.mxu0 %v6869_v43  ;;  %2060 = vmatprep.subr.bf16.mxu1 %v6872_v44  ;;  %v6959_v43 = vld [vmem:[#allocation2 + $0x6e4] ss:$16 sps:$4 sm:$0xff]   ;;  %v6962_v44 = vld [vmem:[#allocation2 + $0x6ec] ss:$16 sps:$4 sm:$0xff]  }
 0x155   :  { %1889 = vmatpush1.bf16.msra.mxu0 %v6867_v45  ;;  %2061 = vmatpush1.bf16.msra.mxu1 %v6870_v46  ;;  %v6957_v45 = vld [vmem:[#allocation2 + $0x6e0] ss:$16 sps:$4 sm:$0xff]   ;;  %v6960_v46 = vld [vmem:[#allocation2 + $0x6e8] ss:$16 sps:$4 sm:$0xff]  }
 0x156   :  { %1890 = vmatprep.subr.bf16.mxu0 %v6875_v47  ;;  %2062 = vmatprep.subr.bf16.mxu1 %v6878_v48  ;;  %v6965_v47 = vld [vmem:[#allocation2 + $0x704] ss:$16 sps:$4 sm:$0xff]   ;;  %v6968_v48 = vld [vmem:[#allocation2 + $0x70c] ss:$16 sps:$4 sm:$0xff]  }
 0x159   :  { %1891 = vmatpush1.bf16.msra.mxu0 %v6873_v49  ;;  %2063 = vmatpush1.bf16.msra.mxu1 %v6876_v50  ;;  %v6963_v49 = vld [vmem:[#allocation2 + $0x700] ss:$16 sps:$4 sm:$0xff]   ;;  %v6966_v50 = vld [vmem:[#allocation2 + $0x708] ss:$16 sps:$4 sm:$0xff]  }
 0x15a   :  { %1892 = vmatprep.subr.bf16.mxu0 %v6881_v51  ;;  %2064 = vmatprep.subr.bf16.mxu1 %v6884_v52  ;;  %v6971_v51 = vld [vmem:[#allocation2 + $0x724] ss:$16 sps:$4 sm:$0xff]   ;;  %v6974_v52 = vld [vmem:[#allocation2 + $0x72c] ss:$16 sps:$4 sm:$0xff]  }
 0x15d   :  { %1893 = vmatpush1.bf16.msra.mxu0 %v6879_v53  ;;  %2065 = vmatpush1.bf16.msra.mxu1 %v6882_v54  ;;  %v6969_v53 = vld [vmem:[#allocation2 + $0x720] ss:$16 sps:$4 sm:$0xff]   ;;  %v6972_v54 = vld [vmem:[#allocation2 + $0x728] ss:$16 sps:$4 sm:$0xff]  }
 0x15e   :  { %1894 = vmatprep.subr.bf16.mxu0 %v6887_v55  ;;  %2066 = vmatprep.subr.bf16.mxu1 %v6890_v56  ;;  %v6977_v55 = vld [vmem:[#allocation2 + $0x744] ss:$16 sps:$4 sm:$0xff]   ;;  %v6980_v56 = vld [vmem:[#allocation2 + $0x74c] ss:$16 sps:$4 sm:$0xff]  }
 0x161   :  { %1895 = vmatpush1.bf16.msra.mxu0 %v6885_v57  ;;  %2067 = vmatpush1.bf16.msra.mxu1 %v6888_v58  ;;  %v6975_v57 = vld [vmem:[#allocation2 + $0x740] ss:$16 sps:$4 sm:$0xff]   ;;  %v6978_v58 = vld [vmem:[#allocation2 + $0x748] ss:$16 sps:$4 sm:$0xff]  }
 0x162   :  { %1896 = vmatprep.subr.bf16.mxu0 %v6893_v59  ;;  %2068 = vmatprep.subr.bf16.mxu1 %v6896_v60  ;;  %v6983_v59 = vld [vmem:[#allocation2 + $0x764] ss:$16 sps:$4 sm:$0xff]   ;;  %v6986_v60 = vld [vmem:[#allocation2 + $0x76c] ss:$16 sps:$4 sm:$0xff]  }
 0x165   :  { %1897 = vmatpush1.bf16.msra.mxu0 %v6891_v61  ;;  %2069 = vmatpush1.bf16.msra.mxu1 %v6894_v62  ;;  %v6981_v61 = vld [vmem:[#allocation2 + $0x760] ss:$16 sps:$4 sm:$0xff]   ;;  %v6984_v62 = vld [vmem:[#allocation2 + $0x768] ss:$16 sps:$4 sm:$0xff]  }
 0x166   :  { %1898 = vmatprep.subr.bf16.mxu0 %v6899_v63  ;;  %2070 = vmatprep.subr.bf16.mxu1 %v6902_v0  ;;  %v6989_v63 = vld [vmem:[#allocation2 + $0x784] ss:$16 sps:$4 sm:$0xff]   ;;  %v6992_v0 = vld [vmem:[#allocation2 + $0x78c] ss:$16 sps:$4 sm:$0xff]  }
 0x169   :  { %1899 = vmatpush1.bf16.msra.mxu0 %v6897_v1  ;;  %2071 = vmatpush1.bf16.msra.mxu1 %v6900_v2  ;;  %v6987_v1 = vld [vmem:[#allocation2 + $0x780] ss:$16 sps:$4 sm:$0xff]   ;;  %v6990_v2 = vld [vmem:[#allocation2 + $0x788] ss:$16 sps:$4 sm:$0xff]  }
 0x16a   :  { %1900 = vmatprep.subr.bf16.mxu0 %v6905_v3  ;;  %2072 = vmatprep.subr.bf16.mxu1 %v6908_v4  ;;  %v6995_v3 = vld [vmem:[#allocation2 + $0x7a4] ss:$16 sps:$4 sm:$0xff]   ;;  %v6998_v4 = vld [vmem:[#allocation2 + $0x7ac] ss:$16 sps:$4 sm:$0xff]  }
 0x16d   :  { %1901 = vmatpush1.bf16.msra.mxu0 %v6903_v5  ;;  %2073 = vmatpush1.bf16.msra.mxu1 %v6906_v6  ;;  %v6993_v5 = vld [vmem:[#allocation2 + $0x7a0] ss:$16 sps:$4 sm:$0xff]   ;;  %v6996_v6 = vld [vmem:[#allocation2 + $0x7a8] ss:$16 sps:$4 sm:$0xff]  }
 0x16e   :  { %1902 = vmatprep.subr.bf16.mxu0 %v6911_v7  ;;  %2074 = vmatprep.subr.bf16.mxu1 %v6914_v8  ;;  %v7001_v7 = vld [vmem:[#allocation2 + $0x7c4] ss:$16 sps:$4 sm:$0xff]   ;;  %v7004_v8 = vld [vmem:[#allocation2 + $0x7cc] ss:$16 sps:$4 sm:$0xff]  }
 0x171   :  { %1903 = vmatpush1.bf16.msra.mxu0 %v6909_v9  ;;  %2075 = vmatpush1.bf16.msra.mxu1 %v6912_v10  ;;  %v6999_v9 = vld [vmem:[#allocation2 + $0x7c0] ss:$16 sps:$4 sm:$0xff]   ;;  %v7002_v10 = vld [vmem:[#allocation2 + $0x7c8] ss:$16 sps:$4 sm:$0xff]  }
 0x172   :  { %1915 = vmatprep.subr.bf16.mxu0 %v6917_v11  ;;  %2087 = vmatprep.subr.bf16.mxu1 %v6920_v12  ;;  %v7007_v11 = vld [vmem:[#allocation2 + $0x7e4] ss:$16 sps:$4 sm:$0xff]   ;;  %v7010_v12 = vld [vmem:[#allocation2 + $0x7ec] ss:$16 sps:$4 sm:$0xff]  }
 0x174   :  { %1905 = vmatmul.mubr.bf16.vlgmr.msra.gmra.mrb[0].mxu0 %v5766_v17  ;;  %2077 = vmatmul.mubr.bf16.vlgmr.msra.gmra.mrb[0].mxu1 %v5766_v17  ;;  %v7013_v17 = vld [vmem:[#allocation6 + $0x4] ss:$8 sps:$4 sm:$0xff]  }
 0x175   :  { %1916 = vmatpush1.bf16.msra.mxu0 %v6915_v13  ;;  %2088 = vmatpush1.bf16.msra.mxu1 %v6918_v16  ;;  %v7005_v13 = vld [vmem:[#allocation2 + $0x7e0] ss:$16 sps:$4 sm:$0xff]   ;;  %v7008_v16 = vld [vmem:[#allocation2 + $0x7e8] ss:$16 sps:$4 sm:$0xff]  }
 0x176   :  { %1917 = vmatprep.subr.bf16.mxu0 %v6923_v18  ;;  %2089 = vmatprep.subr.bf16.mxu1 %v6926_v21  ;;  %v5768_v18 = vcombine.low %v7768_v19, %v7773_v20  ;;  %v7011_v21 = vld [vmem:[#allocation6] ss:$8 sps:$4 sm:$0xff]   ;;  %v7028_v20 = vld [vmem:[#allocation6 + $0x54] ss:$8 sps:$4 sm:$0xff]  }
 0x177   :  { %1947 = vmatprep.mubr.bf16.mxu0 %v5769_v14  ;;  %2119 = vmatprep.mubr.bf16.mxu1 %v5769_v14  ;;  %v7019_v14 = vld [vmem:[#allocation6 + $0x24] ss:$8 sps:$4 sm:$0xff]   ;;  %v7023_v19 = vld [vmem:[#allocation6 + $0x40] ss:$8 sps:$4 sm:$0xff]  }
 0x179   :  { %1918 = vmatpush1.bf16.msra.mxu0 %v6921_v22  ;;  %2090 = vmatpush1.bf16.msra.mxu1 %v6924_v23  ;;  %v7016_v22 = vld [vmem:[#allocation6 + $0x14] ss:$8 sps:$4 sm:$0xff]   ;;  %v7014_v23 = vld [vmem:[#allocation6 + $0x10] ss:$8 sps:$4 sm:$0xff]  }
 0x17a   :  { %1919 = vmatprep.subr.bf16.mxu0 %v6929_v15  ;;  %2091 = vmatprep.subr.bf16.mxu1 %v6932_v24  ;;  %v7017_v15 = vld [vmem:[#allocation6 + $0x20] ss:$8 sps:$4 sm:$0xff]   ;;  %v7022_v24 = vld [vmem:[#allocation6 + $0x34] ss:$8 sps:$4 sm:$0xff]  }
 0x17d   :  { %1920 = vmatpush1.bf16.msra.mxu0 %v6927_v25  ;;  %2092 = vmatpush1.bf16.msra.mxu1 %v6930_v26  ;;  %v7020_v25 = vld [vmem:[#allocation6 + $0x30] ss:$8 sps:$4 sm:$0xff]   ;;  %v7025_v26 = vld [vmem:[#allocation6 + $0x44] ss:$8 sps:$4 sm:$0xff]  }
 0x17e   :  { %1921 = vmatprep.subr.bf16.mxu0 %v6935_v27  ;;  %2093 = vmatprep.subr.bf16.mxu1 %v6938_v28  ;;  %v7026_v27 = vld [vmem:[#allocation6 + $0x50] ss:$8 sps:$4 sm:$0xff]   ;;  %v7031_v28 = vld [vmem:[#allocation6 + $0x64] ss:$8 sps:$4 sm:$0xff]  }
 0x181   :  { %1922 = vmatpush1.bf16.msra.mxu0 %v6933_v29  ;;  %2094 = vmatpush1.bf16.msra.mxu1 %v6936_v30  ;;  %v7029_v29 = vld [vmem:[#allocation6 + $0x60] ss:$8 sps:$4 sm:$0xff]   ;;  %v7034_v30 = vld [vmem:[#allocation6 + $0x74] ss:$8 sps:$4 sm:$0xff]  }
 0x182   :  { %1923 = vmatprep.subr.bf16.mxu0 %v6941_v31  ;;  %2095 = vmatprep.subr.bf16.mxu1 %v6944_v32  ;;  %v7032_v31 = vld [vmem:[#allocation6 + $0x70] ss:$8 sps:$4 sm:$0xff]   ;;  %v7037_v32 = vld [vmem:[#allocation6 + $0x84] ss:$8 sps:$4 sm:$0xff]  }
 0x185   :  { %1924 = vmatpush1.bf16.msra.mxu0 %v6939_v33  ;;  %2096 = vmatpush1.bf16.msra.mxu1 %v6942_v34  ;;  %v7035_v33 = vld [vmem:[#allocation6 + $0x80] ss:$8 sps:$4 sm:$0xff]   ;;  %v7040_v34 = vld [vmem:[#allocation6 + $0x94] ss:$8 sps:$4 sm:$0xff]  }
 0x186   :  { %1925 = vmatprep.subr.bf16.mxu0 %v6947_v35  ;;  %2097 = vmatprep.subr.bf16.mxu1 %v6950_v36  ;;  %v7038_v35 = vld [vmem:[#allocation6 + $0x90] ss:$8 sps:$4 sm:$0xff]   ;;  %v7043_v36 = vld [vmem:[#allocation6 + $0xa4] ss:$8 sps:$4 sm:$0xff]  }
 0x189   :  { %1926 = vmatpush1.bf16.msra.mxu0 %v6945_v37  ;;  %2098 = vmatpush1.bf16.msra.mxu1 %v6948_v38  ;;  %v7041_v37 = vld [vmem:[#allocation6 + $0xa0] ss:$8 sps:$4 sm:$0xff]   ;;  %v7046_v38 = vld [vmem:[#allocation6 + $0xb4] ss:$8 sps:$4 sm:$0xff]  }
 0x18a   :  { %1927 = vmatprep.subr.bf16.mxu0 %v6953_v39  ;;  %2099 = vmatprep.subr.bf16.mxu1 %v6956_v40  ;;  %v7044_v39 = vld [vmem:[#allocation6 + $0xb0] ss:$8 sps:$4 sm:$0xff]   ;;  %v7049_v40 = vld [vmem:[#allocation6 + $0xc4] ss:$8 sps:$4 sm:$0xff]  }
 0x18d   :  { %1928 = vmatpush1.bf16.msra.mxu0 %v6951_v41  ;;  %2100 = vmatpush1.bf16.msra.mxu1 %v6954_v42  ;;  %v7047_v41 = vld [vmem:[#allocation6 + $0xc0] ss:$8 sps:$4 sm:$0xff]   ;;  %v7052_v42 = vld [vmem:[#allocation6 + $0xd4] ss:$8 sps:$4 sm:$0xff]  }
 0x18e   :  { %1929 = vmatprep.subr.bf16.mxu0 %v6959_v43  ;;  %2101 = vmatprep.subr.bf16.mxu1 %v6962_v44  ;;  %v7050_v43 = vld [vmem:[#allocation6 + $0xd0] ss:$8 sps:$4 sm:$0xff]   ;;  %v7055_v44 = vld [vmem:[#allocation6 + $0xe4] ss:$8 sps:$4 sm:$0xff]  }
 0x191   :  { %1930 = vmatpush1.bf16.msra.mxu0 %v6957_v45  ;;  %2102 = vmatpush1.bf16.msra.mxu1 %v6960_v46  ;;  %v7053_v45 = vld [vmem:[#allocation6 + $0xe0] ss:$8 sps:$4 sm:$0xff]   ;;  %v7058_v46 = vld [vmem:[#allocation6 + $0xf4] ss:$8 sps:$4 sm:$0xff]  }
 0x192   :  { %1931 = vmatprep.subr.bf16.mxu0 %v6965_v47  ;;  %2103 = vmatprep.subr.bf16.mxu1 %v6968_v48  ;;  %v7056_v47 = vld [vmem:[#allocation6 + $0xf0] ss:$8 sps:$4 sm:$0xff]   ;;  %v7061_v48 = vld [vmem:[#allocation6 + $0x104] ss:$8 sps:$4 sm:$0xff]  }
 0x195   :  { %1932 = vmatpush1.bf16.msra.mxu0 %v6963_v49  ;;  %2104 = vmatpush1.bf16.msra.mxu1 %v6966_v50  ;;  %v7107_v49 = vld [vmem:[%s7964_s6 + $0x40] sm:$0xff]  }
 0x196   :  { %1933 = vmatprep.subr.bf16.mxu0 %v6971_v51  ;;  %2105 = vmatprep.subr.bf16.mxu1 %v6974_v52  ;;  %v7108_v50 = vld [vmem:[%s7964_s6] sm:$0xff]   ;;  %v7109_v51 = vld [vmem:[%s7964_s6 + $0x48] sm:$0xff]  }
 0x197   :  { %v7110_v52 = vld [vmem:[%s7964_s6 + $0x8] sm:$0xff]  }
 0x199   :  { %1934 = vmatpush1.bf16.msra.mxu0 %v6969_v53  ;;  %2106 = vmatpush1.bf16.msra.mxu1 %v6972_v54  ;;  %v7111_v53 = vld [vmem:[%s7964_s6 + $0x50] sm:$0xff]  }
 0x19a   :  { %1935 = vmatprep.subr.bf16.mxu0 %v6977_v55  ;;  %2107 = vmatprep.subr.bf16.mxu1 %v6980_v56  ;;  %v7112_v54 = vld [vmem:[%s7964_s6 + $0x10] sm:$0xff]   ;;  %v7113_v55 = vld [vmem:[%s7964_s6 + $0x58] sm:$0xff]  }
 0x19b   :  { %v7114_v56 = vld [vmem:[%s7964_s6 + $0x18] sm:$0xff]  }
 0x19d   :  { %1936 = vmatpush1.bf16.msra.mxu0 %v6975_v57  ;;  %2108 = vmatpush1.bf16.msra.mxu1 %v6978_v58  ;;  %v7115_v57 = vld [vmem:[%s7964_s6 + $0x60] sm:$0xff]  }
 0x19e   :  { %1937 = vmatprep.subr.bf16.mxu0 %v6983_v59  ;;  %2109 = vmatprep.subr.bf16.mxu1 %v6986_v60  ;;  %v7116_v58 = vld [vmem:[%s7964_s6 + $0x20] sm:$0xff]   ;;  %v7117_v59 = vld [vmem:[%s7964_s6 + $0x68] sm:$0xff]   ;;  %v446_v60 = vlaneseq }
 0x1a1   :  { %1938 = vmatpush1.bf16.msra.mxu0 %v6981_v61  ;;  %2110 = vmatpush1.bf16.msra.mxu1 %v6984_v62  ;;  %v7812_v61 = vshrl.u32 %v446_v60, 7  ;;  %v7100_v60 = vld [vmem:[#allocation6 + $0x1d4] ss:$8 sps:$4 sm:$0xff]  }
 0x1a2   :  { %1939 = vmatprep.subr.bf16.mxu0 %v6989_v63  ;;  %2111 = vmatprep.subr.bf16.mxu1 %v6992_v0  ;;  %v444_v0 = vld [vmem:[#allocation4] sm:$0xf] }
 0x1a3   :  { %v7815_v62 = vsub.s32 0, %v7812_v61  ;;  %v7818_v63 = vsub.s32 2, %v7812_v61 }
 0x1a5   :  { %1940 = vmatpush1.bf16.msra.mxu0 %v6987_v1  ;;  %2112 = vmatpush1.bf16.msra.mxu1 %v6990_v2  ;;  %v7821_v1 = vsub.s32 1, %v7812_v61  ;;  %v7824_v2 = vsub.s32 3, %v7812_v61 }
 0x1a6   :  { %1941 = vmatprep.subr.bf16.mxu0 %v6995_v3  ;;  %2113 = vmatprep.subr.bf16.mxu1 %v6998_v4  ;;  %v449_v3 = vrot.slane %v444_v0, %v7815_v62  ;;  %v457_v4 = vrot.slane %v444_v0, %v7818_v63 }
 0x1a9   :  { %1942 = vmatpush1.bf16.msra.mxu0 %v6993_v5  ;;  %2114 = vmatpush1.bf16.msra.mxu1 %v6996_v6  ;;  %v453_v5 = vrot.slane %v444_v0, %v7821_v1  ;;  %v461_v6 = vrot.slane %v444_v0, %v7824_v2  ;;  %v7098_v0 = vld [vmem:[#allocation6 + $0x1d0] ss:$8 sps:$4 sm:$0xff]  }
 0x1aa   :  { %1943 = vmatprep.subr.bf16.mxu0 %v7001_v7  ;;  %2115 = vmatprep.subr.bf16.mxu1 %v7004_v8 }
 0x1ad   :  { %1944 = vmatpush1.bf16.msra.mxu0 %v6999_v9  ;;  %2116 = vmatpush1.bf16.msra.mxu1 %v7002_v10 }
 0x1ae   :  { %1945 = vmatprep.subr.bf16.mxu0 %v7007_v11  ;;  %2117 = vmatprep.subr.bf16.mxu1 %v7010_v12 }
 0x1b1   :  { %1946 = vmatpush1.bf16.msra.mxu0 %v7005_v13  ;;  %2118 = vmatpush1.bf16.msra.mxu1 %v7008_v16 }
 0x1b2   :  { %2538 = vmatprep.subr.bf16.mxu0 %v7013_v17  ;;  %6484 = vmatprep.subr.bf16.mxu1 %v7107_v49  ;;  %v7080_v49 = vld [vmem:[#allocation6 + $0x170] ss:$8 sps:$4 sm:$0xff]  }
 0x1b4   :  { %1948 = vmatmul.mubr.bf16.vlgmr.msra.gmra.mrb[0].mxu0 %v5768_v18  ;;  %2120 = vmatmul.mubr.bf16.vlgmr.msra.gmra.mrb[0].mxu1 %v5768_v18 }
 0x1b5   :  { %2539 = vmatpush1.bf16.msra.mxu0 %v7011_v21  ;;  %6485 = vmatpush3.bf16.msra.mxu1 %v7108_v50  ;;  %v7085_v50 = vld [vmem:[#allocation6 + $0x184] ss:$8 sps:$4 sm:$0xff]  }
 0x1b6   :  { %2540 = vmatprep.subr.bf16.mxu0 %v7016_v22  ;;  %6486 = vmatprep.subr.bf16.mxu1 %v7109_v51  ;;  %v7083_v51 = vld [vmem:[#allocation6 + $0x180] ss:$8 sps:$4 sm:$0xff]  }
 0x1b9   :  { %2541 = vmatpush1.bf16.msra.mxu0 %v7014_v23  ;;  %6487 = vmatpush3.bf16.msra.mxu1 %v7110_v52  ;;  %v7088_v52 = vld [vmem:[#allocation6 + $0x194] ss:$8 sps:$4 sm:$0xff]  }
 0x1ba   :  { %2542 = vmatprep.subr.bf16.mxu0 %v7019_v14  ;;  %6488 = vmatprep.subr.bf16.mxu1 %v7111_v53  ;;  %v7086_v53 = vld [vmem:[#allocation6 + $0x190] ss:$8 sps:$4 sm:$0xff]  }
 0x1bd   :  { %2543 = vmatpush1.bf16.msra.mxu0 %v7017_v15  ;;  %6489 = vmatpush3.bf16.msra.mxu1 %v7112_v54  ;;  %v7091_v54 = vld [vmem:[#allocation6 + $0x1a4] ss:$8 sps:$4 sm:$0xff]  }
 0x1be   :  { %2544 = vmatprep.subr.bf16.mxu0 %v7022_v24  ;;  %6490 = vmatprep.subr.bf16.mxu1 %v7113_v55  ;;  %v7089_v55 = vld [vmem:[#allocation6 + $0x1a0] ss:$8 sps:$4 sm:$0xff]  }
 0x1c1   :  { %2545 = vmatpush1.bf16.msra.mxu0 %v7020_v25  ;;  %6491 = vmatpush3.bf16.msra.mxu1 %v7114_v56  ;;  %v7094_v56 = vld [vmem:[#allocation6 + $0x1b4] ss:$8 sps:$4 sm:$0xff]  }
 0x1c2   :  { %2546 = vmatprep.subr.bf16.mxu0 %v7025_v26  ;;  %6492 = vmatprep.subr.bf16.mxu1 %v7115_v57  ;;  %v7092_v57 = vld [vmem:[#allocation6 + $0x1b0] ss:$8 sps:$4 sm:$0xff]  }
 0x1c5   :  { %2547 = vmatpush1.bf16.msra.mxu0 %v7023_v19  ;;  %6493 = vmatpush3.bf16.msra.mxu1 %v7116_v58  ;;  %v7097_v58 = vld [vmem:[#allocation6 + $0x1c4] ss:$8 sps:$4 sm:$0xff]  }
 0x1c6   :  { %2548 = vmatprep.subr.bf16.mxu0 %v7028_v20  ;;  %6494 = vmatprep.subr.bf16.mxu1 %v7117_v59  ;;  %v7095_v59 = vld [vmem:[#allocation6 + $0x1c0] ss:$8 sps:$4 sm:$0xff]  }
 0x1c9   :  { %2549 = vmatpush1.bf16.msra.mxu0 %v7026_v27 }
 0x1ca   :  { %2550 = vmatprep.subr.bf16.mxu0 %v7031_v28 }
 0x1cd   :  { %2551 = vmatpush1.bf16.msra.mxu0 %v7029_v29 }
 0x1ce   :  { %2552 = vmatprep.subr.bf16.mxu0 %v7034_v30 }
 0x1d1   :  { %2553 = vmatpush1.bf16.msra.mxu0 %v7032_v31 }
 0x1d2   :  { %2554 = vmatprep.subr.bf16.mxu0 %v7037_v32 }
 0x1d5   :  { %2555 = vmatpush1.bf16.msra.mxu0 %v7035_v33 }
 0x1d6   :  { %2556 = vmatprep.subr.bf16.mxu0 %v7040_v34 }
 0x1d9   :  { %2557 = vmatpush1.bf16.msra.mxu0 %v7038_v35  ;;  %v7059_v35 = vld [vmem:[#allocation6 + $0x100] ss:$8 sps:$4 sm:$0xff]  }
 0x1da   :  { %2558 = vmatprep.subr.bf16.mxu0 %v7043_v36  ;;  %v7064_v36 = vld [vmem:[#allocation6 + $0x114] ss:$8 sps:$4 sm:$0xff]  }
 0x1dd   :  { %2559 = vmatpush1.bf16.msra.mxu0 %v7041_v37  ;;  %v7062_v37 = vld [vmem:[#allocation6 + $0x110] ss:$8 sps:$4 sm:$0xff]  }
 0x1de   :  { %2560 = vmatprep.subr.bf16.mxu0 %v7046_v38  ;;  %v7067_v38 = vld [vmem:[#allocation6 + $0x124] ss:$8 sps:$4 sm:$0xff]  }
 0x1e1   :  { %2561 = vmatpush1.bf16.msra.mxu0 %v7044_v39  ;;  %v7065_v39 = vld [vmem:[#allocation6 + $0x120] ss:$8 sps:$4 sm:$0xff]  }
 0x1e2   :  { %2562 = vmatprep.subr.bf16.mxu0 %v7049_v40  ;;  %v7070_v40 = vld [vmem:[#allocation6 + $0x134] ss:$8 sps:$4 sm:$0xff]  }
 0x1e5   :  { %2563 = vmatpush1.bf16.msra.mxu0 %v7047_v41  ;;  %v7068_v41 = vld [vmem:[#allocation6 + $0x130] ss:$8 sps:$4 sm:$0xff]  }
 0x1e6   :  { %2564 = vmatprep.subr.bf16.mxu0 %v7052_v42  ;;  %v7073_v42 = vld [vmem:[#allocation6 + $0x144] ss:$8 sps:$4 sm:$0xff]  }
 0x1e9   :  { %2565 = vmatpush1.bf16.msra.mxu0 %v7050_v43  ;;  %v7071_v43 = vld [vmem:[#allocation6 + $0x140] ss:$8 sps:$4 sm:$0xff]  }
 0x1ea   :  { %2566 = vmatprep.subr.bf16.mxu0 %v7055_v44  ;;  %v7076_v44 = vld [vmem:[#allocation6 + $0x154] ss:$8 sps:$4 sm:$0xff]  }
 0x1ed   :  { %2567 = vmatpush1.bf16.msra.mxu0 %v7053_v45  ;;  %v7074_v45 = vld [vmem:[#allocation6 + $0x150] ss:$8 sps:$4 sm:$0xff]  }
 0x1ee   :  { %2568 = vmatprep.subr.bf16.mxu0 %v7058_v46  ;;  %v7079_v46 = vld [vmem:[#allocation6 + $0x164] ss:$8 sps:$4 sm:$0xff]  }
 0x1f1   :  { %2569 = vmatpush1.bf16.msra.mxu0 %v7056_v47  ;;  %v7077_v47 = vld [vmem:[#allocation6 + $0x160] ss:$8 sps:$4 sm:$0xff]  }
 0x1f2   :  { %2581 = vmatprep.subr.bf16.mxu0 %v7061_v48  ;;  %v7082_v48 = vld [vmem:[#allocation6 + $0x174] ss:$8 sps:$4 sm:$0xff]  }
 0x287   :  { %v1949_v7 = vpop.f32.mrb[0].mxu0  ;;  %v2121_v8 = vpop.f32.mrb[0].mxu1 }
 0x288   :  { %v6535_v9 = vadd.f32 %v1949_v7, %v449_v3  ;;  %v6539_v10 = vadd.f32 %v2121_v8, %v457_v4  ;;  %v1951_v11 = vpop.f32.mrb[1].mxu0  ;;  %v2123_v12 = vpop.f32.mrb[1].mxu1  ;;  %v7118_v7 = vld [vmem:[%s7964_s6 + $0x28] sm:$0xff]   ;;  %v7119_v8 = vld [vmem:[%s7964_s6 + $0x70] sm:$0xff]  }
 0x289   :  { %v6536_v13 = vadd.f32 %v1951_v11, %v453_v5  ;;  %v6540_v16 = vadd.f32 %v2123_v12, %v461_v6  ;;  %v1953_v17 = vpop.f32.mrb[2].mxu0  ;;  %v2125_v18 = vpop.f32.mrb[2].mxu1  ;;  %6495 = vmatpush3.bf16.msra.mxu1 %v7118_v7  ;;  %v7122_v11 = vld [vmem:[%s7964_s6 + $0x38] sm:$0xff]   ;;  %v7125_v12 = vld [vmem:[#allocation9 + $0x4] ss:$8 sps:$4 sm:$0xff]  }
 0x28a   :  { %v6537_v21 = vadd.f32 %v1953_v17, %v449_v3  ;;  %v6541_v22 = vadd.f32 %v2125_v18, %v457_v4  ;;  %v1955_v23 = vpop.f32.mrb[3].mxu0  ;;  %v2127_v14 = vpop.f32.mrb[3].mxu1  ;;  %v2130_v25 = vmax.f32 %v6535_v9, 0.0  ;;  %v2132_v26 = vmax.f32 %v6539_v10, 0.0  ;;  %v7103_v3 = vld [vmem:[#allocation6 + $0x1e4] ss:$8 sps:$4 sm:$0xff]   ;;  %6496 = vmatprep.subr.bf16.mxu1 %v7119_v8 }
 0x28b   :  { %v6538_v15 = vadd.f32 %v1955_v23, %v453_v5  ;;  %v6542_v24 = vadd.f32 %v2127_v14, %v461_v6  ;;  %v2131_v27 = vmax.f32 %v6536_v13, 0.0  ;;  %v2133_v28 = vmax.f32 %v6540_v16, 0.0  ;;  %v7101_v4 = vld [vmem:[#allocation6 + $0x1e0] ss:$8 sps:$4 sm:$0xff]   ;;  %v7106_v5 = vld [vmem:[#allocation6 + $0x1f4] ss:$8 sps:$4 sm:$0xff]  }
 0x28c   :  { %v2134_v19 = vmax.f32 %v6537_v21, 0.0  ;;  %v2136_v20 = vmax.f32 %v6541_v22, 0.0  ;;  %v7104_v6 = vld [vmem:[#allocation6 + $0x1f0] ss:$8 sps:$4 sm:$0xff]   ;;  %v2206_v13 = vld [vmem:[%s7963_s5] sm:$0x3] }
 0x28d   :  { %v2135_v29 = vmax.f32 %v6538_v15, 0.0  ;;  %v2137_v30 = vmax.f32 %v6542_v24, 0.0  ;;  %v7120_v9 = vld [vmem:[%s7964_s6 + $0x30] sm:$0xff]   ;;  %v7121_v10 = vld [vmem:[%s7964_s6 + $0x78] sm:$0xff]   ;;  %v2211_v16 = vrot.slane %v2206_v13, %v7815_v62  ;;  %v2215_v17 = vrot.slane %v2206_v13, %v7821_v1 }
 0x28e   :  { %v2138_v31 = vpack.c.bf16 %v2134_v19, %v2130_v25  ;;  %v7830_v32 = vpack.c.bf16 %v2136_v20, %v2132_v26  ;;  %6497 = vmatpush3.bf16.msra.mxu1 %v7120_v9  ;;  %v7154_v7 = vld [vmem:[#allocation10 + $0x38] sm:$0xff]   ;;  %v7157_v8 = vld [vmem:[#allocation12 + $0x4] ss:$8 sps:$4 sm:$0xff]  }
 0x28f   :  { %v2139_v33 = vpack.c.bf16 %v2135_v29, %v2131_v27  ;;  %v2141_v34 = vpack.c.bf16 %v2137_v30, %v2133_v28  ;;  %6498 = vmatprep.subr.bf16.mxu1 %v7121_v10  ;;  %v7123_v30 = vld [vmem:[#allocation9] ss:$8 sps:$4 sm:$0xff]   ;;  %v2825_v9 = vld [vmem:[%s7967_s9] sm:$0x3] }
 0x290   :  { %v2830_v10 = vrot.slane %v2825_v9, %v7815_v62 }
 0x291   :  { %2570 = vmatprep.mubr.bf16.mxu0 %v2139_v33  ;;  %v7131_v33 = vld [vmem:[#allocation9 + $0x24] ss:$8 sps:$4 sm:$0xff]  }
 0x292   :  { %2571 = vmatmul.mubr.bf16.vlgmr.msra.gmra.mrb[4].mxu0 %v2138_v31  ;;  %6499 = vmatpush3.bf16.msra.mxu1 %v7122_v11  ;;  %v7128_v31 = vld [vmem:[#allocation9 + $0x14] ss:$8 sps:$4 sm:$0xff]   ;;  %v2834_v11 = vrot.slane %v2825_v9, %v7821_v1  ;;  %v7233_v9 = vld [vmem:[#allocation13 + $0x120] ss:$16 sps:$4 sm:$0xff]  }
 0x293   :  { %2582 = vmatpush1.bf16.msra.mxu0 %v7059_v35  ;;  %2613 = vmatprep.mubr.bf16.mxu0 %v2141_v34  ;;  %v7129_v34 = vld [vmem:[#allocation9 + $0x20] ss:$8 sps:$4 sm:$0xff]   ;;  %v7134_v35 = vld [vmem:[#allocation9 + $0x34] ss:$8 sps:$4 sm:$0xff]  }
 0x294   :  { %2583 = vmatprep.subr.bf16.mxu0 %v7064_v36  ;;  %2917 = vmatprep.subr.bf16.mxu1 %v7125_v12  ;;  %v7132_v36 = vld [vmem:[#allocation9 + $0x30] ss:$8 sps:$4 sm:$0xff]  }
 0x297   :  { %2584 = vmatpush1.bf16.msra.mxu0 %v7062_v37  ;;  %v7137_v37 = vld [vmem:[#allocation9 + $0x44] ss:$8 sps:$4 sm:$0xff]  }
 0x298   :  { %2585 = vmatprep.subr.bf16.mxu0 %v7067_v38  ;;  %v7135_v38 = vld [vmem:[#allocation9 + $0x40] ss:$8 sps:$4 sm:$0xff]  }
 0x29b   :  { %2586 = vmatpush1.bf16.msra.mxu0 %v7065_v39  ;;  %v7140_v39 = vld [vmem:[#allocation9 + $0x54] ss:$8 sps:$4 sm:$0xff]  }
 0x29c   :  { %2587 = vmatprep.subr.bf16.mxu0 %v7070_v40  ;;  %v7138_v40 = vld [vmem:[#allocation9 + $0x50] ss:$8 sps:$4 sm:$0xff]  }
 0x29f   :  { %2588 = vmatpush1.bf16.msra.mxu0 %v7068_v41  ;;  %v7143_v41 = vld [vmem:[#allocation9 + $0x64] ss:$8 sps:$4 sm:$0xff]  }
 0x2a0   :  { %2589 = vmatprep.subr.bf16.mxu0 %v7073_v42  ;;  %v7141_v42 = vld [vmem:[#allocation9 + $0x60] ss:$8 sps:$4 sm:$0xff]  }
 0x2a3   :  { %2590 = vmatpush1.bf16.msra.mxu0 %v7071_v43  ;;  %v7146_v43 = vld [vmem:[#allocation9 + $0x74] ss:$8 sps:$4 sm:$0xff]  }
 0x2a4   :  { %2591 = vmatprep.subr.bf16.mxu0 %v7076_v44  ;;  %v7144_v44 = vld [vmem:[#allocation9 + $0x70] ss:$8 sps:$4 sm:$0xff]  }
 0x2a7   :  { %2592 = vmatpush1.bf16.msra.mxu0 %v7074_v45  ;;  %v7504_v45 = vmov 0  }
 0x2a8   :  { %2593 = vmatprep.subr.bf16.mxu0 %v7079_v46  ;;  %v7505_v46 = vmov 0.0  }
 0x2ab   :  { %2594 = vmatpush1.bf16.msra.mxu0 %v7077_v47 }
 0x2ac   :  { %2595 = vmatprep.subr.bf16.mxu0 %v7082_v48  ;;  %v6090_v48 = vld [vmem:[#allocation7] ss:$0 sm:$0xff] }
 0x2af   :  { %2596 = vmatpush1.bf16.msra.mxu0 %v7080_v49 }
 0x2b0   :  { %2597 = vmatprep.subr.bf16.mxu0 %v7085_v50 }
 0x2b3   :  { %2598 = vmatpush1.bf16.msra.mxu0 %v7083_v51 }
 0x2b4   :  { %2599 = vmatprep.subr.bf16.mxu0 %v7088_v52 }
 0x2b7   :  { %2600 = vmatpush1.bf16.msra.mxu0 %v7086_v53 }
 0x2b8   :  { %2601 = vmatprep.subr.bf16.mxu0 %v7091_v54 }
 0x2bb   :  { %2602 = vmatpush1.bf16.msra.mxu0 %v7089_v55 }
 0x2bc   :  { %2603 = vmatprep.subr.bf16.mxu0 %v7094_v56 }
 0x2bf   :  { %2604 = vmatpush1.bf16.msra.mxu0 %v7092_v57 }
 0x2c0   :  { %2605 = vmatprep.subr.bf16.mxu0 %v7097_v58  ;;  %v7147_v58 = vld [vmem:[#allocation10] sm:$0xff]  }
 0x2c3   :  { %2606 = vmatpush1.bf16.msra.mxu0 %v7095_v59 }
 0x2c4   :  { %2607 = vmatprep.subr.bf16.mxu0 %v7100_v60  ;;  %v7148_v60 = vld [vmem:[#allocation10 + $0x8] sm:$0xff]  }
 0x2c7   :  { %2608 = vmatpush1.bf16.msra.mxu0 %v7098_v0  ;;  %v7149_v0 = vld [vmem:[#allocation10 + $0x10] sm:$0xff]  }
 0x2c8   :  { %2609 = vmatprep.subr.bf16.mxu0 %v7103_v3  ;;  %v7150_v3 = vld [vmem:[#allocation10 + $0x18] sm:$0xff]  }
 0x2cb   :  { %2610 = vmatpush1.bf16.msra.mxu0 %v7101_v4  ;;  %v7151_v4 = vld [vmem:[#allocation10 + $0x20] sm:$0xff]  }
 0x2cc   :  { %2611 = vmatprep.subr.bf16.mxu0 %v7106_v5  ;;  %v7152_v5 = vld [vmem:[#allocation10 + $0x28] sm:$0xff]  }
 0x2cf   :  { %2612 = vmatpush1.bf16.msra.mxu0 %v7104_v6  ;;  %v7153_v6 = vld [vmem:[#allocation10 + $0x30] sm:$0xff]  }
 0x2d2   :  { %2614 = vmatmul.mubr.bf16.vlgmr.msra.gmra.mrb[4].mxu0 %v7830_v32  ;;  %v7126_v32 = vld [vmem:[#allocation9 + $0x10] ss:$8 sps:$4 sm:$0xff]  }
 0x3a5   :  { %v2615_v18 = vpop.f32.mrb[4].mxu0 }
 0x3a6   :  { %v6543_v21 = vadd.f32 %v2615_v18, %v2211_v16  ;;  %v2617_v22 = vpop.f32.mrb[5].mxu0 }
 0x3a7   :  { %v6544_v23 = vadd.f32 %v2617_v22, %v2215_v17  ;;  %v2619_v14 = vpop.f32.mrb[6].mxu0 }
 0x3a8   :  { %v6545_v15 = vadd.f32 %v2619_v14, %v2211_v16  ;;  %v2621_v24 = vpop.f32.mrb[7].mxu0  ;;  %v2624_v26 = vmax.f32 %v6543_v21, 0.0 }
 0x3a9   :  { %v6546_v25 = vadd.f32 %v2621_v24, %v2215_v17  ;;  %v2625_v20 = vmax.f32 %v6544_v23, 0.0 }
 0x3aa   :  { %v2626_v19 = vmax.f32 %v6545_v15, 0.0 }
 0x3ab   :  { %v2627_v27 = vmax.f32 %v6546_v25, 0.0 }
 0x3ac   :  { %v2628_v28 = vpack.c.bf16 %v2626_v19, %v2624_v26  ;;  %v2966_v26 = vld [vmem:[%s7989_s7] sm:$0xff] }
 0x3ad   :  { %v2629_v29 = vpack.c.bf16 %v2627_v27, %v2625_v20  ;;  %v2967_v20 = vld [vmem:[%s7989_s7 + $0x8] sm:$0xff] }
 0x3af   :  { %2797 = vmatprep.mubr.bf16.mxu1 %v2629_v29 }
 0x3b0   :  { %2798 = vmatmul.mubr.bf16.vlgmr.msra.gmra.mrb[4].mxu1 %v2628_v28 }
 0x3b1   :  { %2918 = vmatpush1.bf16.msra.mxu1 %v7123_v30  ;;  %2949 = vmatprep.mubr.bf16.mxu1 %v7504_v45 }
 0x3b2   :  { %2919 = vmatprep.subr.bf16.mxu1 %v7128_v31 }
 0x3b5   :  { %2920 = vmatpush1.bf16.msra.mxu1 %v7126_v32  ;;  %v7155_v32 = vld [vmem:[#allocation12] ss:$8 sps:$4 sm:$0xff]  }
 0x3b6   :  { %2921 = vmatprep.subr.bf16.mxu1 %v7131_v33 }
 0x3b9   :  { %2922 = vmatpush1.bf16.msra.mxu1 %v7129_v34  ;;  %v7160_v34 = vld [vmem:[#allocation12 + $0x14] ss:$8 sps:$4 sm:$0xff]  }
 0x3ba   :  { %2923 = vmatprep.subr.bf16.mxu1 %v7134_v35  ;;  %v7158_v35 = vld [vmem:[#allocation12 + $0x10] ss:$8 sps:$4 sm:$0xff]  }
 0x3bd   :  { %2924 = vmatpush1.bf16.msra.mxu1 %v7132_v36  ;;  %v7163_v36 = vld [vmem:[#allocation12 + $0x24] ss:$8 sps:$4 sm:$0xff]  }
 0x3be   :  { %2925 = vmatprep.subr.bf16.mxu1 %v7137_v37  ;;  %v7161_v37 = vld [vmem:[#allocation12 + $0x20] ss:$8 sps:$4 sm:$0xff]  }
 0x3c1   :  { %2926 = vmatpush1.bf16.msra.mxu1 %v7135_v38  ;;  %v7166_v38 = vld [vmem:[#allocation12 + $0x34] ss:$8 sps:$4 sm:$0xff]  }
 0x3c2   :  { %2927 = vmatprep.subr.bf16.mxu1 %v7140_v39  ;;  %v7164_v39 = vld [vmem:[#allocation12 + $0x30] ss:$8 sps:$4 sm:$0xff]  }
 0x3c5   :  { %2928 = vmatpush1.bf16.msra.mxu1 %v7138_v40  ;;  %v7169_v40 = vld [vmem:[#allocation12 + $0x44] ss:$8 sps:$4 sm:$0xff]  }
 0x3c6   :  { %2929 = vmatprep.subr.bf16.mxu1 %v7143_v41  ;;  %v7167_v41 = vld [vmem:[#allocation12 + $0x40] ss:$8 sps:$4 sm:$0xff]  }
 0x3c9   :  { %2930 = vmatpush1.bf16.msra.mxu1 %v7141_v42  ;;  %v7172_v42 = vld [vmem:[#allocation12 + $0x54] ss:$8 sps:$4 sm:$0xff]  }
 0x3ca   :  { %2931 = vmatprep.subr.bf16.mxu1 %v7146_v43  ;;  %v7170_v43 = vld [vmem:[#allocation12 + $0x50] ss:$8 sps:$4 sm:$0xff]  }
 0x3cd   :  { %2932 = vmatpush1.bf16.msra.mxu1 %v7144_v44  ;;  %v7175_v44 = vld [vmem:[#allocation12 + $0x64] ss:$8 sps:$4 sm:$0xff]  }
 0x3ce   :  { %6515 = vmatprep.subr.bf16.mxu1 %v7505_v46 }
 0x483   :  { %v6500_v47 = vpop.f32.mrb[4].mxu1 }
 0x484   :  { %v6501_v49 = vpop.f32.mrb[5].mxu1 }
 0x485   :  { %v6502_v50 = vadd.f32 %v6501_v49, %v6500_v47  ;;  %v6503_v51 = vpop.f32.mrb[6].mxu1  ;;  %v7176_v47 = vld [vmem:[#allocation12 + $0x70] ss:$8 sps:$4 sm:$0xff]   ;;  %v7181_v49 = vld [vmem:[#allocation13 + $0x4] ss:$16 sps:$4 sm:$0xff]  }
 0x486   :  { %v6504_v52 = vpop.f32.mrb[7].mxu1  ;;  %3651 = vmatprep.subr.bf16.mxu0 %v7181_v49  ;;  %v7250_v49 = vld [vmem:[#allocation13 + $0x16c] ss:$16 sps:$4 sm:$0xff]  }
 0x487   :  { %v2800_v53 = vadd.f32 %v6502_v50, %v6090_v48  ;;  %v6505_v54 = vadd.f32 %v6504_v52, %v6503_v51  ;;  %v7184_v50 = vld [vmem:[#allocation13 + $0xc] ss:$16 sps:$4 sm:$0xff]   ;;  %v7187_v51 = vld [vmem:[#allocation13 + $0x24] ss:$16 sps:$4 sm:$0xff]   ;;  %v7185_v52 = vld [vmem:[#allocation13 + $0x20] ss:$16 sps:$4 sm:$0xff]  }
 0x489   :  { %v2803_v55 = vadd.f32 %v6505_v54, %v6090_v48  ;;  %v2806_v56 = vmax.f32 %v2800_v53, 0.0  ;;  %v7179_v48 = vld [vmem:[#allocation13] ss:$16 sps:$4 sm:$0xff]   ;;  %v7193_v53 = vld [vmem:[#allocation13 + $0x44] ss:$16 sps:$4 sm:$0xff]  }
 0x48a   :  { %3652 = vmatpush1.bf16.msra.mxu0 %v7179_v48  ;;  %v7191_v54 = vld [vmem:[#allocation13 + $0x40] ss:$16 sps:$4 sm:$0xff]   ;;  %v7242_v48 = vld [vmem:[#allocation13 + $0x148] ss:$16 sps:$4 sm:$0xff]  }
 0x48b   :  { %v2807_v57 = vmax.f32 %v2803_v55, 0.0  ;;  %3653 = vmatprep.subr.bf16.mxu0 %v7187_v51  ;;  %v7199_v55 = vld [vmem:[#allocation13 + $0x64] ss:$16 sps:$4 sm:$0xff]   ;;  %v7256_v51 = vld [vmem:[#allocation13 + $0x18c] ss:$16 sps:$4 sm:$0xff]  }
 0x48d   :  { %v2808_v59 = vpack.c.bf16 %v2807_v57, %v2806_v56  ;;  %v7197_v56 = vld [vmem:[#allocation13 + $0x60] ss:$16 sps:$4 sm:$0xff]   ;;  %v7205_v57 = vld [vmem:[#allocation13 + $0x84] ss:$16 sps:$4 sm:$0xff]  }
 0x48e   :  { %3654 = vmatpush1.bf16.msra.mxu0 %v7185_v52  ;;  %v7254_v52 = vld [vmem:[#allocation13 + $0x188] ss:$16 sps:$4 sm:$0xff]  }
 0x48f   :  { %2950 = vmatmul.mubr.bf16.vlgmr.msra.gmra.mrb[8].mxu1 %v2808_v59  ;;  %3655 = vmatprep.subr.bf16.mxu0 %v7193_v53  ;;  %v7211_v59 = vld [vmem:[#allocation13 + $0xa4] ss:$16 sps:$4 sm:$0xff]   ;;  %v7262_v53 = vld [vmem:[#allocation13 + $0x1ac] ss:$16 sps:$4 sm:$0xff]  }
 0x490   :  { %6516 = vmatpush3.bf16.msra.mxu1 %v7147_v58  ;;  %6531 = vmatprep.mubr.msk.bf16.mxu1 %vm7506_vm0, %v7505_v46  ;;  %v7203_v58 = vld [vmem:[#allocation13 + $0x80] ss:$16 sps:$4 sm:$0xff]  }
 0x491   :  { %6517 = vmatprep.subr.bf16.mxu1 %v7505_v46 }
 0x492   :  { %3656 = vmatpush1.bf16.msra.mxu0 %v7191_v54  ;;  %v7260_v54 = vld [vmem:[#allocation13 + $0x1a8] ss:$16 sps:$4 sm:$0xff]  }
 0x493   :  { %3657 = vmatprep.subr.bf16.mxu0 %v7199_v55  ;;  %v7265_v55 = vld [vmem:[#allocation13 + $0x1c4] ss:$16 sps:$4 sm:$0xff]  }
 0x494   :  { %6518 = vmatpush3.bf16.msra.mxu1 %v7148_v60  ;;  %v7209_v60 = vld [vmem:[#allocation13 + $0xa0] ss:$16 sps:$4 sm:$0xff]  }
 0x495   :  { %6519 = vmatprep.subr.bf16.mxu1 %v7505_v46 }
 0x496   :  { %3658 = vmatpush1.bf16.msra.mxu0 %v7197_v56  ;;  %v7268_v56 = vld [vmem:[#allocation13 + $0x1cc] ss:$16 sps:$4 sm:$0xff]  }
 0x497   :  { %3659 = vmatprep.subr.bf16.mxu0 %v7205_v57  ;;  %v7263_v57 = vld [vmem:[#allocation13 + $0x1c0] ss:$16 sps:$4 sm:$0xff]  }
 0x498   :  { %6520 = vmatpush3.bf16.msra.mxu1 %v7149_v0  ;;  %v7217_v0 = vld [vmem:[#allocation13 + $0xc4] ss:$16 sps:$4 sm:$0xff]  }
 0x499   :  { %6521 = vmatprep.subr.bf16.mxu1 %v7505_v46 }
 0x49a   :  { %3660 = vmatpush1.bf16.msra.mxu0 %v7203_v58  ;;  %v7266_v58 = vld [vmem:[#allocation13 + $0x1c8] ss:$16 sps:$4 sm:$0xff]  }
 0x49b   :  { %3661 = vmatprep.subr.bf16.mxu0 %v7211_v59  ;;  %v7271_v59 = vld [vmem:[#allocation13 + $0x1e4] ss:$16 sps:$4 sm:$0xff]  }
 0x49c   :  { %6522 = vmatpush3.bf16.msra.mxu1 %v7150_v3  ;;  %v7215_v3 = vld [vmem:[#allocation13 + $0xc0] ss:$16 sps:$4 sm:$0xff]  }
 0x49d   :  { %6523 = vmatprep.subr.bf16.mxu1 %v7505_v46 }
 0x49e   :  { %3662 = vmatpush1.bf16.msra.mxu0 %v7209_v60  ;;  %v7274_v60 = vld [vmem:[#allocation13 + $0x1ec] ss:$16 sps:$4 sm:$0xff]  }
 0x49f   :  { %3663 = vmatprep.subr.bf16.mxu0 %v7217_v0  ;;  %v7269_v0 = vld [vmem:[#allocation13 + $0x1e0] ss:$16 sps:$4 sm:$0xff]  }
 0x4a0   :  { %6524 = vmatpush3.bf16.msra.mxu1 %v7151_v4  ;;  %v7223_v4 = vld [vmem:[#allocation13 + $0xe4] ss:$16 sps:$4 sm:$0xff]  }
 0x4a1   :  { %6525 = vmatprep.subr.bf16.mxu1 %v7505_v46 }
 0x4a2   :  { %3664 = vmatpush1.bf16.msra.mxu0 %v7215_v3  ;;  %v7272_v3 = vld [vmem:[#allocation13 + $0x1e8] ss:$16 sps:$4 sm:$0xff]  }
 0x4a3   :  { %3665 = vmatprep.subr.bf16.mxu0 %v7223_v4  ;;  %v3749_v4 = vld [vmem:[#allocation15] sm:$0xff] }
 0x4a4   :  { %6526 = vmatpush3.bf16.msra.mxu1 %v7152_v5  ;;  %v7221_v5 = vld [vmem:[#allocation13 + $0xe0] ss:$16 sps:$4 sm:$0xff]  }
 0x4a5   :  { %6527 = vmatprep.subr.bf16.mxu1 %v7505_v46 }
 0x4a6   :  { %3666 = vmatpush1.bf16.msra.mxu0 %v7221_v5  ;;  %v3753_v5 = vld [vmem:[#allocation15 + $0x20] sm:$0xff] }
 0x4a8   :  { %6528 = vmatpush3.bf16.msra.mxu1 %v7153_v6  ;;  %v7229_v6 = vld [vmem:[#allocation13 + $0x104] ss:$16 sps:$4 sm:$0xff]  }
 0x4a9   :  { %6529 = vmatprep.subr.bf16.mxu1 %v7505_v46  ;;  %v7178_v46 = vld [vmem:[#allocation12 + $0x74] ss:$8 sps:$4 sm:$0xff]   ;;  %3667 = vmatprep.subr.bf16.mxu0 %v7229_v6  ;;  %v3750_v6 = vld [vmem:[#allocation15 + $0x8] sm:$0xff] }
 0x4ac   :  { %6530 = vmatpush3.bf16.msra.mxu1 %v7154_v7  ;;  %v7227_v7 = vld [vmem:[#allocation13 + $0x100] ss:$16 sps:$4 sm:$0xff]  }
 0x4ad   :  { %3196 = vmatprep.subr.bf16.mxu1 %v7157_v8  ;;  %v7235_v8 = vld [vmem:[#allocation13 + $0x124] ss:$16 sps:$4 sm:$0xff]   ;;  %3668 = vmatpush1.bf16.msra.mxu0 %v7227_v7  ;;  %v6212_v7 = vcombine.low %v3749_v4, %v3753_v5 }
 0x4ae   :  { %3669 = vmatprep.subr.bf16.mxu0 %v7235_v8  ;;  %v6213_v8 = vcombine.high %v3749_v4, %v3753_v5 }
 0x4b1   :  { %3670 = vmatpush1.bf16.msra.mxu0 %v7233_v9  ;;  %v3754_v9 = vld [vmem:[#allocation15 + $0x28] sm:$0xff] }
 0x562   :  { %v2951_v12 = vpop.f32.mrb[8].mxu1 }
 0x563   :  { %v2952_v13 = vadd.f32 %v2951_v12, %v2830_v10  ;;  %v2953_v16 = vpop.f32.mrb[9].mxu1  ;;  %v7247_v12 = vld [vmem:[#allocation13 + $0x164] ss:$16 sps:$4 sm:$0xff]  }
 0x564   :  { %v2954_v17 = vadd.f32 %v2953_v16, %v2834_v11  ;;  %v2955_v18 = vpop.f32.mrb[10].mxu1  ;;  %v7253_v16 = vld [vmem:[#allocation13 + $0x184] ss:$16 sps:$4 sm:$0xff]  }
 0x565   :  { %5688 = vst [vmem:[%s7976_s18 + $0x8] sm:$0xff] %v2952_v13  ;;  %v2956_v21 = vadd.f32 %v2955_v18, %v2830_v10  ;;  %v2957_v22 = vpop.f32.mrb[11].mxu1  ;;  %v7241_v10 = vld [vmem:[#allocation13 + $0x144] ss:$16 sps:$4 sm:$0xff]  }
 0x566   :  { %v2960_v23 = vmul.f32 0.5, %v2954_v17  ;;  %5689 = vst [vmem:[%s7976_s18 + $0x10] sm:$0xff] %v2954_v17  ;;  %v2958_v14 = vadd.f32 %v2957_v22, %v2834_v11  ;;  %v7239_v11 = vld [vmem:[#allocation13 + $0x140] ss:$16 sps:$4 sm:$0xff]   ;;  %3671 = vmatprep.subr.bf16.mxu0 %v7241_v10  ;;  %v7259_v18 = vld [vmem:[#allocation13 + $0x1a4] ss:$16 sps:$4 sm:$0xff]   ;;  %v6214_v10 = vcombine.low %v3750_v6, %v3754_v9 }
 0x567   :  { %5691 = vst [vmem:[%s7976_s18 + $0x20] sm:$0xff] %v2956_v21  ;;  %3672 = vmatpush1.bf16.msra.mxu0 %v7239_v11  ;;  %v7251_v17 = vld [vmem:[#allocation13 + $0x180] ss:$16 sps:$4 sm:$0xff]   ;;  %v6123_v22 = vld [vmem:[%s7969_s11] ss:$0 sm:$0xff]  ;;  %v6215_v11 = vcombine.high %v3750_v6, %v3754_v9 }
 0x568   :  { %v2962_v15 = vmul.f32 1.442695, %v2960_v23  ;;  %v2961_v24 = vmul.f32 0.5, %v2958_v14  ;;  %5692 = vst [vmem:[%s7976_s18 + $0x28] sm:$0xff] %v2958_v14  ;;  %3673 = vmatprep.subr.bf16.mxu0 %v7247_v12  ;;  %v3104_v12 = vld [vmem:[%s7971_s13] sm:$0x3] }
 0x569   :  { %v3801_v9 = vld [vmem:[#allocation15 + $0x1a0] sm:$0xff] }
 0x56a   :  { %7275 = vpow2.f32 %v2962_v15  ;;  %v2964_v25 = vmul.f32 1.442695, %v2961_v24 }
 0x56c   :  { %7277 = vpow2.f32 %v2964_v25 }
 0x574   :  { %v7276_v19 = vpop.eup %7275 }
 0x575   :  { %v2968_v27 = vmul.f32 %v7276_v19, %v2966_v26 }
 0x576   :  { %v7278_v28 = vpop.eup %7277 }
 0x577   :  { %v2969_v29 = vmul.f32 %v7278_v28, %v2967_v20  ;;  %v2970_v30 = vadd.f32 %v2968_v27, %v2952_v13  ;;  %v7245_v13 = vld [vmem:[#allocation13 + $0x160] ss:$16 sps:$4 sm:$0xff]   ;;  %v7182_v27 = vld [vmem:[#allocation13 + $0x8] ss:$16 sps:$4 sm:$0xff]  }
 0x578   :  { %3674 = vmatpush1.bf16.msra.mxu0 %v7245_v13  ;;  %v3109_v13 = vrot.slane %v3104_v12, %v7815_v62 }
 0x579   :  { %v2971_v31 = vadd.f32 %v2969_v29, %v2956_v21  ;;  %5687 = vst [vmem:[%s7976_s18] sm:$0xff] %v2970_v30  ;;  %3675 = vmatprep.subr.bf16.mxu0 %v7253_v16  ;;  %v7257_v21 = vld [vmem:[#allocation13 + $0x1a0] ss:$16 sps:$4 sm:$0xff]   ;;  %v7190_v29 = vld [vmem:[#allocation13 + $0x2c] ss:$16 sps:$4 sm:$0xff]   ;;  %v3113_v16 = vrot.slane %v3104_v12, %v7821_v1 }
 0x57b   :  { %v2972_v33 = vpack.c.bf16 %v2971_v31, %v2970_v30  ;;  %5690 = vst [vmem:[%s7976_s18 + $0x18] sm:$0xff] %v2971_v31  ;;  %v7188_v30 = vld [vmem:[#allocation13 + $0x28] ss:$16 sps:$4 sm:$0xff]   ;;  %v7196_v31 = vld [vmem:[#allocation13 + $0x4c] ss:$16 sps:$4 sm:$0xff]  }
 0x57c   :  { %3676 = vmatpush1.bf16.msra.mxu0 %v7251_v17 }
 0x57d   :  { %6532 = vmatmul.mubr.bf16.vlgmr.msra.gmra.mrb[12].mxu1 %v2972_v33  ;;  %3677 = vmatprep.subr.bf16.mxu0 %v7259_v18  ;;  %v7202_v33 = vld [vmem:[#allocation13 + $0x6c] ss:$16 sps:$4 sm:$0xff]  }
 0x57e   :  { %3197 = vmatpush1.bf16.msra.mxu1 %v7155_v32  ;;  %3228 = vmatprep.mubr.bf16.mxu1 %v7504_v45  ;;  %v7173_v45 = vld [vmem:[#allocation12 + $0x60] ss:$8 sps:$4 sm:$0xff]  }
 0x57f   :  { %3198 = vmatprep.subr.bf16.mxu1 %v7160_v34  ;;  %v7194_v32 = vld [vmem:[#allocation13 + $0x48] ss:$16 sps:$4 sm:$0xff]  }
 0x580   :  { %3678 = vmatpush1.bf16.msra.mxu0 %v7257_v21  ;;  %v7200_v34 = vld [vmem:[#allocation13 + $0x68] ss:$16 sps:$4 sm:$0xff]  }
 0x581   :  { %3679 = vmatprep.subr.bf16.mxu0 %v7265_v55 }
 0x582   :  { %3199 = vmatpush1.bf16.msra.mxu1 %v7158_v35  ;;  %v7208_v35 = vld [vmem:[#allocation13 + $0x8c] ss:$16 sps:$4 sm:$0xff]  }
 0x583   :  { %3200 = vmatprep.subr.bf16.mxu1 %v7163_v36  ;;  %v7206_v36 = vld [vmem:[#allocation13 + $0x88] ss:$16 sps:$4 sm:$0xff]  }
 0x584   :  { %3680 = vmatpush1.bf16.msra.mxu0 %v7263_v57 }
 0x585   :  { %3681 = vmatprep.subr.bf16.mxu0 %v7271_v59  ;;  %v3789_v59 = vld [vmem:[#allocation15 + $0x140] sm:$0xff] }
 0x586   :  { %3201 = vmatpush1.bf16.msra.mxu1 %v7161_v37  ;;  %v7214_v37 = vld [vmem:[#allocation13 + $0xac] ss:$16 sps:$4 sm:$0xff]  }
 0x587   :  { %3202 = vmatprep.subr.bf16.mxu1 %v7166_v38  ;;  %v7212_v38 = vld [vmem:[#allocation13 + $0xa8] ss:$16 sps:$4 sm:$0xff]  }
 0x588   :  { %3682 = vmatpush1.bf16.msra.mxu0 %v7269_v0  ;;  %v3790_v0 = vld [vmem:[#allocation15 + $0x148] sm:$0xff] }
 0x589   :  { %5327 = vmatprep.subr.bf16.mxu0 %v6213_v8  ;;  %v3797_v8 = vld [vmem:[#allocation15 + $0x180] sm:$0xff] }
 0x58a   :  { %3203 = vmatpush1.bf16.msra.mxu1 %v7164_v39  ;;  %v7220_v39 = vld [vmem:[#allocation13 + $0xcc] ss:$16 sps:$4 sm:$0xff]  }
 0x58b   :  { %3204 = vmatprep.subr.bf16.mxu1 %v7169_v40  ;;  %v7218_v40 = vld [vmem:[#allocation13 + $0xc8] ss:$16 sps:$4 sm:$0xff]  }
 0x58e   :  { %3205 = vmatpush1.bf16.msra.mxu1 %v7167_v41  ;;  %v7226_v41 = vld [vmem:[#allocation13 + $0xec] ss:$16 sps:$4 sm:$0xff]  }
 0x58f   :  { %3206 = vmatprep.subr.bf16.mxu1 %v7172_v42  ;;  %v7224_v42 = vld [vmem:[#allocation13 + $0xe8] ss:$16 sps:$4 sm:$0xff]  }
 0x592   :  { %3207 = vmatpush1.bf16.msra.mxu1 %v7170_v43  ;;  %v7232_v43 = vld [vmem:[#allocation13 + $0x10c] ss:$16 sps:$4 sm:$0xff]  }
 0x593   :  { %3208 = vmatprep.subr.bf16.mxu1 %v7175_v44  ;;  %v7230_v44 = vld [vmem:[#allocation13 + $0x108] ss:$16 sps:$4 sm:$0xff]  }
 0x596   :  { %3209 = vmatpush1.bf16.msra.mxu1 %v7173_v45  ;;  %v7238_v45 = vld [vmem:[#allocation13 + $0x12c] ss:$16 sps:$4 sm:$0xff]  }
 0x597   :  { %3210 = vmatprep.subr.bf16.mxu1 %v7178_v46  ;;  %v7236_v46 = vld [vmem:[#allocation13 + $0x128] ss:$16 sps:$4 sm:$0xff]  }
 0x59a   :  { %3211 = vmatpush1.bf16.msra.mxu1 %v7176_v47  ;;  %v7244_v47 = vld [vmem:[#allocation13 + $0x14c] ss:$16 sps:$4 sm:$0xff]  }
 0x59b   :  { %3694 = vmatprep.subr.bf16.mxu1 %v7184_v50  ;;  %v7248_v50 = vld [vmem:[#allocation13 + $0x168] ss:$16 sps:$4 sm:$0xff]  }
 0x650   :  { %v3078_v23 = vpop.f32.mrb[12].mxu1 }
 0x651   :  { %v3079_v14 = vadd.f32 %v6123_v22, %v3078_v23  ;;  %v6533_v15 = vpop.f32.mrb[13].mxu1 }
 0x652   :  { %v3081_v24 = vpop.f32.mrb[14].mxu1 }
 0x653   :  { %v3082_v25 = vadd.f32 %v6123_v22, %v3081_v24  ;;  %v6534_v26 = vpop.f32.mrb[15].mxu1  ;;  %v3085_v19 = vmax.f32 %v3079_v14, 0.0 }
 0x655   :  { %v3086_v20 = vmax.f32 %v3082_v25, 0.0 }
 0x657   :  { %v3087_v28 = vpack.c.bf16 %v3086_v20, %v3085_v19  ;;  %v3757_v19 = vld [vmem:[#allocation15 + $0x40] sm:$0xff] }
 0x659   :  { %3229 = vmatmul.mubr.bf16.vlgmr.msra.gmra.mrb[16].mxu1 %v3087_v28  ;;  %v3761_v28 = vld [vmem:[#allocation15 + $0x60] sm:$0xff] }
 0x65a   :  { %3695 = vmatpush1.bf16.msra.mxu1 %v7182_v27 }
 0x65b   :  { %3696 = vmatprep.subr.bf16.mxu1 %v7190_v29  ;;  %v3758_v29 = vld [vmem:[#allocation15 + $0x48] sm:$0xff] }
 0x65e   :  { %3697 = vmatpush1.bf16.msra.mxu1 %v7188_v30  ;;  %v3762_v30 = vld [vmem:[#allocation15 + $0x68] sm:$0xff] }
 0x65f   :  { %3698 = vmatprep.subr.bf16.mxu1 %v7196_v31 }
 0x662   :  { %3699 = vmatpush1.bf16.msra.mxu1 %v7194_v32 }
 0x663   :  { %3700 = vmatprep.subr.bf16.mxu1 %v7202_v33  ;;  %v6221_v33 = vcombine.high %v3757_v19, %v3761_v28 }
 0x666   :  { %3701 = vmatpush1.bf16.msra.mxu1 %v7200_v34  ;;  %v6223_v34 = vcombine.high %v3758_v29, %v3762_v30 }
 0x667   :  { %3702 = vmatprep.subr.bf16.mxu1 %v7208_v35  ;;  %v3765_v35 = vld [vmem:[#allocation15 + $0x80] sm:$0xff] }
 0x66a   :  { %3703 = vmatpush1.bf16.msra.mxu1 %v7206_v36  ;;  %v3769_v36 = vld [vmem:[#allocation15 + $0xa0] sm:$0xff] }
 0x66b   :  { %3704 = vmatprep.subr.bf16.mxu1 %v7214_v37  ;;  %v3766_v37 = vld [vmem:[#allocation15 + $0x88] sm:$0xff] }
 0x66e   :  { %3705 = vmatpush1.bf16.msra.mxu1 %v7212_v38  ;;  %v3770_v38 = vld [vmem:[#allocation15 + $0xa8] sm:$0xff] }
 0x66f   :  { %3706 = vmatprep.subr.bf16.mxu1 %v7220_v39  ;;  %v6220_v39 = vcombine.low %v3757_v19, %v3761_v28  ;;  %v3817_v19 = vld [vmem:[#allocation15 + $0x220] sm:$0xff] }
 0x672   :  { %3707 = vmatpush1.bf16.msra.mxu1 %v7218_v40  ;;  %v6222_v40 = vcombine.low %v3758_v29, %v3762_v30 }
 0x673   :  { %3708 = vmatprep.subr.bf16.mxu1 %v7226_v41  ;;  %v6229_v41 = vcombine.high %v3765_v35, %v3769_v36 }
 0x676   :  { %3709 = vmatpush1.bf16.msra.mxu1 %v7224_v42  ;;  %v6231_v42 = vcombine.high %v3766_v37, %v3770_v38 }
 0x677   :  { %3710 = vmatprep.subr.bf16.mxu1 %v7232_v43  ;;  %v3773_v43 = vld [vmem:[#allocation15 + $0xc0] sm:$0xff] }
 0x67a   :  { %3711 = vmatpush1.bf16.msra.mxu1 %v7230_v44  ;;  %v3777_v44 = vld [vmem:[#allocation15 + $0xe0] sm:$0xff] }
 0x67b   :  { %3712 = vmatprep.subr.bf16.mxu1 %v7238_v45  ;;  %v3774_v45 = vld [vmem:[#allocation15 + $0xc8] sm:$0xff]  ;;  %v6236_v55 = vcombine.low %v3773_v43, %v3777_v44 }
 0x67e   :  { %3713 = vmatpush1.bf16.msra.mxu1 %v7236_v46  ;;  %v3778_v46 = vld [vmem:[#allocation15 + $0xe8] sm:$0xff] }
 0x67f   :  { %3714 = vmatprep.subr.bf16.mxu1 %v7244_v47  ;;  %v6228_v47 = vcombine.low %v3765_v35, %v3769_v36  ;;  %v3826_v35 = vld [vmem:[#allocation15 + $0x268] sm:$0xff] }
 0x682   :  { %3715 = vmatpush1.bf16.msra.mxu1 %v7242_v48  ;;  %v6230_v48 = vcombine.low %v3766_v37, %v3770_v38 }
 0x683   :  { %3716 = vmatprep.subr.bf16.mxu1 %v7250_v49  ;;  %v6237_v49 = vcombine.high %v3773_v43, %v3777_v44  ;;  %v3834_v43 = vld [vmem:[#allocation15 + $0x2a8] sm:$0xff] }
 0x686   :  { %3717 = vmatpush1.bf16.msra.mxu1 %v7248_v50  ;;  %v6239_v50 = vcombine.high %v3774_v45, %v3778_v46 }
 0x687   :  { %3718 = vmatprep.subr.bf16.mxu1 %v7256_v51  ;;  %v3781_v51 = vld [vmem:[#allocation15 + $0x100] sm:$0xff] }
 0x68a   :  { %3719 = vmatpush1.bf16.msra.mxu1 %v7254_v52  ;;  %v3785_v52 = vld [vmem:[#allocation15 + $0x120] sm:$0xff] }
 0x68b   :  { %3720 = vmatprep.subr.bf16.mxu1 %v7262_v53  ;;  %v3782_v53 = vld [vmem:[#allocation15 + $0x108] sm:$0xff]  ;;  %v6245_v57 = vcombine.high %v3781_v51, %v3785_v52  ;;  %v6244_v4 = vcombine.low %v3781_v51, %v3785_v52 }
 0x68c   :  { %v3842_v51 = vld [vmem:[#allocation15 + $0x2e8] sm:$0xff] }
 0x68e   :  { %3721 = vmatpush1.bf16.msra.mxu1 %v7260_v54  ;;  %v3786_v54 = vld [vmem:[#allocation15 + $0x128] sm:$0xff] }
 0x68f   :  { %3722 = vmatprep.subr.bf16.mxu1 %v7268_v56  ;;  %v6238_v56 = vcombine.low %v3774_v45, %v3778_v46  ;;  %v6246_v5 = vcombine.low %v3782_v53, %v3786_v54 }
 0x692   :  { %3723 = vmatpush1.bf16.msra.mxu1 %v7266_v58  ;;  %v6247_v58 = vcombine.high %v3782_v53, %v3786_v54 }
 0x693   :  { %3724 = vmatprep.subr.bf16.mxu1 %v7274_v60  ;;  %v3793_v60 = vld [vmem:[#allocation15 + $0x160] sm:$0xff] }
 0x694   :  { %v6253_v6 = vcombine.high %v3789_v59, %v3793_v60  ;;  %v6252_v12 = vcombine.low %v3789_v59, %v3793_v60  ;;  %v3850_v59 = vld [vmem:[#allocation15 + $0x328] sm:$0xff] }
 0x696   :  { %3725 = vmatpush1.bf16.msra.mxu1 %v7272_v3  ;;  %v3794_v3 = vld [vmem:[#allocation15 + $0x168] sm:$0xff] }
 0x697   :  { %5413 = vmatprep.subr.bf16.mxu1 %v6215_v11  ;;  %v3802_v11 = vld [vmem:[#allocation15 + $0x1a8] sm:$0xff] }
 0x72c   :  { %v3230_v17 = vpop.f32.mrb[16].mxu1 }
 0x72d   :  { %v3231_v18 = vadd.f32 %v3230_v17, %v3109_v13  ;;  %v3232_v21 = vpop.f32.mrb[17].mxu1 }
 0x72e   :  { %v3233_v22 = vadd.f32 %v3232_v21, %v3113_v16  ;;  %v3234_v23 = vpop.f32.mrb[18].mxu1  ;;  %v3809_v21 = vld [vmem:[#allocation15 + $0x1e0] sm:$0xff] }
 0x72f   :  { %v3235_v14 = vadd.f32 %v3234_v23, %v3109_v13  ;;  %v3236_v15 = vpop.f32.mrb[19].mxu1  ;;  %v3239_v25 = vmax.f32 %v3231_v18, 0.0  ;;  %v6254_v13 = vcombine.low %v3790_v0, %v3794_v3  ;;  %v3805_v18 = vld [vmem:[#allocation15 + $0x1c0] sm:$0xff]  ;;  %v3810_v23 = vld [vmem:[#allocation15 + $0x1e8] sm:$0xff] }
 0x730   :  { %v3237_v24 = vadd.f32 %v3236_v15, %v3113_v16  ;;  %v3240_v20 = vmax.f32 %v3233_v22, 0.0  ;;  %v6261_v16 = vcombine.high %v3797_v8, %v3801_v9  ;;  %v3806_v22 = vld [vmem:[#allocation15 + $0x1c8] sm:$0xff]  ;;  %v6268_v28 = vcombine.low %v3805_v18, %v3809_v21 }
 0x731   :  { %v3241_v26 = vmax.f32 %v3235_v14, 0.0  ;;  %v6260_v14 = vcombine.low %v3797_v8, %v3801_v9  ;;  %v6270_v29 = vcombine.low %v3806_v22, %v3810_v23  ;;  %v3858_v8 = vld [vmem:[#allocation15 + $0x368] sm:$0xff] }
 0x732   :  { %v3242_v27 = vmax.f32 %v3237_v24, 0.0  ;;  %v6269_v24 = vcombine.high %v3805_v18, %v3809_v21  ;;  %v3865_v18 = vld [vmem:[#allocation15 + $0x3a0] sm:$0xff]  ;;  %v3862_v21 = vld [vmem:[#allocation15 + $0x388] sm:$0xff] }
 0x733   :  { %v3243_v31 = vpack.c.bf16 %v3241_v26, %v3239_v25  ;;  %v6271_v25 = vcombine.high %v3806_v22, %v3810_v23  ;;  %v3813_v26 = vld [vmem:[#allocation15 + $0x200] sm:$0xff]  ;;  %v3866_v23 = vld [vmem:[#allocation15 + $0x3a8] sm:$0xff] }
 0x734   :  { %v3244_v32 = vpack.c.bf16 %v3242_v27, %v3240_v20  ;;  %v3814_v20 = vld [vmem:[#allocation15 + $0x208] sm:$0xff]  ;;  %v6277_v30 = vcombine.high %v3813_v26, %v3817_v19  ;;  %v6276_v36 = vcombine.low %v3813_v26, %v3817_v19  ;;  %v3873_v26 = vld [vmem:[#allocation15 + $0x3e0] sm:$0xff] }
 0x735   :  { %v3818_v27 = vld [vmem:[#allocation15 + $0x228] sm:$0xff] }
 0x736   :  { %3683 = vmatprep.mubr.bf16.mxu0 %v3244_v32  ;;  %3726 = vmatprep.mubr.bf16.mxu1 %v3244_v32  ;;  %v3821_v32 = vld [vmem:[#allocation15 + $0x240] sm:$0xff]  ;;  %v6278_v37 = vcombine.low %v3814_v20, %v3818_v27  ;;  %v3870_v19 = vld [vmem:[#allocation15 + $0x3c8] sm:$0xff] }
 0x737   :  { %3684 = vmatmul.mubr.bf16.vlgmr.msra.gmra.mrb[8].mxu0 %v3243_v31  ;;  %3727 = vmatmul.mubr.bf16.vlgmr.msra.gmra.mrb[20].mxu1 %v3243_v31  ;;  %v6279_v31 = vcombine.high %v3814_v20, %v3818_v27  ;;  %v3874_v27 = vld [vmem:[#allocation15 + $0x3e8] sm:$0xff] }
 0x738   :  { %5328 = vmatpush1.bf16.msra.mxu0 %v6212_v7  ;;  %5414 = vmatpush1.bf16.msra.mxu1 %v6214_v10  ;;  %v6255_v7 = vcombine.high %v3790_v0, %v3794_v3  ;;  %v3798_v10 = vld [vmem:[#allocation15 + $0x188] sm:$0xff] }
 0x739   :  { %5329 = vmatprep.subr.bf16.mxu0 %v6221_v33  ;;  %5415 = vmatprep.subr.bf16.mxu1 %v6223_v34  ;;  %v6263_v17 = vcombine.high %v3798_v10, %v3802_v11  ;;  %v6262_v15 = vcombine.low %v3798_v10, %v3802_v11  ;;  %v3825_v33 = vld [vmem:[#allocation15 + $0x260] sm:$0xff]  ;;  %v3822_v34 = vld [vmem:[#allocation15 + $0x248] sm:$0xff] }
 0x73a   :  { %v6285_v38 = vcombine.high %v3821_v32, %v3825_v33  ;;  %v6284_v44 = vcombine.low %v3821_v32, %v3825_v33  ;;  %v6286_v45 = vcombine.low %v3822_v34, %v3826_v35  ;;  %v3881_v32 = vld [vmem:[#allocation15 + $0x420] sm:$0xff]  ;;  %v3878_v33 = vld [vmem:[#allocation15 + $0x408] sm:$0xff] }
 0x73c   :  { %5330 = vmatpush1.bf16.msra.mxu0 %v6220_v39  ;;  %5416 = vmatpush1.bf16.msra.mxu1 %v6222_v40  ;;  %v6287_v39 = vcombine.high %v3822_v34, %v3826_v35  ;;  %v3829_v40 = vld [vmem:[#allocation15 + $0x280] sm:$0xff]  ;;  %v3882_v35 = vld [vmem:[#allocation15 + $0x428] sm:$0xff] }
 0x73d   :  { %5331 = vmatprep.subr.bf16.mxu0 %v6229_v41  ;;  %5417 = vmatprep.subr.bf16.mxu1 %v6231_v42  ;;  %v3833_v41 = vld [vmem:[#allocation15 + $0x2a0] sm:$0xff]  ;;  %v3830_v42 = vld [vmem:[#allocation15 + $0x288] sm:$0xff] }
 0x73e   :  { %v6293_v46 = vcombine.high %v3829_v40, %v3833_v41  ;;  %v6292_v52 = vcombine.low %v3829_v40, %v3833_v41  ;;  %v6294_v53 = vcombine.low %v3830_v42, %v3834_v43 }
 0x740   :  { %5332 = vmatpush1.bf16.msra.mxu0 %v6228_v47  ;;  %5418 = vmatpush1.bf16.msra.mxu1 %v6230_v48  ;;  %v6295_v47 = vcombine.high %v3830_v42, %v3834_v43  ;;  %v3837_v48 = vld [vmem:[#allocation15 + $0x2c0] sm:$0xff] }
 0x741   :  { %5333 = vmatprep.subr.bf16.mxu0 %v6237_v49  ;;  %5419 = vmatprep.subr.bf16.mxu1 %v6239_v50  ;;  %v3841_v49 = vld [vmem:[#allocation15 + $0x2e0] sm:$0xff]  ;;  %v3838_v50 = vld [vmem:[#allocation15 + $0x2c8] sm:$0xff] }
 0x742   :  { %v6301_v54 = vcombine.high %v3837_v48, %v3841_v49  ;;  %v6300_v60 = vcombine.low %v3837_v48, %v3841_v49  ;;  %v6302_v0 = vcombine.low %v3838_v50, %v3842_v51 }
 0x744   :  { %5334 = vmatpush1.bf16.msra.mxu0 %v6236_v55  ;;  %5420 = vmatpush1.bf16.msra.mxu1 %v6238_v56  ;;  %v6303_v55 = vcombine.high %v3838_v50, %v3842_v51  ;;  %v3845_v56 = vld [vmem:[#allocation15 + $0x300] sm:$0xff] }
 0x745   :  { %5335 = vmatprep.subr.bf16.mxu0 %v6245_v57  ;;  %5421 = vmatprep.subr.bf16.mxu1 %v6247_v58  ;;  %v3849_v57 = vld [vmem:[#allocation15 + $0x320] sm:$0xff]  ;;  %v3846_v58 = vld [vmem:[#allocation15 + $0x308] sm:$0xff] }
 0x746   :  { %v6309_v3 = vcombine.high %v3845_v56, %v3849_v57  ;;  %v6308_v9 = vcombine.low %v3845_v56, %v3849_v57  ;;  %v6310_v10 = vcombine.low %v3846_v58, %v3850_v59 }
 0x748   :  { %5336 = vmatpush1.bf16.msra.mxu0 %v6244_v4  ;;  %5422 = vmatpush1.bf16.msra.mxu1 %v6246_v5  ;;  %v6311_v4 = vcombine.high %v3846_v58, %v3850_v59  ;;  %v3853_v5 = vld [vmem:[#allocation15 + $0x340] sm:$0xff] }
 0x749   :  { %5337 = vmatprep.subr.bf16.mxu0 %v6253_v6  ;;  %5423 = vmatprep.subr.bf16.mxu1 %v6255_v7  ;;  %v3857_v6 = vld [vmem:[#allocation15 + $0x360] sm:$0xff]  ;;  %v3854_v7 = vld [vmem:[#allocation15 + $0x348] sm:$0xff] }
 0x74a   :  { %v6317_v11 = vcombine.high %v3853_v5, %v3857_v6 }
 0x74c   :  { %5338 = vmatpush1.bf16.msra.mxu0 %v6252_v12  ;;  %5424 = vmatpush1.bf16.msra.mxu1 %v6254_v13  ;;  %v6319_v12 = vcombine.high %v3854_v7, %v3858_v8  ;;  %v6316_v13 = vcombine.low %v3853_v5, %v3857_v6 }
 0x74d   :  { %5339 = vmatprep.subr.bf16.mxu0 %v6261_v16  ;;  %5425 = vmatprep.subr.bf16.mxu1 %v6263_v17  ;;  %v6318_v16 = vcombine.low %v3854_v7, %v3858_v8  ;;  %v3861_v17 = vld [vmem:[#allocation15 + $0x380] sm:$0xff] }
 0x74e   :  { %v6325_v22 = vcombine.high %v3861_v17, %v3865_v18 }
 0x750   :  { %5340 = vmatpush1.bf16.msra.mxu0 %v6260_v14  ;;  %5426 = vmatpush1.bf16.msra.mxu1 %v6262_v15  ;;  %v6324_v14 = vcombine.low %v3861_v17, %v3865_v18  ;;  %v6326_v15 = vcombine.low %v3862_v21, %v3866_v23 }
 0x751   :  { %5341 = vmatprep.subr.bf16.mxu0 %v6269_v24  ;;  %5427 = vmatprep.subr.bf16.mxu1 %v6271_v25  ;;  %v6327_v24 = vcombine.high %v3862_v21, %v3866_v23  ;;  %v3869_v25 = vld [vmem:[#allocation15 + $0x3c0] sm:$0xff] }
 0x752   :  { %v6333_v20 = vcombine.high %v3869_v25, %v3873_v26  ;;  %v3893_v21 = vld [vmem:[#allocation15 + $0x480] sm:$0xff] }
 0x754   :  { %5342 = vmatpush1.bf16.msra.mxu0 %v6268_v28  ;;  %5428 = vmatpush1.bf16.msra.mxu1 %v6270_v29  ;;  %v6332_v28 = vcombine.low %v3869_v25, %v3873_v26  ;;  %v6334_v29 = vcombine.low %v3870_v19, %v3874_v27 }
 0x755   :  { %5343 = vmatprep.subr.bf16.mxu0 %v6277_v30  ;;  %5429 = vmatprep.subr.bf16.mxu1 %v6279_v31  ;;  %v6335_v30 = vcombine.high %v3870_v19, %v3874_v27  ;;  %v3877_v31 = vld [vmem:[#allocation15 + $0x400] sm:$0xff] }
 0x756   :  { %v6341_v34 = vcombine.high %v3877_v31, %v3881_v32  ;;  %v3901_v27 = vld [vmem:[#allocation15 + $0x4c0] sm:$0xff] }
 0x758   :  { %5344 = vmatpush1.bf16.msra.mxu0 %v6276_v36  ;;  %5430 = vmatpush1.bf16.msra.mxu1 %v6278_v37  ;;  %v6340_v36 = vcombine.low %v3877_v31, %v3881_v32  ;;  %v6342_v37 = vcombine.low %v3878_v33, %v3882_v35 }
 0x759   :  { %5345 = vmatprep.subr.bf16.mxu0 %v6285_v38  ;;  %5431 = vmatprep.subr.bf16.mxu1 %v6287_v39  ;;  %v6343_v38 = vcombine.high %v3878_v33, %v3882_v35  ;;  %v3309_v39 = vld [vmem:[%s7973_s15] sm:$0xf]  ;;  %v3909_v35 = vld [vmem:[#allocation15 + $0x500] sm:$0xff] }
 0x75a   :  { %v3314_v40 = vrot.slane %v3309_v39, %v7815_v62  ;;  %v3322_v41 = vrot.slane %v3309_v39, %v7818_v63  ;;  %v3318_v42 = vrot.slane %v3309_v39, %v7821_v1  ;;  %v3326_v43 = vrot.slane %v3309_v39, %v7824_v2 }
 0x75c   :  { %5346 = vmatpush1.bf16.msra.mxu0 %v6284_v44  ;;  %5432 = vmatpush1.bf16.msra.mxu1 %v6286_v45 }
 0x75d   :  { %5347 = vmatprep.subr.bf16.mxu0 %v6293_v46  ;;  %5433 = vmatprep.subr.bf16.mxu1 %v6295_v47 }
 0x760   :  { %5348 = vmatpush1.bf16.msra.mxu0 %v6292_v52  ;;  %5434 = vmatpush1.bf16.msra.mxu1 %v6294_v53 }
 0x761   :  { %5349 = vmatprep.subr.bf16.mxu0 %v6301_v54  ;;  %5435 = vmatprep.subr.bf16.mxu1 %v6303_v55 }
 0x764   :  { %5350 = vmatpush1.bf16.msra.mxu0 %v6300_v60  ;;  %5436 = vmatpush1.bf16.msra.mxu1 %v6302_v0 }
 0x765   :  { %5351 = vmatprep.subr.bf16.mxu0 %v6309_v3  ;;  %5437 = vmatprep.subr.bf16.mxu1 %v6311_v4 }
 0x768   :  { %5352 = vmatpush1.bf16.msra.mxu0 %v6308_v9  ;;  %5438 = vmatpush1.bf16.msra.mxu1 %v6310_v10  ;;  %v3885_v9 = vld [vmem:[#allocation15 + $0x440] sm:$0xff] }
 0x769   :  { %5353 = vmatprep.subr.bf16.mxu0 %v6317_v11  ;;  %5439 = vmatprep.subr.bf16.mxu1 %v6319_v12  ;;  %v3889_v12 = vld [vmem:[#allocation15 + $0x460] sm:$0xff] }
 0x76a   :  { %v6348_v25 = vcombine.low %v3885_v9, %v3889_v12 }
 0x76c   :  { %5354 = vmatpush1.bf16.msra.mxu0 %v6316_v13  ;;  %5440 = vmatpush1.bf16.msra.mxu1 %v6318_v16  ;;  %v3886_v13 = vld [vmem:[#allocation15 + $0x448] sm:$0xff] }
 0x76d   :  { %5355 = vmatprep.subr.bf16.mxu0 %v6325_v22  ;;  %5441 = vmatprep.subr.bf16.mxu1 %v6327_v24  ;;  %v3890_v16 = vld [vmem:[#allocation15 + $0x468] sm:$0xff]  ;;  %v6349_v22 = vcombine.high %v3885_v9, %v3889_v12  ;;  %v3945_v9 = vld [vmem:[#allocation15 + $0x620] sm:$0xff] }
 0x76e   :  { %v6351_v23 = vcombine.high %v3886_v13, %v3890_v16  ;;  %v3898_v24 = vld [vmem:[#allocation15 + $0x4a8] sm:$0xff]  ;;  %v6350_v26 = vcombine.low %v3886_v13, %v3890_v16 }
 0x76f   :  { %v3942_v12 = vld [vmem:[#allocation15 + $0x608] sm:$0xff] }
 0x770   :  { %5356 = vmatpush1.bf16.msra.mxu0 %v6324_v14  ;;  %5442 = vmatpush1.bf16.msra.mxu1 %v6326_v15  ;;  %v3897_v14 = vld [vmem:[#allocation15 + $0x4a0] sm:$0xff]  ;;  %v3894_v15 = vld [vmem:[#allocation15 + $0x488] sm:$0xff] }
 0x771   :  { %5357 = vmatprep.subr.bf16.mxu0 %v6333_v20  ;;  %5443 = vmatprep.subr.bf16.mxu1 %v6335_v30  ;;  %v6357_v19 = vcombine.high %v3893_v21, %v3897_v14  ;;  %v6359_v20 = vcombine.high %v3894_v15, %v3898_v24  ;;  %v3906_v30 = vld [vmem:[#allocation15 + $0x4e8] sm:$0xff]  ;;  %v6356_v31 = vcombine.low %v3893_v21, %v3897_v14  ;;  %v3949_v14 = vld [vmem:[#allocation15 + $0x640] sm:$0xff] }
 0x772   :  { %v6358_v32 = vcombine.low %v3894_v15, %v3898_v24  ;;  %v3946_v13 = vld [vmem:[#allocation15 + $0x628] sm:$0xff]  ;;  %v3953_v15 = vld [vmem:[#allocation15 + $0x660] sm:$0xff] }
 0x773   :  { %v3950_v24 = vld [vmem:[#allocation15 + $0x648] sm:$0xff] }
 0x774   :  { %5358 = vmatpush1.bf16.msra.mxu0 %v6332_v28  ;;  %5444 = vmatpush1.bf16.msra.mxu1 %v6334_v29  ;;  %v3905_v28 = vld [vmem:[#allocation15 + $0x4e0] sm:$0xff]  ;;  %v3902_v29 = vld [vmem:[#allocation15 + $0x4c8] sm:$0xff] }
 0x775   :  { %5370 = vmatprep.subr.bf16.mxu0 %v6341_v34  ;;  %5456 = vmatprep.subr.bf16.mxu1 %v6343_v38  ;;  %v6365_v33 = vcombine.high %v3901_v27, %v3905_v28  ;;  %v6367_v34 = vcombine.high %v3902_v29, %v3906_v30  ;;  %v3914_v38 = vld [vmem:[#allocation15 + $0x528] sm:$0xff]  ;;  %v6364_v39 = vcombine.low %v3901_v27, %v3905_v28  ;;  %v3957_v28 = vld [vmem:[#allocation15 + $0x680] sm:$0xff] }
 0x80a   :  { %v3685_v44 = vpop.f32.mrb[8].mxu0  ;;  %v3728_v45 = vpop.f32.mrb[20].mxu1 }
 0x80b   :  { %v3686_v46 = vadd.f32 %v3685_v44, %v3314_v40  ;;  %v3729_v47 = vadd.f32 %v3728_v45, %v3322_v41  ;;  %v3687_v48 = vpop.f32.mrb[9].mxu0  ;;  %v3730_v49 = vpop.f32.mrb[21].mxu1  ;;  %v3921_v44 = vld [vmem:[#allocation15 + $0x560] sm:$0xff]  ;;  %v3918_v45 = vld [vmem:[#allocation15 + $0x548] sm:$0xff] }
 0x80c   :  { %v3688_v50 = vadd.f32 %v3687_v48, %v3318_v42  ;;  %v3731_v51 = vadd.f32 %v3730_v49, %v3326_v43  ;;  %v3689_v52 = vpop.f32.mrb[10].mxu0  ;;  %v3732_v53 = vpop.f32.mrb[22].mxu1 }
 0x80d   :  { %v3690_v54 = vadd.f32 %v3689_v52, %v3314_v40  ;;  %v3733_v55 = vadd.f32 %v3732_v53, %v3322_v41  ;;  %v3691_v56 = vpop.f32.mrb[11].mxu0  ;;  %v3734_v57 = vpop.f32.mrb[23].mxu1  ;;  %v3737_v60 = vmax.f32 %v3686_v46, 0.0  ;;  %v3739_v0 = vmax.f32 %v3729_v47, 0.0  ;;  %v3922_v46 = vld [vmem:[#allocation15 + $0x568] sm:$0xff]  ;;  %v3929_v52 = vld [vmem:[#allocation15 + $0x5a0] sm:$0xff] }
 0x80e   :  { %v3692_v58 = vadd.f32 %v3691_v56, %v3318_v42  ;;  %v3735_v59 = vadd.f32 %v3734_v57, %v3326_v43  ;;  %v3738_v5 = vmax.f32 %v3688_v50, 0.0  ;;  %v3740_v6 = vmax.f32 %v3731_v51, 0.0  ;;  %v3917_v43 = vld [vmem:[#allocation15 + $0x540] sm:$0xff]  ;;  %v3926_v53 = vld [vmem:[#allocation15 + $0x588] sm:$0xff] }
 0x80f   :  { %v3741_v3 = vmax.f32 %v3690_v54, 0.0  ;;  %v3743_v4 = vmax.f32 %v3733_v55, 0.0  ;;  %v6366_v40 = vcombine.low %v3902_v29, %v3906_v30  ;;  %v6381_v49 = vcombine.high %v3917_v43, %v3921_v44  ;;  %v3925_v51 = vld [vmem:[#allocation15 + $0x580] sm:$0xff]  ;;  %v3930_v54 = vld [vmem:[#allocation15 + $0x5a8] sm:$0xff] }
 0x810   :  { %v3742_v7 = vmax.f32 %v3692_v58, 0.0  ;;  %v3744_v8 = vmax.f32 %v3735_v59, 0.0  ;;  %v6383_v50 = vcombine.high %v3918_v45, %v3922_v46  ;;  %v6380_v55 = vcombine.low %v3917_v43, %v3921_v44  ;;  %v3933_v59 = vld [vmem:[#allocation15 + $0x5c0] sm:$0xff]  ;;  %v3958_v30 = vld [vmem:[#allocation15 + $0x688] sm:$0xff] }
 0x811   :  { %v7899_v10 = vpack.c.bf16 %v3741_v3, %v3737_v60  ;;  %v7901_v11 = vpack.c.bf16 %v3743_v4, %v3739_v0  ;;  %v6382_v56 = vcombine.low %v3918_v45, %v3922_v46  ;;  %v6389_v57 = vcombine.high %v3925_v51, %v3929_v52  ;;  %v3937_v60 = vld [vmem:[#allocation15 + $0x5e0] sm:$0xff]  ;;  %v3934_v0 = vld [vmem:[#allocation15 + $0x5c8] sm:$0xff] }
 0x812   :  { %v7903_v17 = vpack.c.bf16 %v3742_v7, %v3738_v5  ;;  %v7905_v18 = vpack.c.bf16 %v3744_v8, %v3740_v6  ;;  %v6391_v58 = vcombine.high %v3926_v53, %v3930_v54  ;;  %v3938_v3 = vld [vmem:[#allocation15 + $0x5e8] sm:$0xff]  ;;  %v6388_v4 = vcombine.low %v3925_v51, %v3929_v52  ;;  %v3941_v8 = vld [vmem:[#allocation15 + $0x600] sm:$0xff] }
 0x813   :  { %v6390_v5 = vcombine.low %v3926_v53, %v3930_v54  ;;  %v6397_v6 = vcombine.high %v3933_v59, %v3937_v60  ;;  %v6399_v7 = vcombine.high %v3934_v0, %v3938_v3  ;;  %v6396_v16 = vcombine.low %v3933_v59, %v3937_v60  ;;  %v3961_v29 = vld [vmem:[#allocation15 + $0x6a0] sm:$0xff]  ;;  %v3974_v46 = vld [vmem:[#allocation15 + $0x708] sm:$0xff] }
 0x814   :  { %5359 = vmatprep.mubr.bf16.mxu0 %v7903_v17  ;;  %5445 = vmatprep.mubr.bf16.mxu1 %v7903_v17  ;;  %v6398_v21 = vcombine.low %v3934_v0, %v3938_v3  ;;  %v3973_v44 = vld [vmem:[#allocation15 + $0x700] sm:$0xff]  ;;  %v3982_v54 = vld [vmem:[#allocation15 + $0x748] sm:$0xff] }
 0x815   :  { %5360 = vmatmul.mubr.bf16.vlgmr.msra.gmra.mrb[12].mxu0 %v7899_v10  ;;  %5446 = vmatmul.mubr.bf16.vlgmr.msra.gmra.mrb[24].mxu1 %v7899_v10  ;;  %v3977_v45 = vld [vmem:[#allocation15 + $0x720] sm:$0xff]  ;;  %v3990_v3 = vld [vmem:[#allocation15 + $0x788] sm:$0xff] }
 0x816   :  { %5371 = vmatpush1.bf16.msra.mxu0 %v6340_v36  ;;  %5457 = vmatpush1.bf16.msra.mxu1 %v6342_v37  ;;  %v3913_v36 = vld [vmem:[#allocation15 + $0x520] sm:$0xff]  ;;  %v3910_v37 = vld [vmem:[#allocation15 + $0x508] sm:$0xff] }
 0x817   :  { %5402 = vmatprep.mubr.bf16.mxu0 %v7905_v18  ;;  %5488 = vmatprep.mubr.bf16.mxu1 %v7905_v18  ;;  %v6373_v41 = vcombine.high %v3909_v35, %v3913_v36  ;;  %v6375_v42 = vcombine.high %v3910_v37, %v3914_v38  ;;  %v6372_v47 = vcombine.low %v3909_v35, %v3913_v36  ;;  %v3965_v36 = vld [vmem:[#allocation15 + $0x6c0] sm:$0xff] }
 0x818   :  { %5372 = vmatprep.subr.bf16.mxu0 %v6349_v22  ;;  %5458 = vmatprep.subr.bf16.mxu1 %v6351_v23  ;;  %v6374_v48 = vcombine.low %v3910_v37, %v3914_v38  ;;  %v6405_v22 = vcombine.high %v3941_v8, %v3945_v9  ;;  %v6407_v23 = vcombine.high %v3942_v12, %v3946_v13  ;;  %v3969_v37 = vld [vmem:[#allocation15 + $0x6e0] sm:$0xff]  ;;  %v3966_v38 = vld [vmem:[#allocation15 + $0x6c8] sm:$0xff] }
 0x819   :  { %v3981_v52 = vld [vmem:[#allocation15 + $0x740] sm:$0xff] }
 0x81a   :  { %5373 = vmatpush1.bf16.msra.mxu0 %v6348_v25  ;;  %5459 = vmatpush1.bf16.msra.mxu1 %v6350_v26  ;;  %v3954_v25 = vld [vmem:[#allocation15 + $0x668] sm:$0xff]  ;;  %v6404_v26 = vcombine.low %v3941_v8, %v3945_v9  ;;  %v3985_v53 = vld [vmem:[#allocation15 + $0x760] sm:$0xff] }
 0x81b   :  { %5374 = vmatprep.subr.bf16.mxu0 %v6357_v19  ;;  %5460 = vmatprep.subr.bf16.mxu1 %v6359_v20  ;;  %v6406_v19 = vcombine.low %v3942_v12, %v3946_v13  ;;  %v6413_v20 = vcombine.high %v3949_v14, %v3953_v15  ;;  %v6415_v27 = vcombine.high %v3950_v24, %v3954_v25  ;;  %v3989_v60 = vld [vmem:[#allocation15 + $0x780] sm:$0xff]  ;;  %v3998_v13 = vld [vmem:[#allocation15 + $0x7c8] sm:$0xff] }
 0x81c   :  { %v3993_v0 = vld [vmem:[#allocation15 + $0x7a0] sm:$0xff] }
 0x81d   :  { %v3997_v9 = vld [vmem:[#allocation15 + $0x7c0] sm:$0xff] }
 0x81e   :  { %5375 = vmatpush1.bf16.msra.mxu0 %v6356_v31  ;;  %5461 = vmatpush1.bf16.msra.mxu1 %v6358_v32  ;;  %v3962_v31 = vld [vmem:[#allocation15 + $0x6a8] sm:$0xff]  ;;  %v6412_v32 = vcombine.low %v3949_v14, %v3953_v15  ;;  %v4001_v12 = vld [vmem:[#allocation15 + $0x7e0] sm:$0xff]  ;;  %v3751_v15 = vld [vmem:[#allocation15 + $0x10] sm:$0xff] }
 0x81f   :  { %5376 = vmatprep.subr.bf16.mxu0 %v6365_v33  ;;  %5462 = vmatprep.subr.bf16.mxu1 %v6367_v34  ;;  %v6414_v33 = vcombine.low %v3950_v24, %v3954_v25  ;;  %v6421_v34 = vcombine.high %v3957_v28, %v3961_v29  ;;  %v6423_v35 = vcombine.high %v3958_v30, %v3962_v31  ;;  %v3755_v24 = vld [vmem:[#allocation15 + $0x30] sm:$0xff]  ;;  %v3752_v25 = vld [vmem:[#allocation15 + $0x18] sm:$0xff] }
 0x822   :  { %5377 = vmatpush1.bf16.msra.mxu0 %v6364_v39  ;;  %5463 = vmatpush1.bf16.msra.mxu1 %v6366_v40  ;;  %v3970_v39 = vld [vmem:[#allocation15 + $0x6e8] sm:$0xff]  ;;  %v6420_v40 = vcombine.low %v3957_v28, %v3961_v29  ;;  %v3759_v29 = vld [vmem:[#allocation15 + $0x50] sm:$0xff] }
 0x823   :  { %5378 = vmatprep.subr.bf16.mxu0 %v6373_v41  ;;  %5464 = vmatprep.subr.bf16.mxu1 %v6375_v42  ;;  %v6422_v41 = vcombine.low %v3958_v30, %v3962_v31  ;;  %v6429_v42 = vcombine.high %v3965_v36, %v3969_v37  ;;  %v6431_v43 = vcombine.high %v3966_v38, %v3970_v39  ;;  %v3763_v30 = vld [vmem:[#allocation15 + $0x70] sm:$0xff]  ;;  %v3760_v31 = vld [vmem:[#allocation15 + $0x58] sm:$0xff] }
 0x826   :  { %5379 = vmatpush1.bf16.msra.mxu0 %v6372_v47  ;;  %5465 = vmatpush1.bf16.msra.mxu1 %v6374_v48  ;;  %v3978_v47 = vld [vmem:[#allocation15 + $0x728] sm:$0xff]  ;;  %v6428_v48 = vcombine.low %v3965_v36, %v3969_v37  ;;  %v3767_v37 = vld [vmem:[#allocation15 + $0x90] sm:$0xff] }
 0x827   :  { %5380 = vmatprep.subr.bf16.mxu0 %v6381_v49  ;;  %5466 = vmatprep.subr.bf16.mxu1 %v6383_v50  ;;  %v6430_v49 = vcombine.low %v3966_v38, %v3970_v39  ;;  %v6437_v50 = vcombine.high %v3973_v44, %v3977_v45  ;;  %v6439_v51 = vcombine.high %v3974_v46, %v3978_v47  ;;  %v3771_v38 = vld [vmem:[#allocation15 + $0xb0] sm:$0xff]  ;;  %v3768_v39 = vld [vmem:[#allocation15 + $0x98] sm:$0xff] }
 0x82a   :  { %5381 = vmatpush1.bf16.msra.mxu0 %v6380_v55  ;;  %5467 = vmatpush1.bf16.msra.mxu1 %v6382_v56  ;;  %v3986_v55 = vld [vmem:[#allocation15 + $0x768] sm:$0xff]  ;;  %v6436_v56 = vcombine.low %v3973_v44, %v3977_v45  ;;  %v3775_v45 = vld [vmem:[#allocation15 + $0xd0] sm:$0xff] }
 0x82b   :  { %5382 = vmatprep.subr.bf16.mxu0 %v6389_v57  ;;  %5468 = vmatprep.subr.bf16.mxu1 %v6391_v58  ;;  %v6438_v57 = vcombine.low %v3974_v46, %v3978_v47  ;;  %v6445_v58 = vcombine.high %v3981_v52, %v3985_v53  ;;  %v6447_v59 = vcombine.high %v3982_v54, %v3986_v55  ;;  %v3779_v46 = vld [vmem:[#allocation15 + $0xf0] sm:$0xff]  ;;  %v3776_v47 = vld [vmem:[#allocation15 + $0xd8] sm:$0xff] }
 0x82e   :  { %5383 = vmatpush1.bf16.msra.mxu0 %v6388_v4  ;;  %5469 = vmatpush1.bf16.msra.mxu1 %v6390_v5  ;;  %v3994_v4 = vld [vmem:[#allocation15 + $0x7a8] sm:$0xff]  ;;  %v6444_v5 = vcombine.low %v3981_v52, %v3985_v53  ;;  %v3783_v53 = vld [vmem:[#allocation15 + $0x110] sm:$0xff] }
 0x82f   :  { %5384 = vmatprep.subr.bf16.mxu0 %v6397_v6  ;;  %5470 = vmatprep.subr.bf16.mxu1 %v6399_v7  ;;  %v6446_v6 = vcombine.low %v3982_v54, %v3986_v55  ;;  %v6453_v7 = vcombine.high %v3989_v60, %v3993_v0  ;;  %v6455_v8 = vcombine.high %v3990_v3, %v3994_v4  ;;  %v3787_v54 = vld [vmem:[#allocation15 + $0x130] sm:$0xff]  ;;  %v3788_v55 = vld [vmem:[#allocation15 + $0x138] sm:$0xff] }
 0x832   :  { %5385 = vmatpush1.bf16.msra.mxu0 %v6396_v16  ;;  %5471 = vmatpush1.bf16.msra.mxu1 %v6398_v21  ;;  %v4002_v16 = vld [vmem:[#allocation15 + $0x7e8] sm:$0xff]  ;;  %v6452_v21 = vcombine.low %v3989_v60, %v3993_v0  ;;  %v3791_v60 = vld [vmem:[#allocation15 + $0x150] sm:$0xff] }
 0x833   :  { %5386 = vmatprep.subr.bf16.mxu0 %v6405_v22  ;;  %5472 = vmatprep.subr.bf16.mxu1 %v6407_v23  ;;  %v6454_v22 = vcombine.low %v3990_v3, %v3994_v4  ;;  %v6461_v23 = vcombine.high %v3997_v9, %v4001_v12  ;;  %v6463_v14 = vcombine.high %v3998_v13, %v4002_v16  ;;  %v3795_v0 = vld [vmem:[#allocation15 + $0x170] sm:$0xff]  ;;  %v3792_v3 = vld [vmem:[#allocation15 + $0x158] sm:$0xff] }
 0x834   :  { %v3796_v4 = vld [vmem:[#allocation15 + $0x178] sm:$0xff] }
 0x836   :  { %5387 = vmatpush1.bf16.msra.mxu0 %v6404_v26  ;;  %5473 = vmatpush1.bf16.msra.mxu1 %v6406_v19  ;;  %v3756_v26 = vld [vmem:[#allocation15 + $0x38] sm:$0xff]  ;;  %v6460_v19 = vcombine.low %v3997_v9, %v4001_v12  ;;  %v3799_v9 = vld [vmem:[#allocation15 + $0x190] sm:$0xff] }
 0x837   :  { %5388 = vmatprep.subr.bf16.mxu0 %v6413_v20  ;;  %5474 = vmatprep.subr.bf16.mxu1 %v6415_v27  ;;  %v6462_v20 = vcombine.low %v3998_v13, %v4002_v16  ;;  %v6217_v27 = vcombine.high %v3751_v15, %v3755_v24  ;;  %v6219_v28 = vcombine.high %v3752_v25, %v3756_v26  ;;  %v3803_v12 = vld [vmem:[#allocation15 + $0x1b0] sm:$0xff]  ;;  %v3800_v13 = vld [vmem:[#allocation15 + $0x198] sm:$0xff] }
 0x838   :  { %v3804_v16 = vld [vmem:[#allocation15 + $0x1b8] sm:$0xff] }
 0x83a   :  { %5389 = vmatpush1.bf16.msra.mxu0 %v6412_v32  ;;  %5475 = vmatpush1.bf16.msra.mxu1 %v6414_v33  ;;  %v3764_v32 = vld [vmem:[#allocation15 + $0x78] sm:$0xff]  ;;  %v6216_v33 = vcombine.low %v3751_v15, %v3755_v24  ;;  %v3807_v15 = vld [vmem:[#allocation15 + $0x1d0] sm:$0xff] }
 0x83b   :  { %5390 = vmatprep.subr.bf16.mxu0 %v6421_v34  ;;  %5476 = vmatprep.subr.bf16.mxu1 %v6423_v35  ;;  %v6218_v34 = vcombine.low %v3752_v25, %v3756_v26  ;;  %v6225_v35 = vcombine.high %v3759_v29, %v3763_v30  ;;  %v6227_v36 = vcombine.high %v3760_v31, %v3764_v32  ;;  %v3811_v24 = vld [vmem:[#allocation15 + $0x1f0] sm:$0xff]  ;;  %v3808_v25 = vld [vmem:[#allocation15 + $0x1d8] sm:$0xff] }
 0x83c   :  { %v3812_v26 = vld [vmem:[#allocation15 + $0x1f8] sm:$0xff] }
 0x83e   :  { %5391 = vmatpush1.bf16.msra.mxu0 %v6420_v40  ;;  %5477 = vmatpush1.bf16.msra.mxu1 %v6422_v41  ;;  %v3772_v40 = vld [vmem:[#allocation15 + $0xb8] sm:$0xff]  ;;  %v6224_v41 = vcombine.low %v3759_v29, %v3763_v30  ;;  %v3815_v29 = vld [vmem:[#allocation15 + $0x210] sm:$0xff] }
 0x83f   :  { %5392 = vmatprep.subr.bf16.mxu0 %v6429_v42  ;;  %5478 = vmatprep.subr.bf16.mxu1 %v6431_v43  ;;  %v6226_v42 = vcombine.low %v3760_v31, %v3764_v32  ;;  %v6233_v43 = vcombine.high %v3767_v37, %v3771_v38  ;;  %v6235_v44 = vcombine.high %v3768_v39, %v3772_v40  ;;  %v3819_v30 = vld [vmem:[#allocation15 + $0x230] sm:$0xff]  ;;  %v3816_v31 = vld [vmem:[#allocation15 + $0x218] sm:$0xff] }
 0x840   :  { %v3820_v32 = vld [vmem:[#allocation15 + $0x238] sm:$0xff] }
 0x842   :  { %5393 = vmatpush1.bf16.msra.mxu0 %v6428_v48  ;;  %5479 = vmatpush1.bf16.msra.mxu1 %v6430_v49  ;;  %v3780_v48 = vld [vmem:[#allocation15 + $0xf8] sm:$0xff]  ;;  %v6232_v49 = vcombine.low %v3767_v37, %v3771_v38  ;;  %v3823_v37 = vld [vmem:[#allocation15 + $0x250] sm:$0xff] }
 0x843   :  { %5394 = vmatprep.subr.bf16.mxu0 %v6437_v50  ;;  %5480 = vmatprep.subr.bf16.mxu1 %v6439_v51  ;;  %v6234_v50 = vcombine.low %v3768_v39, %v3772_v40  ;;  %v6241_v51 = vcombine.high %v3775_v45, %v3779_v46  ;;  %v6243_v52 = vcombine.high %v3776_v47, %v3780_v48  ;;  %v3827_v38 = vld [vmem:[#allocation15 + $0x270] sm:$0xff]  ;;  %v3824_v39 = vld [vmem:[#allocation15 + $0x258] sm:$0xff] }
 0x844   :  { %v3828_v40 = vld [vmem:[#allocation15 + $0x278] sm:$0xff] }
 0x846   :  { %5395 = vmatpush1.bf16.msra.mxu0 %v6436_v56  ;;  %5481 = vmatpush1.bf16.msra.mxu1 %v6438_v57  ;;  %v6240_v56 = vcombine.low %v3775_v45, %v3779_v46  ;;  %v6242_v57 = vcombine.low %v3776_v47, %v3780_v48  ;;  %v3831_v45 = vld [vmem:[#allocation15 + $0x290] sm:$0xff]  ;;  %v3832_v47 = vld [vmem:[#allocation15 + $0x298] sm:$0xff] }
 0x847   :  { %5396 = vmatprep.subr.bf16.mxu0 %v6445_v58  ;;  %5482 = vmatprep.subr.bf16.mxu1 %v6447_v59  ;;  %v6249_v58 = vcombine.high %v3783_v53, %v3787_v54  ;;  %v3835_v46 = vld [vmem:[#allocation15 + $0x2b0] sm:$0xff]  ;;  %v3836_v48 = vld [vmem:[#allocation15 + $0x2b8] sm:$0xff] }
 0x84a   :  { %5397 = vmatpush1.bf16.msra.mxu0 %v6444_v5  ;;  %5483 = vmatpush1.bf16.msra.mxu1 %v6446_v6  ;;  %v6248_v5 = vcombine.low %v3783_v53, %v3787_v54  ;;  %v3839_v53 = vld [vmem:[#allocation15 + $0x2d0] sm:$0xff] }
 0x84b   :  { %5398 = vmatprep.subr.bf16.mxu0 %v6453_v7  ;;  %5484 = vmatprep.subr.bf16.mxu1 %v6455_v8  ;;  %v6257_v7 = vcombine.high %v3791_v60, %v3795_v0  ;;  %v6259_v8 = vcombine.high %v3792_v3, %v3796_v4  ;;  %v3843_v54 = vld [vmem:[#allocation15 + $0x2f0] sm:$0xff] }
 0x84e   :  { %5399 = vmatpush1.bf16.msra.mxu0 %v6452_v21  ;;  %5485 = vmatpush1.bf16.msra.mxu1 %v6454_v22  ;;  %v6256_v21 = vcombine.low %v3791_v60, %v3795_v0  ;;  %v6258_v22 = vcombine.low %v3792_v3, %v3796_v4  ;;  %v3847_v60 = vld [vmem:[#allocation15 + $0x310] sm:$0xff]  ;;  %v3848_v3 = vld [vmem:[#allocation15 + $0x318] sm:$0xff] }
 0x84f   :  { %5400 = vmatprep.subr.bf16.mxu0 %v6461_v23  ;;  %5486 = vmatprep.subr.bf16.mxu1 %v6463_v14  ;;  %v6265_v23 = vcombine.high %v3799_v9, %v3803_v12  ;;  %v6267_v14 = vcombine.high %v3800_v13, %v3804_v16  ;;  %v3851_v0 = vld [vmem:[#allocation15 + $0x330] sm:$0xff]  ;;  %v3852_v4 = vld [vmem:[#allocation15 + $0x338] sm:$0xff] }
 0x852   :  { %5401 = vmatpush1.bf16.msra.mxu0 %v6460_v19  ;;  %5487 = vmatpush1.bf16.msra.mxu1 %v6462_v20  ;;  %v6264_v19 = vcombine.low %v3799_v9, %v3803_v12  ;;  %v6266_v20 = vcombine.low %v3800_v13, %v3804_v16  ;;  %v3855_v9 = vld [vmem:[#allocation15 + $0x350] sm:$0xff]  ;;  %v3856_v13 = vld [vmem:[#allocation15 + $0x358] sm:$0xff] }
 0x853   :  { %5499 = vmatprep.subr.bf16.mxu0 %v6217_v27  ;;  %5585 = vmatprep.subr.bf16.mxu1 %v6219_v28  ;;  %v6273_v27 = vcombine.high %v3807_v15, %v3811_v24  ;;  %v6275_v28 = vcombine.high %v3808_v25, %v3812_v26  ;;  %v3859_v12 = vld [vmem:[#allocation15 + $0x370] sm:$0xff]  ;;  %v3860_v16 = vld [vmem:[#allocation15 + $0x378] sm:$0xff] }
 0x855   :  { %5403 = vmatmul.mubr.bf16.vlgmr.msra.gmra.mrb[12].mxu0 %v7901_v11  ;;  %5489 = vmatmul.mubr.bf16.vlgmr.msra.gmra.mrb[24].mxu1 %v7901_v11 }
 0x856   :  { %5500 = vmatpush1.bf16.msra.mxu0 %v6216_v33  ;;  %5531 = vmatprep.mubr.bf16.mxu0 %v7903_v17  ;;  %v6272_v33 = vcombine.low %v3807_v15, %v3811_v24  ;;  %v3863_v15 = vld [vmem:[#allocation15 + $0x390] sm:$0xff] }
 0x857   :  { %5586 = vmatpush1.bf16.msra.mxu1 %v6218_v34  ;;  %5617 = vmatprep.mubr.bf16.mxu1 %v7903_v17  ;;  %v3784_v17 = vld [vmem:[#allocation15 + $0x118] sm:$0xff]  ;;  %v6274_v34 = vcombine.low %v3808_v25, %v3812_v26  ;;  %v3867_v24 = vld [vmem:[#allocation15 + $0x3b0] sm:$0xff] }
 0x858   :  { %5501 = vmatprep.subr.bf16.mxu0 %v6225_v35  ;;  %5587 = vmatprep.subr.bf16.mxu1 %v6227_v36  ;;  %v6251_v59 = vcombine.high %v3784_v17, %v3788_v55  ;;  %v6250_v6 = vcombine.low %v3784_v17, %v3788_v55  ;;  %v6281_v35 = vcombine.high %v3815_v29, %v3819_v30  ;;  %v3840_v17 = vld [vmem:[#allocation15 + $0x2d8] sm:$0xff] }
 0x859   :  { %v6283_v36 = vcombine.high %v3816_v31, %v3820_v32  ;;  %v3844_v55 = vld [vmem:[#allocation15 + $0x2f8] sm:$0xff] }
 0x85a   :  { %5502 = vmatpush1.bf16.msra.mxu0 %v6224_v41  ;;  %v6280_v41 = vcombine.low %v3815_v29, %v3819_v30  ;;  %v3864_v25 = vld [vmem:[#allocation15 + $0x398] sm:$0xff]  ;;  %v3871_v29 = vld [vmem:[#allocation15 + $0x3d0] sm:$0xff] }
 0x85b   :  { %5588 = vmatpush1.bf16.msra.mxu1 %v6226_v42  ;;  %5503 = vmatprep.subr.bf16.mxu0 %v6233_v43  ;;  %v6282_v42 = vcombine.low %v3816_v31, %v3820_v32  ;;  %v6289_v43 = vcombine.high %v3823_v37, %v3827_v38  ;;  %v3868_v26 = vld [vmem:[#allocation15 + $0x3b8] sm:$0xff]  ;;  %v3875_v30 = vld [vmem:[#allocation15 + $0x3f0] sm:$0xff] }
 0x85c   :  { %5589 = vmatprep.subr.bf16.mxu1 %v6235_v44  ;;  %v6291_v44 = vcombine.high %v3824_v39, %v3828_v40  ;;  %v3872_v31 = vld [vmem:[#allocation15 + $0x3d8] sm:$0xff] }
 0x85d   :  { %v3876_v32 = vld [vmem:[#allocation15 + $0x3f8] sm:$0xff] }
 0x85e   :  { %5504 = vmatpush1.bf16.msra.mxu0 %v6232_v49  ;;  %v6288_v49 = vcombine.low %v3823_v37, %v3827_v38  ;;  %v3879_v37 = vld [vmem:[#allocation15 + $0x410] sm:$0xff] }
 0x85f   :  { %5590 = vmatpush1.bf16.msra.mxu1 %v6234_v50  ;;  %5505 = vmatprep.subr.bf16.mxu0 %v6241_v51  ;;  %v6290_v50 = vcombine.low %v3824_v39, %v3828_v40  ;;  %v6297_v51 = vcombine.high %v3831_v45, %v3835_v46  ;;  %v3883_v38 = vld [vmem:[#allocation15 + $0x430] sm:$0xff]  ;;  %v3880_v39 = vld [vmem:[#allocation15 + $0x418] sm:$0xff] }
 0x860   :  { %5591 = vmatprep.subr.bf16.mxu1 %v6243_v52  ;;  %v6299_v52 = vcombine.high %v3832_v47, %v3836_v48  ;;  %v3884_v40 = vld [vmem:[#allocation15 + $0x438] sm:$0xff] }
 0x862   :  { %5506 = vmatpush1.bf16.msra.mxu0 %v6240_v56  ;;  %v6296_v56 = vcombine.low %v3831_v45, %v3835_v46  ;;  %v3887_v45 = vld [vmem:[#allocation15 + $0x450] sm:$0xff] }
 0x863   :  { %5592 = vmatpush1.bf16.msra.mxu1 %v6242_v57  ;;  %5507 = vmatprep.subr.bf16.mxu0 %v6249_v58  ;;  %v6298_v57 = vcombine.low %v3832_v47, %v3836_v48  ;;  %v6305_v58 = vcombine.high %v3839_v53, %v3843_v54  ;;  %v3891_v46 = vld [vmem:[#allocation15 + $0x470] sm:$0xff]  ;;  %v6344_v47 = vcombine.low %v3879_v37, %v3883_v38  ;;  %v3888_v48 = vld [vmem:[#allocation15 + $0x458] sm:$0xff] }
 0x864   :  { %5593 = vmatprep.subr.bf16.mxu1 %v6251_v59  ;;  %v6307_v59 = vcombine.high %v3840_v17, %v3844_v55 }
 0x866   :  { %5508 = vmatpush1.bf16.msra.mxu0 %v6248_v5  ;;  %v6304_v5 = vcombine.low %v3839_v53, %v3843_v54  ;;  %v3899_v53 = vld [vmem:[#allocation15 + $0x4b0] sm:$0xff] }
 0x867   :  { %5594 = vmatpush1.bf16.msra.mxu1 %v6250_v6  ;;  %5509 = vmatprep.subr.bf16.mxu0 %v6257_v7  ;;  %v6306_v6 = vcombine.low %v3840_v17, %v3844_v55  ;;  %v6313_v7 = vcombine.high %v3847_v60, %v3851_v0  ;;  %v3896_v17 = vld [vmem:[#allocation15 + $0x498] sm:$0xff] }
 0x868   :  { %5595 = vmatprep.subr.bf16.mxu1 %v6259_v8  ;;  %v6315_v8 = vcombine.high %v3848_v3, %v3852_v4  ;;  %v3900_v55 = vld [vmem:[#allocation15 + $0x4b8] sm:$0xff] }
 0x86a   :  { %5510 = vmatpush1.bf16.msra.mxu0 %v6256_v21  ;;  %v6312_v21 = vcombine.low %v3847_v60, %v3851_v0  ;;  %v3903_v60 = vld [vmem:[#allocation15 + $0x4d0] sm:$0xff] }
 0x86b   :  { %5596 = vmatpush1.bf16.msra.mxu1 %v6258_v22  ;;  %5511 = vmatprep.subr.bf16.mxu0 %v6265_v23  ;;  %v6314_v22 = vcombine.low %v3848_v3, %v3852_v4  ;;  %v6321_v23 = vcombine.high %v3855_v9, %v3859_v12  ;;  %v3907_v0 = vld [vmem:[#allocation15 + $0x4f0] sm:$0xff]  ;;  %v3904_v3 = vld [vmem:[#allocation15 + $0x4d8] sm:$0xff] }
 0x86c   :  { %5597 = vmatprep.subr.bf16.mxu1 %v6267_v14  ;;  %v6323_v14 = vcombine.high %v3856_v13, %v3860_v16  ;;  %v3908_v4 = vld [vmem:[#allocation15 + $0x4f8] sm:$0xff] }
 0x86e   :  { %5512 = vmatpush1.bf16.msra.mxu0 %v6264_v19  ;;  %v6320_v19 = vcombine.low %v3855_v9, %v3859_v12  ;;  %v3915_v9 = vld [vmem:[#allocation15 + $0x530] sm:$0xff]  ;;  %v3912_v12 = vld [vmem:[#allocation15 + $0x518] sm:$0xff] }
 0x86f   :  { %5598 = vmatpush1.bf16.msra.mxu1 %v6266_v20  ;;  %5513 = vmatprep.subr.bf16.mxu0 %v6273_v27  ;;  %v6322_v20 = vcombine.low %v3856_v13, %v3860_v16  ;;  %v6329_v27 = vcombine.high %v3863_v15, %v3867_v24  ;;  %v3916_v13 = vld [vmem:[#allocation15 + $0x538] sm:$0xff]  ;;  %v6370_v16 = vcombine.low %v3904_v3, %v3908_v4 }
 0x870   :  { %5599 = vmatprep.subr.bf16.mxu1 %v6275_v28  ;;  %v6331_v28 = vcombine.high %v3864_v25, %v3868_v26 }
 0x872   :  { %5514 = vmatpush1.bf16.msra.mxu0 %v6272_v33  ;;  %v6328_v33 = vcombine.low %v3863_v15, %v3867_v24  ;;  %v3920_v15 = vld [vmem:[#allocation15 + $0x558] sm:$0xff] }
 0x873   :  { %5600 = vmatpush1.bf16.msra.mxu1 %v6274_v34  ;;  %5515 = vmatprep.subr.bf16.mxu0 %v6281_v35  ;;  %v6330_v34 = vcombine.low %v3864_v25, %v3868_v26  ;;  %v6337_v35 = vcombine.high %v3871_v29, %v3875_v30  ;;  %v3924_v24 = vld [vmem:[#allocation15 + $0x578] sm:$0xff]  ;;  %v6378_v26 = vcombine.low %v3912_v12, %v3916_v13 }
 0x874   :  { %5601 = vmatprep.subr.bf16.mxu1 %v6283_v36  ;;  %v6339_v36 = vcombine.high %v3872_v31, %v3876_v32 }
 0x876   :  { %5516 = vmatpush1.bf16.msra.mxu0 %v6280_v41  ;;  %v6336_v41 = vcombine.low %v3871_v29, %v3875_v30  ;;  %v3928_v29 = vld [vmem:[#allocation15 + $0x598] sm:$0xff] }
 0x877   :  { %5602 = vmatpush1.bf16.msra.mxu1 %v6282_v42  ;;  %5517 = vmatprep.subr.bf16.mxu0 %v6289_v43  ;;  %v6338_v42 = vcombine.low %v3872_v31, %v3876_v32  ;;  %v6345_v43 = vcombine.high %v3879_v37, %v3883_v38  ;;  %v3932_v30 = vld [vmem:[#allocation15 + $0x5b8] sm:$0xff]  ;;  %v6386_v32 = vcombine.low %v3920_v15, %v3924_v24 }
 0x878   :  { %5603 = vmatprep.subr.bf16.mxu1 %v6291_v44  ;;  %v6347_v44 = vcombine.high %v3880_v39, %v3884_v40  ;;  %v3936_v37 = vld [vmem:[#allocation15 + $0x5d8] sm:$0xff] }
 0x879   :  { %v3940_v38 = vld [vmem:[#allocation15 + $0x5f8] sm:$0xff] }
 0x87a   :  { %5518 = vmatpush1.bf16.msra.mxu0 %v6288_v49  ;;  %v3892_v49 = vld [vmem:[#allocation15 + $0x478] sm:$0xff] }
 0x87b   :  { %5604 = vmatpush1.bf16.msra.mxu1 %v6290_v50  ;;  %5519 = vmatprep.subr.bf16.mxu0 %v6297_v51  ;;  %v6346_v50 = vcombine.low %v3880_v39, %v3884_v40  ;;  %v6353_v51 = vcombine.high %v3887_v45, %v3891_v46  ;;  %v6355_v54 = vcombine.high %v3888_v48, %v3892_v49 }
 0x87c   :  { %5605 = vmatprep.subr.bf16.mxu1 %v6299_v52  ;;  %v3895_v52 = vld [vmem:[#allocation15 + $0x490] sm:$0xff]  ;;  %v6394_v40 = vcombine.low %v3928_v29, %v3932_v30 }
 0x87e   :  { %5520 = vmatpush1.bf16.msra.mxu0 %v6296_v56  ;;  %v6352_v56 = vcombine.low %v3887_v45, %v3891_v46  ;;  %v3944_v45 = vld [vmem:[#allocation15 + $0x618] sm:$0xff] }
 0x87f   :  { %5606 = vmatpush1.bf16.msra.mxu1 %v6298_v57  ;;  %5521 = vmatprep.subr.bf16.mxu0 %v6305_v58  ;;  %v6354_v57 = vcombine.low %v3888_v48, %v3892_v49  ;;  %v6361_v58 = vcombine.high %v3895_v52, %v3899_v53  ;;  %v3948_v46 = vld [vmem:[#allocation15 + $0x638] sm:$0xff]  ;;  %v6402_v48 = vcombine.low %v3936_v37, %v3940_v38 }
 0x880   :  { %5607 = vmatprep.subr.bf16.mxu1 %v6307_v59  ;;  %v6363_v59 = vcombine.high %v3896_v17, %v3900_v55 }
 0x882   :  { %5522 = vmatpush1.bf16.msra.mxu0 %v6304_v5  ;;  %v6360_v5 = vcombine.low %v3895_v52, %v3899_v53  ;;  %v3955_v52 = vld [vmem:[#allocation15 + $0x670] sm:$0xff]  ;;  %v3952_v53 = vld [vmem:[#allocation15 + $0x658] sm:$0xff] }
 0x883   :  { %5608 = vmatpush1.bf16.msra.mxu1 %v6306_v6  ;;  %5523 = vmatprep.subr.bf16.mxu0 %v6313_v7  ;;  %v6369_v6 = vcombine.high %v3903_v60, %v3907_v0  ;;  %v6371_v7 = vcombine.high %v3904_v3, %v3908_v4 }
 0x884   :  { %5609 = vmatprep.subr.bf16.mxu1 %v6315_v8  ;;  %v3911_v8 = vld [vmem:[#allocation15 + $0x510] sm:$0xff] }
 0x885   :  { %v6376_v25 = vcombine.low %v3911_v8, %v3915_v9 }
 0x886   :  { %5524 = vmatpush1.bf16.msra.mxu0 %v6312_v21  ;;  %v6377_v21 = vcombine.high %v3911_v8, %v3915_v9  ;;  %v3968_v8 = vld [vmem:[#allocation15 + $0x6d8] sm:$0xff] }
 0x887   :  { %5610 = vmatpush1.bf16.msra.mxu1 %v6314_v22  ;;  %5525 = vmatprep.subr.bf16.mxu0 %v6321_v23  ;;  %v6379_v22 = vcombine.high %v3912_v12, %v3916_v13  ;;  %v3919_v23 = vld [vmem:[#allocation15 + $0x550] sm:$0xff]  ;;  %v3972_v9 = vld [vmem:[#allocation15 + $0x6f8] sm:$0xff] }
 0x888   :  { %5611 = vmatprep.subr.bf16.mxu1 %v6323_v14  ;;  %v3923_v14 = vld [vmem:[#allocation15 + $0x570] sm:$0xff] }
 0x889   :  { %v6384_v31 = vcombine.low %v3919_v23, %v3923_v14 }
 0x88a   :  { %5526 = vmatpush1.bf16.msra.mxu0 %v6320_v19  ;;  %v6385_v19 = vcombine.high %v3919_v23, %v3923_v14  ;;  %v3976_v23 = vld [vmem:[#allocation15 + $0x718] sm:$0xff] }
 0x88b   :  { %5612 = vmatpush1.bf16.msra.mxu1 %v6322_v20  ;;  %5527 = vmatprep.subr.bf16.mxu0 %v6329_v27  ;;  %v6387_v20 = vcombine.high %v3920_v15, %v3924_v24  ;;  %v3927_v27 = vld [vmem:[#allocation15 + $0x590] sm:$0xff]  ;;  %v3980_v14 = vld [vmem:[#allocation15 + $0x738] sm:$0xff]  ;;  %v6434_v24 = vcombine.low %v3968_v8, %v3972_v9 }
 0x88c   :  { %5613 = vmatprep.subr.bf16.mxu1 %v6331_v28  ;;  %v3931_v28 = vld [vmem:[#allocation15 + $0x5b0] sm:$0xff] }
 0x88d   :  { %v6392_v39 = vcombine.low %v3927_v27, %v3931_v28 }
 0x88e   :  { %5528 = vmatpush1.bf16.msra.mxu0 %v6328_v33  ;;  %v6393_v33 = vcombine.high %v3927_v27, %v3931_v28  ;;  %v3984_v27 = vld [vmem:[#allocation15 + $0x758] sm:$0xff] }
 0x88f   :  { %5614 = vmatpush1.bf16.msra.mxu1 %v6330_v34  ;;  %5529 = vmatprep.subr.bf16.mxu0 %v6337_v35  ;;  %v6395_v34 = vcombine.high %v3928_v29, %v3932_v30  ;;  %v3935_v35 = vld [vmem:[#allocation15 + $0x5d0] sm:$0xff]  ;;  %v3988_v28 = vld [vmem:[#allocation15 + $0x778] sm:$0xff]  ;;  %v6442_v30 = vcombine.low %v3976_v23, %v3980_v14 }
 0x890   :  { %5615 = vmatprep.subr.bf16.mxu1 %v6339_v36  ;;  %v3939_v36 = vld [vmem:[#allocation15 + $0x5f0] sm:$0xff] }
 0x892   :  { %5530 = vmatpush1.bf16.msra.mxu0 %v6336_v41  ;;  %v6401_v41 = vcombine.high %v3935_v35, %v3939_v36 }
 0x893   :  { %5616 = vmatpush1.bf16.msra.mxu1 %v6338_v42  ;;  %5542 = vmatprep.subr.bf16.mxu0 %v6345_v43  ;;  %v6403_v42 = vcombine.high %v3936_v37, %v3940_v38  ;;  %v3943_v43 = vld [vmem:[#allocation15 + $0x610] sm:$0xff]  ;;  %v6450_v38 = vcombine.low %v3984_v27, %v3988_v28 }
 0x894   :  { %5628 = vmatprep.subr.bf16.mxu1 %v6347_v44  ;;  %v3947_v44 = vld [vmem:[#allocation15 + $0x630] sm:$0xff] }
 0x895   :  { %5532 = vmatmul.mubr.bf16.vlgmr.msra.gmra.mrb[16].mxu0 %v7899_v10  ;;  %v6409_v49 = vcombine.high %v3943_v43, %v3947_v44 }
 0x896   :  { %5618 = vmatmul.mubr.bf16.vlgmr.msra.gmra.mrb[28].mxu1 %v7899_v10  ;;  %5543 = vmatpush1.bf16.msra.mxu0 %v6344_v47  ;;  %v6362_v10 = vcombine.low %v3896_v17, %v3900_v55  ;;  %v6400_v47 = vcombine.low %v3935_v35, %v3939_v36  ;;  %v6408_v17 = vcombine.low %v3943_v43, %v3947_v44  ;;  %v3992_v35 = vld [vmem:[#allocation15 + $0x798] sm:$0xff] }
 0x897   :  { %5574 = vmatprep.mubr.bf16.mxu0 %v7905_v18  ;;  %5629 = vmatpush1.bf16.msra.mxu1 %v6346_v50  ;;  %v6411_v50 = vcombine.high %v3944_v45, %v3948_v46  ;;  %v6410_v55 = vcombine.low %v3944_v45, %v3948_v46  ;;  %v3996_v36 = vld [vmem:[#allocation15 + $0x7b8] sm:$0xff] }
 0x898   :  { %5660 = vmatprep.mubr.bf16.mxu1 %v7905_v18  ;;  %5544 = vmatprep.subr.bf16.mxu0 %v6353_v51  ;;  %v6368_v18 = vcombine.low %v3903_v60, %v3907_v0  ;;  %v3951_v51 = vld [vmem:[#allocation15 + $0x650] sm:$0xff]  ;;  %v3960_v60 = vld [vmem:[#allocation15 + $0x698] sm:$0xff]  ;;  %v6458_v46 = vcombine.low %v3992_v35, %v3996_v36 }
 0x899   :  { %5630 = vmatprep.subr.bf16.mxu1 %v6355_v54  ;;  %v3956_v54 = vld [vmem:[#allocation15 + $0x678] sm:$0xff]  ;;  %v6416_v3 = vcombine.low %v3951_v51, %v3955_v52 }
 0x89a   :  { %5545 = vmatpush1.bf16.msra.mxu0 %v6352_v56  ;;  %v6417_v56 = vcombine.high %v3951_v51, %v3955_v52  ;;  %v3964_v0 = vld [vmem:[#allocation15 + $0x6b8] sm:$0xff]  ;;  %v6418_v4 = vcombine.low %v3952_v53, %v3956_v54 }
 0x89b   :  { %5631 = vmatpush1.bf16.msra.mxu1 %v6354_v57  ;;  %5546 = vmatprep.subr.bf16.mxu0 %v6361_v58  ;;  %v6419_v57 = vcombine.high %v3952_v53, %v3956_v54  ;;  %v3959_v58 = vld [vmem:[#allocation15 + $0x690] sm:$0xff]  ;;  %v6426_v13 = vcombine.low %v3960_v60, %v3964_v0  ;;  %v4000_v43 = vld [vmem:[#allocation15 + $0x7d8] sm:$0xff] }
 0x89c   :  { %5632 = vmatprep.subr.bf16.mxu1 %v6363_v59  ;;  %v3963_v59 = vld [vmem:[#allocation15 + $0x6b0] sm:$0xff]  ;;  %v4004_v44 = vld [vmem:[#allocation15 + $0x7f8] sm:$0xff] }
 0x89d   :  { %v6424_v12 = vcombine.low %v3959_v58, %v3963_v59  ;;  %v4005_v51 = vld [vmem:[%s7975_s17] sm:$0xff] }
 0x89e   :  { %5547 = vmatpush1.bf16.msra.mxu0 %v6360_v5  ;;  %v6425_v5 = vcombine.high %v3959_v58, %v3963_v59  ;;  %v4010_v52 = vrot.slane %v4005_v51, %v7815_v62  ;;  %v4018_v53 = vrot.slane %v4005_v51, %v7818_v63  ;;  %v4014_v54 = vrot.slane %v4005_v51, %v7821_v1 }
 0x89f   :  { %5633 = vmatpush1.bf16.msra.mxu1 %v6362_v10  ;;  %5548 = vmatprep.subr.bf16.mxu0 %v6369_v6  ;;  %v6427_v10 = vcombine.high %v3960_v60, %v3964_v0  ;;  %v3967_v6 = vld [vmem:[#allocation15 + $0x6d0] sm:$0xff] }
 0x8a0   :  { %5634 = vmatprep.subr.bf16.mxu1 %v6371_v7  ;;  %v3971_v7 = vld [vmem:[#allocation15 + $0x6f0] sm:$0xff] }
 0x8a1   :  { %v6432_v15 = vcombine.low %v3967_v6, %v3971_v7 }
 0x8a2   :  { %5549 = vmatpush1.bf16.msra.mxu0 %v6368_v18  ;;  %v6433_v18 = vcombine.high %v3967_v6, %v3971_v7 }
 0x8a3   :  { %5635 = vmatpush1.bf16.msra.mxu1 %v6370_v16  ;;  %5550 = vmatprep.subr.bf16.mxu0 %v6377_v21  ;;  %v6435_v16 = vcombine.high %v3968_v8, %v3972_v9  ;;  %v3975_v21 = vld [vmem:[#allocation15 + $0x710] sm:$0xff] }
 0x8a4   :  { %5636 = vmatprep.subr.bf16.mxu1 %v6379_v22  ;;  %v3979_v22 = vld [vmem:[#allocation15 + $0x730] sm:$0xff] }
 0x8a5   :  { %v6440_v29 = vcombine.low %v3975_v21, %v3979_v22 }
 0x8a6   :  { %5551 = vmatpush1.bf16.msra.mxu0 %v6376_v25  ;;  %v6441_v25 = vcombine.high %v3975_v21, %v3979_v22 }
 0x8a7   :  { %5637 = vmatpush1.bf16.msra.mxu1 %v6378_v26  ;;  %5552 = vmatprep.subr.bf16.mxu0 %v6385_v19  ;;  %v6443_v26 = vcombine.high %v3976_v23, %v3980_v14  ;;  %v3983_v19 = vld [vmem:[#allocation15 + $0x750] sm:$0xff] }
 0x8a8   :  { %5638 = vmatprep.subr.bf16.mxu1 %v6387_v20  ;;  %v3987_v20 = vld [vmem:[#allocation15 + $0x770] sm:$0xff] }
 0x8a9   :  { %v6448_v37 = vcombine.low %v3983_v19, %v3987_v20 }
 0x8aa   :  { %5553 = vmatpush1.bf16.msra.mxu0 %v6384_v31  ;;  %v6449_v31 = vcombine.high %v3983_v19, %v3987_v20 }
 0x8ab   :  { %5639 = vmatpush1.bf16.msra.mxu1 %v6386_v32  ;;  %5554 = vmatprep.subr.bf16.mxu0 %v6393_v33  ;;  %v6451_v32 = vcombine.high %v3984_v27, %v3988_v28  ;;  %v3991_v33 = vld [vmem:[#allocation15 + $0x790] sm:$0xff] }
 0x8ac   :  { %5640 = vmatprep.subr.bf16.mxu1 %v6395_v34  ;;  %v3995_v34 = vld [vmem:[#allocation15 + $0x7b0] sm:$0xff] }
 0x8ad   :  { %v6456_v45 = vcombine.low %v3991_v33, %v3995_v34 }
 0x8ae   :  { %5555 = vmatpush1.bf16.msra.mxu0 %v6392_v39  ;;  %v6457_v39 = vcombine.high %v3991_v33, %v3995_v34 }
 0x8af   :  { %5641 = vmatpush1.bf16.msra.mxu1 %v6394_v40  ;;  %5556 = vmatprep.subr.bf16.mxu0 %v6401_v41  ;;  %v6459_v40 = vcombine.high %v3992_v35, %v3996_v36  ;;  %v3999_v41 = vld [vmem:[#allocation15 + $0x7d0] sm:$0xff] }
 0x8b0   :  { %5642 = vmatprep.subr.bf16.mxu1 %v6403_v42  ;;  %v4003_v42 = vld [vmem:[#allocation15 + $0x7f0] sm:$0xff] }
 0x8b2   :  { %5557 = vmatpush1.bf16.msra.mxu0 %v6400_v47  ;;  %v6465_v47 = vcombine.high %v3999_v41, %v4003_v42 }
 0x8b3   :  { %5643 = vmatpush1.bf16.msra.mxu1 %v6402_v48  ;;  %5558 = vmatprep.subr.bf16.mxu0 %v6409_v49  ;;  %v6467_v48 = vcombine.high %v4000_v43, %v4004_v44  ;;  %v6464_v49 = vcombine.low %v3999_v41, %v4003_v42 }
 0x8b4   :  { %5644 = vmatprep.subr.bf16.mxu1 %v6411_v50  ;;  %v6466_v50 = vcombine.low %v4000_v43, %v4004_v44 }
 0x8b6   :  { %5559 = vmatpush1.bf16.msra.mxu0 %v6408_v17  ;;  %v4022_v17 = vrot.slane %v4005_v51, %v7824_v2 }
 0x8b7   :  { %5645 = vmatpush1.bf16.msra.mxu1 %v6410_v55  ;;  %5560 = vmatprep.subr.bf16.mxu0 %v6417_v56 }
 0x8b8   :  { %5646 = vmatprep.subr.bf16.mxu1 %v6419_v57 }
 0x8ba   :  { %5561 = vmatpush1.bf16.msra.mxu0 %v6416_v3 }
 0x8bb   :  { %5647 = vmatpush1.bf16.msra.mxu1 %v6418_v4  ;;  %5562 = vmatprep.subr.bf16.mxu0 %v6425_v5 }
 0x8bc   :  { %5648 = vmatprep.subr.bf16.mxu1 %v6427_v10 }
 0x8be   :  { %5563 = vmatpush1.bf16.msra.mxu0 %v6424_v12 }
 0x8bf   :  { %5649 = vmatpush1.bf16.msra.mxu1 %v6426_v13  ;;  %5564 = vmatprep.subr.bf16.mxu0 %v6433_v18 }
 0x8c0   :  { %5650 = vmatprep.subr.bf16.mxu1 %v6435_v16 }
 0x8c2   :  { %5565 = vmatpush1.bf16.msra.mxu0 %v6432_v15  ;;  %v4025_v15 = vsub.s32 4, %v7812_v61 }
 0x8c3   :  { %5651 = vmatpush1.bf16.msra.mxu1 %v6434_v24  ;;  %5566 = vmatprep.subr.bf16.mxu0 %v6441_v25  ;;  %v4033_v24 = vsub.s32 6, %v7812_v61  ;;  %v4029_v25 = vsub.s32 5, %v7812_v61 }
 0x8c4   :  { %5652 = vmatprep.subr.bf16.mxu1 %v6443_v26  ;;  %v4037_v26 = vsub.s32 7, %v7812_v61  ;;  %v4026_v19 = vrot.slane %v4005_v51, %v4025_v15 }
 0x8c5   :  { %v4034_v20 = vrot.slane %v4005_v51, %v4033_v24  ;;  %v4030_v27 = vrot.slane %v4005_v51, %v4029_v25 }
 0x8c6   :  { %5567 = vmatpush1.bf16.msra.mxu0 %v6440_v29  ;;  %v4038_v28 = vrot.slane %v4005_v51, %v4037_v26 }
 0x8c7   :  { %5653 = vmatpush1.bf16.msra.mxu1 %v6442_v30  ;;  %5568 = vmatprep.subr.bf16.mxu0 %v6449_v31 }
 0x8c8   :  { %5654 = vmatprep.subr.bf16.mxu1 %v6451_v32 }
 0x8ca   :  { %5569 = vmatpush1.bf16.msra.mxu0 %v6448_v37 }
 0x8cb   :  { %5655 = vmatpush1.bf16.msra.mxu1 %v6450_v38  ;;  %5570 = vmatprep.subr.bf16.mxu0 %v6457_v39 }
 0x8cc   :  { %5656 = vmatprep.subr.bf16.mxu1 %v6459_v40 }
 0x8ce   :  { %5571 = vmatpush1.bf16.msra.mxu0 %v6456_v45 }
 0x8cf   :  { %5657 = vmatpush1.bf16.msra.mxu1 %v6458_v46  ;;  %5572 = vmatprep.subr.bf16.mxu0 %v6465_v47 }
 0x8d0   :  { %5658 = vmatprep.subr.bf16.mxu1 %v6467_v48 }
 0x8d2   :  { %5573 = vmatpush1.bf16.msra.mxu0 %v6464_v49 }
 0x8d3   :  { %5659 = vmatpush1.bf16.msra.mxu1 %v6466_v50 }
 0x8d5   :  { %5575 = vmatmul.mubr.bf16.vlgmr.msra.gmra.mrb[16].mxu0 %v7901_v11 }
 0x8d6   :  { %5661 = vmatmul.mubr.bf16.vlgmr.msra.gmra.mrb[28].mxu1 %v7901_v11 }
 0x928   :  { %v5404_v55 = vpop.f32.mrb[12].mxu0  ;;  %v5490_v56 = vpop.f32.mrb[24].mxu1 }
 0x929   :  { %v6547_v57 = vadd.f32 %v5404_v55, %v4010_v52  ;;  %v6551_v58 = vadd.f32 %v5490_v56, %v4018_v53  ;;  %v5406_v59 = vpop.f32.mrb[13].mxu0  ;;  %v5492_v60 = vpop.f32.mrb[25].mxu1 }
 0x92a   :  { %v6548_v0 = vadd.f32 %v5406_v59, %v4014_v54  ;;  %v6552_v11 = vadd.f32 %v5492_v60, %v4022_v17  ;;  %v5408_v3 = vpop.f32.mrb[14].mxu0  ;;  %v5494_v4 = vpop.f32.mrb[26].mxu1 }
 0x92b   :  { %v5671_v5 = vmax.f32 %v6547_v57, 0.0  ;;  %v5673_v10 = vmax.f32 %v6551_v58, 0.0  ;;  %v6549_v6 = vadd.f32 %v5408_v3, %v4010_v52  ;;  %v6553_v62 = vadd.f32 %v5494_v4, %v4018_v53  ;;  %v5410_v7 = vpop.f32.mrb[15].mxu0  ;;  %v5496_v63 = vpop.f32.mrb[27].mxu1 }
 0x92c   :  { %v5672_v8 = vmax.f32 %v6548_v0, 0.0  ;;  %v5674_v1 = vmax.f32 %v6552_v11, 0.0  ;;  %v6550_v9 = vadd.f32 %v5410_v7, %v4014_v54  ;;  %v6554_v2 = vadd.f32 %v5496_v63, %v4022_v17 }
 0x92d   :  { %v5679_v12 = vmax.f32 %v6549_v6, 0.0  ;;  %v5681_v13 = vmax.f32 %v6553_v62, 0.0 }
 0x92e   :  { %v6476_v18 = vpack.c.bf16 %v5672_v8, %v5671_v5  ;;  %v6477_v16 = vpack.c.bf16 %v5674_v1, %v5673_v10  ;;  %v5680_v21 = vmax.f32 %v6550_v9, 0.0  ;;  %v5682_v22 = vmax.f32 %v6554_v2, 0.0 }
 0x930   :  { %5741 = vst [vmem:[%s7977_s19] sm:$0xff] %v6476_v18  ;;  %5742 = vst [vmem:[%s7977_s19 + $0x8] sm:$0xff] %v6477_v16  ;;  %v6480_v23 = vpack.c.bf16 %v5680_v21, %v5679_v12  ;;  %v6481_v14 = vpack.c.bf16 %v5682_v22, %v5681_v13 }
 0x932   :  { %5745 = vst [vmem:[%s7977_s19 + $0x20] sm:$0xff] %v6480_v23  ;;  %5746 = vst [vmem:[%s7977_s19 + $0x28] sm:$0xff] %v6481_v14 }
 0x9a8   :  { %v5576_v29 = vpop.f32.mrb[16].mxu0 }
 0x9a9   :  { %v6555_v30 = vadd.f32 %v5576_v29, %v4026_v19  ;;  %v5662_v31 = vpop.f32.mrb[28].mxu1  ;;  %v5578_v32 = vpop.f32.mrb[17].mxu0 }
 0x9aa   :  { %v6559_v33 = vadd.f32 %v5662_v31, %v4034_v20  ;;  %v6556_v34 = vadd.f32 %v5578_v32, %v4030_v27  ;;  %v5664_v35 = vpop.f32.mrb[29].mxu1  ;;  %v5580_v36 = vpop.f32.mrb[18].mxu0 }
 0x9ab   :  { %v5675_v37 = vmax.f32 %v6555_v30, 0.0  ;;  %v6560_v38 = vadd.f32 %v5664_v35, %v4038_v28  ;;  %v6557_v39 = vadd.f32 %v5580_v36, %v4026_v19  ;;  %v5666_v40 = vpop.f32.mrb[30].mxu1  ;;  %v5582_v41 = vpop.f32.mrb[19].mxu0 }
 0x9ac   :  { %v5677_v42 = vmax.f32 %v6559_v33, 0.0  ;;  %v5676_v43 = vmax.f32 %v6556_v34, 0.0  ;;  %v6561_v61 = vadd.f32 %v5666_v40, %v4034_v20  ;;  %v6558_v44 = vadd.f32 %v5582_v41, %v4030_v27  ;;  %v5668_v45 = vpop.f32.mrb[31].mxu1 }
 0x9ad   :  { %v5678_v46 = vmax.f32 %v6560_v38, 0.0  ;;  %v5683_v47 = vmax.f32 %v6557_v39, 0.0  ;;  %v6562_v48 = vadd.f32 %v5668_v45, %v4038_v28 }
 0x9ae   :  { %v6478_v49 = vpack.c.bf16 %v5676_v43, %v5675_v37  ;;  %v5685_v50 = vmax.f32 %v6561_v61, 0.0  ;;  %v5684_v51 = vmax.f32 %v6558_v44, 0.0 }
 0x9af   :  { %v6479_v52 = vpack.c.bf16 %v5678_v46, %v5677_v42  ;;  %v5686_v53 = vmax.f32 %v6562_v48, 0.0 }
 0x9b0   :  { %5743 = vst [vmem:[%s7977_s19 + $0x10] sm:$0xff] %v6478_v49  ;;  %v6482_v54 = vpack.c.bf16 %v5684_v51, %v5683_v47 }
 0x9b1   :  { %5744 = vst [vmem:[%s7977_s19 + $0x18] sm:$0xff] %v6479_v52  ;;  %v6483_v17 = vpack.c.bf16 %v5686_v53, %v5685_v50 }
 0x9b2   :  { %5747 = vst [vmem:[%s7977_s19 + $0x30] sm:$0xff] %v6482_v54 }
 0x9b3   :  { %5748 = vst [vmem:[%s7977_s19 + $0x38] sm:$0xff] %v6483_v17 }
 0x9b4   :  { %5757 = vsyncpa [#allocation3], 1 }
 0x9b5   :  { %5758 = vsyncpa [#allocation5], 1 }
 0x9b6   :  { %5759 = vsyncpa [#allocation8], 1 }
 0x9b7   :  { %5760 = vsyncpa [#allocation11], 1 }
 0x9b8   :  { %5761 = vsyncpa [#allocation14], 1 }

</bundles_post_ra>
